<compile_context>
chip_gen: v7x
topology: tpu7x:2x2x1
jax: 0.10.0
libtpu: 0.0.40
codegen_flags: <defaults>
</compile_context>

<pallas_src>
import functools

import jax
import jax.numpy as jnp
from jax.experimental import pallas as pl
from jax.experimental.pallas import tpu as pltpu


# ----------------------------------------------------------------------------
# Fused Pallas kernel
# ----------------------------------------------------------------------------
def _make_ann_kernel(L, T_swl, T, B, H, out_size, compute_dtype):
    """Builds the fused kernel.  All loop bounds are static Python ints, so the
    time/layer loops are fully unrolled at trace time."""

    def kernel(x_swl_ref, x_ref,
               wih_swl_ref, whh_swl_ref, b_swl_ref,
               wih_ref, whh_ref, b_ref,
               fcw_ref, fcb_ref,
               out_ref,
               h_scr, c_scr, seq_scr, fc_scr):
        # h_0 = c_0 = zeros(L, B, H).  The final state of the swl stack is
        # deliberately NOT reset before the second stack: PyTorch feeds
        # (hn_swl, cn_swl) as the initial state of self.lstm.
        h_scr[...] = jnp.zeros_like(h_scr)
        c_scr[...] = jnp.zeros_like(c_scr)

        def run_stack(x_in_ref, wih_all, whh_all, b_all, n_steps, t_off):
            for l in range(L):
                w_ih = wih_all[l]            # (H, 4H)  compute_dtype, gates i|f|g|o
                w_hh = whh_all[l]            # (H, 4H)  compute_dtype
                b = b_all[l]                 # (1, 4H)  f32  (= b_ih + b_hh)
                top = (l == L - 1)

                # Batched input projection for the whole sequence of this layer:
                # one MXU matmul per layer instead of one per timestep.
                if l == 0:
                    src_all = x_in_ref[...]                    # (n_steps*B, H) f32
                else:
                    src_all = seq_scr[0:n_steps * B]           # (n_steps*B, H) f32
                xproj = jnp.dot(src_all.astype(compute_dtype), w_ih,
                                preferred_element_type=jnp.float32) + b

                for t in range(n_steps):                       # static unroll
                    h = h_scr[l]                               # (B, H) f32
                    c = c_scr[l]
                    gates = xproj[t * B:(t + 1) * B] + jnp.dot(
                        h.astype(compute_dtype), w_hh,
                        preferred_element_type=jnp.float32)    # (B, 4H) f32
                    i_g = jax.nn.sigmoid(gates[:, 0 * H:1 * H])
                    f_g = jax.nn.sigmoid(gates[:, 1 * H:2 * H])
                    g_g = jnp.tanh(gates[:, 2 * H:3 * H])
                    o_g = jax.nn.sigmoid(gates[:, 3 * H:4 * H])
                    c_new = f_g * c + i_g * g_g
                    h_new = o_g * jnp.tanh(c_new)
                    h_scr[l] = h_new
                    c_scr[l] = c_new
                    if top:
                        # Write top-layer output straight into the lane-dense
                        # fc1 input slab: column block (t_off+t)*H .. +H equals
                        # cat((out_swl,out_lstm),1).reshape(B, H*out_size).
                        col = (t_off + t) * H
                        fc_scr[:, col:col + H] = h_new
                    else:
                        # Next layer's input for this timestep (in-place is safe:
                        # this row was already consumed for the current layer).
                        seq_scr[t * B:(t + 1) * B] = h_new

        run_stack(x_swl_ref, wih_swl_ref, whh_swl_ref, b_swl_ref, T_swl, 0)
        run_stack(x_ref, wih_ref, whh_ref, b_ref, T, T_swl)

        # fc1 + sigmoid on the lane-dense (B, H*out_size) slab.
        y = jnp.dot(fc_scr[...].astype(compute_dtype), fcw_ref[...],
                    preferred_element_type=jnp.float32) + fcb_ref[...]
        out_ref[...] = jax.nn.sigmoid(y).astype(out_ref.dtype)

    return kernel


# ----------------------------------------------------------------------------
# Parameter construction (mirrors PyTorch defaults; weights prepped for kernel)
# ----------------------------------------------------------------------------
def make_ann_params(key, input_size_swl, input_size, hidden_size, output_size,
                    num_lstm_layers, compute_dtype=jnp.bfloat16):
    H = hidden_size
    L = num_lstm_layers
    bound = float(H) ** -0.5

    def unif(key, shape, bnd):
        return jax.random.uniform(key, shape, jnp.float32, -bnd, bnd)

    params = {}
    for suffix, in_dim in (("_swl", input_size_swl), ("", input_size)):
        wih_l, whh_l, b_l = [], [], []
        for l in range(L):
            din = in_dim if l == 0 else H
            key, k1, k2, k3, k4 = jax.random.split(key, 5)
            w_ih = unif(k1, (4 * H, din), bound)   # PyTorch layout (4H, Din), gates i,f,g,o
            w_hh = unif(k2, (4 * H, H), bound)
            b_ih = unif(k3, (4 * H,), bound)
            b_hh = unif(k4, (4 * H,), bound)
            # Transpose and zero-pad the input-side rows up to H so every layer
            # has the same (H, 4H) shape and can be stacked into one array.
            w_ih_t = jnp.zeros((H, 4 * H), jnp.float32).at[:din, :].set(w_ih.T)
            wih_l.append(w_ih_t)
            whh_l.append(w_hh.T)
            b_l.append((b_ih + b_hh).reshape(1, 4 * H))
        params["wih" + suffix] = jnp.stack(wih_l).astype(compute_dtype)  # (L, H, 4H)
        params["whh" + suffix] = jnp.stack(whh_l).astype(compute_dtype)  # (L, H, 4H)
        params["b" + suffix] = jnp.stack(b_l)                            # (L, 1, 4H) f32

    key, kf1, kf2 = jax.random.split(key, 3)
    fan_in = hidden_size * output_size
    kw = float(fan_in) ** -0.5
    fc_w = unif(kf1, (output_size, fan_in), kw)                # (O, H*O)
    fc_b = jax.random.normal(kf2, (output_size,), jnp.float32) # nn.init.normal_ std=1
    params["fc1_wT"] = fc_w.T.astype(compute_dtype)            # (H*O, O)
    params["fc1_b"] = fc_b.reshape(1, output_size)             # (1, O) f32
    return params


# ----------------------------------------------------------------------------
# Forward wrapper (single pallas_call)
# ----------------------------------------------------------------------------
def _prep_input(x_btd, H):
    """(B, T, D) batch-first -> (T*B, H) time-major rows, feature dim zero-padded
    to H (the padded weight rows are zero, so this is exact)."""
    B, T, D = x_btd.shape
    x = jnp.transpose(x_btd, (1, 0, 2))              # (T, B, D)
    if D < H:
        x = jnp.pad(x, ((0, 0), (0, 0), (0, H - D)))
    return x.reshape(T * B, H)


@functools.partial(jax.jit, static_argnames=("hidden_size", "output_size",
                                             "num_lstm_layers"))
def ann_forward(params, input_swl, inp, *, hidden_size, output_size,
                num_lstm_layers):
    B, T_swl, D_swl = input_swl.shape
    B2, T, D = inp.shape
    H, O, L = hidden_size, output_size, num_lstm_layers
    assert B == B2
    # Same constraint the PyTorch reshape imposes: H*(T_swl+T) == H*output_size.
    assert T_swl + T == O, "seq(input_swl) + seq(input) must equal output_size"
    assert D_swl <= H and D <= H, "fused kernel pads layer-0 features up to hidden_size"

    x_swl = _prep_input(input_swl, H)                # (T_swl*B, H) f32
    x = _prep_input(inp, H)                          # (T*B,     H) f32

    seq_rows = max(T_swl, T) * B
    kernel = _make_ann_kernel(L, T_swl, T, B, H, O, compute_dtype=jnp.bfloat16)

    out = pl.pallas_call(
        kernel,
        out_shape=jax.ShapeDtypeStruct((B, O), jnp.float32),
        scratch_shapes=[
            pltpu.VMEM((L, B, H), jnp.float32),      # h state (persists across both stacks)
            pltpu.VMEM((L, B, H), jnp.float32),      # c state
            pltpu.VMEM((seq_rows, H), jnp.float32),  # inter-layer sequence buffer
            pltpu.VMEM((B, H * O), jnp.float32),     # lane-dense fc1 input slab
        ],
    )(x_swl, x,
      params["wih_swl"], params["whh_swl"], params["b_swl"],
      params["wih"], params["whh"], params["b"],
      params["fc1_wT"], params["fc1_b"])
    return out.reshape(B, 1, O)


# ----------------------------------------------------------------------------
if __name__ == "__main__":
    # Small shapes consistent with the module's reshape constraint:
    # output_size == seq_len(input_swl) + seq_len(input)
    B = 2
    input_size_swl = 6
    input_size = 5
    hidden_size = 32
    num_lstm_layers = 2
    seq_swl = 4
    seq = 4
    output_size = seq_swl + seq                      # = 8

    key = jax.random.PRNGKey(0)
    key, kp, k1, k2 = jax.random.split(key, 4)
    params = make_ann_params(kp, input_size_swl, input_size, hidden_size,
                             output_size, num_lstm_layers)
    input_swl = jax.random.normal(k1, (B, seq_swl, input_size_swl), jnp.float32)
    inp = jax.random.normal(k2, (B, seq, input_size), jnp.float32)

    out = ann_forward(params, input_swl, inp,
                      hidden_size=hidden_size,
                      output_size=output_size,
                      num_lstm_layers=num_lstm_layers)
    out = jax.block_until_ready(out)
    assert out.shape == (B, 1, output_size), out.shape
    assert bool(jnp.all(jnp.isfinite(out)))
    print("KERNEL_OK")
</pallas_src>

<mosaic_0001>
module attributes {stable_mosaic.version = 11 : i64} {
  func.func @kernel(%arg0: memref<8x32xf32, #tpu.memory_space<vmem>>, %arg1: memref<8x32xf32, #tpu.memory_space<vmem>>, %arg2: memref<2x32x128xbf16, #tpu.memory_space<vmem>>, %arg3: memref<2x32x128xbf16, #tpu.memory_space<vmem>>, %arg4: memref<2x1x128xf32, #tpu.memory_space<vmem>>, %arg5: memref<2x32x128xbf16, #tpu.memory_space<vmem>>, %arg6: memref<2x32x128xbf16, #tpu.memory_space<vmem>>, %arg7: memref<2x1x128xf32, #tpu.memory_space<vmem>>, %arg8: memref<256x8xbf16, #tpu.memory_space<vmem>>, %arg9: memref<1x8xf32, #tpu.memory_space<vmem>>, %arg10: memref<2x8xf32, #tpu.memory_space<vmem>>, %arg11: memref<2x2x32xf32, #tpu.memory_space<vmem>>, %arg12: memref<2x2x32xf32, #tpu.memory_space<vmem>>, %arg13: memref<8x32xf32, #tpu.memory_space<vmem>>, %arg14: memref<2x256xf32, #tpu.memory_space<vmem>>) attributes {dimension_semantics = [], scalar_prefetch = 0 : i64, scratch_operands = 4 : i64, tpu.core_type = #tpu.core_type<tc>} {
    %cst = arith.constant 0.000000e+00 : f32
    %0 = vector.broadcast %cst : f32 to vector<2x2x32xf32>
    %c0 = arith.constant 0 : index
    %c0_0 = arith.constant 0 : index
    %c0_1 = arith.constant 0 : index
    %1 = vector.load %arg11[%c0, %c0_0, %c0_1] : memref<2x2x32xf32, #tpu.memory_space<vmem>>, vector<2x2x32xf32>
    tpu.vector_store %arg11[%c0, %c0_0, %c0_1], %0 {strides = array<i32>} : memref<2x2x32xf32, #tpu.memory_space<vmem>>, vector<2x2x32xf32>,
    %cst_2 = arith.constant 0.000000e+00 : f32
    %2 = vector.broadcast %cst_2 : f32 to vector<2x2x32xf32>
    %c0_3 = arith.constant 0 : index
    %c0_4 = arith.constant 0 : index
    %c0_5 = arith.constant 0 : index
    %3 = vector.load %arg12[%c0_3, %c0_4, %c0_5] : memref<2x2x32xf32, #tpu.memory_space<vmem>>, vector<2x2x32xf32>
    tpu.vector_store %arg12[%c0_3, %c0_4, %c0_5], %2 {strides = array<i32>} : memref<2x2x32xf32, #tpu.memory_space<vmem>>, vector<2x2x32xf32>,
    %c0_6 = arith.constant 0 : index
    %c0_7 = arith.constant 0 : index
    %c0_8 = arith.constant 0 : index
    %4 = vector.load %arg2[%c0_6, %c0_7, %c0_8] : memref<2x32x128xbf16, #tpu.memory_space<vmem>>, vector<1x32x128xbf16>
    %5 = vector.shape_cast %4 : vector<1x32x128xbf16> to vector<32x128xbf16>
    %c0_9 = arith.constant 0 : index
    %c0_10 = arith.constant 0 : index
    %c0_11 = arith.constant 0 : index
    %6 = vector.load %arg3[%c0_9, %c0_10, %c0_11] : memref<2x32x128xbf16, #tpu.memory_space<vmem>>, vector<1x32x128xbf16>
    %7 = vector.shape_cast %6 : vector<1x32x128xbf16> to vector<32x128xbf16>
    %c0_12 = arith.constant 0 : index
    %c0_13 = arith.constant 0 : index
    %c0_14 = arith.constant 0 : index
    %8 = vector.load %arg4[%c0_12, %c0_13, %c0_14] : memref<2x1x128xf32, #tpu.memory_space<vmem>>, vector<1x1x128xf32>
    %9 = vector.shape_cast %8 : vector<1x1x128xf32> to vector<1x128xf32>
    %c0_15 = arith.constant 0 : index
    %c0_16 = arith.constant 0 : index
    %10 = vector.load %arg0[%c0_15, %c0_16] : memref<8x32xf32, #tpu.memory_space<vmem>>, vector<8x32xf32>
    %11 = arith.truncf %10 : vector<8x32xf32> to vector<8x32xbf16>
    %cst_17 = arith.constant dense<0.000000e+00> : vector<8x128xf32>
    %12 = tpu.matmul %11, %5, %cst_17 {dimension_numbers = #tpu.dot_dimension_numbers<[1], [0], [0], [1], [0, 0, 1, 1], [], []>} : vector<8x32xbf16>, vector<32x128xbf16>, vector<8x128xf32> -> vector<8x128xf32>
    %13 = vector.broadcast %9 : vector<1x128xf32> to vector<8x128xf32>
    %14 = arith.addf %12, %13 : vector<8x128xf32>
    %c0_18 = arith.constant 0 : index
    %c0_19 = arith.constant 0 : index
    %c0_20 = arith.constant 0 : index
    %15 = vector.load %arg11[%c0_18, %c0_19, %c0_20] : memref<2x2x32xf32, #tpu.memory_space<vmem>>, vector<1x2x32xf32>
    %16 = vector.shape_cast %15 : vector<1x2x32xf32> to vector<2x32xf32>
    %c0_21 = arith.constant 0 : index
    %c0_22 = arith.constant 0 : index
    %c0_23 = arith.constant 0 : index
    %17 = vector.load %arg12[%c0_21, %c0_22, %c0_23] : memref<2x2x32xf32, #tpu.memory_space<vmem>>, vector<1x2x32xf32>
    %18 = vector.shape_cast %17 : vector<1x2x32xf32> to vector<2x32xf32>
    %19 = vector.extract_strided_slice %14 {offsets = [0, 0], sizes = [2, 128], strides = [1, 1]} : vector<8x128xf32> to vector<2x128xf32>
    %20 = arith.truncf %16 : vector<2x32xf32> to vector<2x32xbf16>
    %cst_24 = arith.constant dense<0.000000e+00> : vector<2x128xf32>
    %21 = tpu.matmul %20, %7, %cst_24 {dimension_numbers = #tpu.dot_dimension_numbers<[1], [0], [0], [1], [0, 0, 1, 1], [], []>} : vector<2x32xbf16>, vector<32x128xbf16>, vector<2x128xf32> -> vector<2x128xf32>
    %22 = arith.addf %19, %21 : vector<2x128xf32>
    %23 = vector.extract_strided_slice %22 {offsets = [0, 0], sizes = [2, 32], strides = [1, 1]} : vector<2x128xf32> to vector<2x32xf32>
    %24 = arith.negf %23 : vector<2x32xf32>
    %25 = math.exp %24 : vector<2x32xf32>
    %cst_25 = arith.constant 1.000000e+00 : f32
    %26 = vector.broadcast %cst_25 : f32 to vector<2x32xf32>
    %27 = arith.addf %26, %25 : vector<2x32xf32>
    %28 = arith.divf %26, %27 : vector<2x32xf32>
    %29 = vector.extract_strided_slice %22 {offsets = [0, 32], sizes = [2, 32], strides = [1, 1]} : vector<2x128xf32> to vector<2x32xf32>
    %30 = arith.negf %29 : vector<2x32xf32>
    %31 = math.exp %30 : vector<2x32xf32>
    %cst_26 = arith.constant 1.000000e+00 : f32
    %32 = vector.broadcast %cst_26 : f32 to vector<2x32xf32>
    %33 = arith.addf %32, %31 : vector<2x32xf32>
    %34 = arith.divf %32, %33 : vector<2x32xf32>
    %35 = vector.extract_strided_slice %22 {offsets = [0, 64], sizes = [2, 32], strides = [1, 1]} : vector<2x128xf32> to vector<2x32xf32>
    %36 = math.tanh %35 : vector<2x32xf32>
    %37 = vector.extract_strided_slice %22 {offsets = [0, 96], sizes = [2, 32], strides = [1, 1]} : vector<2x128xf32> to vector<2x32xf32>
    %38 = arith.negf %37 : vector<2x32xf32>
    %39 = math.exp %38 : vector<2x32xf32>
    %cst_27 = arith.constant 1.000000e+00 : f32
    %40 = vector.broadcast %cst_27 : f32 to vector<2x32xf32>
    %41 = arith.addf %40, %39 : vector<2x32xf32>
    %42 = arith.divf %40, %41 : vector<2x32xf32>
    %43 = arith.mulf %34, %18 : vector<2x32xf32>
    %44 = arith.mulf %28, %36 : vector<2x32xf32>
    %45 = arith.addf %43, %44 : vector<2x32xf32>
    %46 = math.tanh %45 : vector<2x32xf32>
    %47 = arith.mulf %42, %46 : vector<2x32xf32>
    %c0_28 = arith.constant 0 : index
    %c0_29 = arith.constant 0 : index
    %c0_30 = arith.constant 0 : index
    %48 = vector.load %arg11[%c0_28, %c0_29, %c0_30] : memref<2x2x32xf32, #tpu.memory_space<vmem>>, vector<1x2x32xf32>
    %49 = vector.shape_cast %48 : vector<1x2x32xf32> to vector<2x32xf32>
    %50 = vector.shape_cast %47 : vector<2x32xf32> to vector<1x2x32xf32>
    tpu.vector_store %arg11[%c0_28, %c0_29, %c0_30], %50 {strides = array<i32>} : memref<2x2x32xf32, #tpu.memory_space<vmem>>, vector<1x2x32xf32>,
    %c0_31 = arith.constant 0 : index
    %c0_32 = arith.constant 0 : index
    %c0_33 = arith.constant 0 : index
    %51 = vector.load %arg12[%c0_31, %c0_32, %c0_33] : memref<2x2x32xf32, #tpu.memory_space<vmem>>, vector<1x2x32xf32>
    %52 = vector.shape_cast %51 : vector<1x2x32xf32> to vector<2x32xf32>
    %53 = vector.shape_cast %45 : vector<2x32xf32> to vector<1x2x32xf32>
    tpu.vector_store %arg12[%c0_31, %c0_32, %c0_33], %53 {strides = array<i32>} : memref<2x2x32xf32, #tpu.memory_space<vmem>>, vector<1x2x32xf32>,
    %c0_34 = arith.constant 0 : index
    %c0_35 = arith.constant 0 : index
    %54 = vector.load %arg13[%c0_34, %c0_35] : memref<8x32xf32, #tpu.memory_space<vmem>>, vector<2x32xf32>
    tpu.vector_store %arg13[%c0_34, %c0_35], %47 {strides = array<i32>} : memref<8x32xf32, #tpu.memory_space<vmem>>, vector<2x32xf32>,
    %c0_36 = arith.constant 0 : index
    %c0_37 = arith.constant 0 : index
    %c0_38 = arith.constant 0 : index
    %55 = vector.load %arg11[%c0_36, %c0_37, %c0_38] : memref<2x2x32xf32, #tpu.memory_space<vmem>>, vector<1x2x32xf32>
    %56 = vector.shape_cast %55 : vector<1x2x32xf32> to vector<2x32xf32>
    %c0_39 = arith.constant 0 : index
    %c0_40 = arith.constant 0 : index
    %c0_41 = arith.constant 0 : index
    %57 = vector.load %arg12[%c0_39, %c0_40, %c0_41] : memref<2x2x32xf32, #tpu.memory_space<vmem>>, vector<1x2x32xf32>
    %58 = vector.shape_cast %57 : vector<1x2x32xf32> to vector<2x32xf32>
    %59 = vector.extract_strided_slice %14 {offsets = [2, 0], sizes = [2, 128], strides = [1, 1]} : vector<8x128xf32> to vector<2x128xf32>
    %60 = arith.truncf %56 : vector<2x32xf32> to vector<2x32xbf16>
    %cst_42 = arith.constant dense<0.000000e+00> : vector<2x128xf32>
    %61 = tpu.matmul %60, %7, %cst_42 {dimension_numbers = #tpu.dot_dimension_numbers<[1], [0], [0], [1], [0, 0, 1, 1], [], []>} : vector<2x32xbf16>, vector<32x128xbf16>, vector<2x128xf32> -> vector<2x128xf32>
    %62 = arith.addf %59, %61 : vector<2x128xf32>
    %63 = vector.extract_strided_slice %62 {offsets = [0, 0], sizes = [2, 32], strides = [1, 1]} : vector<2x128xf32> to vector<2x32xf32>
    %64 = arith.negf %63 : vector<2x32xf32>
    %65 = math.exp %64 : vector<2x32xf32>
    %cst_43 = arith.constant 1.000000e+00 : f32
    %66 = vector.broadcast %cst_43 : f32 to vector<2x32xf32>
    %67 = arith.addf %66, %65 : vector<2x32xf32>
    %68 = arith.divf %66, %67 : vector<2x32xf32>
    %69 = vector.extract_strided_slice %62 {offsets = [0, 32], sizes = [2, 32], strides = [1, 1]} : vector<2x128xf32> to vector<2x32xf32>
    %70 = arith.negf %69 : vector<2x32xf32>
    %71 = math.exp %70 : vector<2x32xf32>
    %cst_44 = arith.constant 1.000000e+00 : f32
    %72 = vector.broadcast %cst_44 : f32 to vector<2x32xf32>
    %73 = arith.addf %72, %71 : vector<2x32xf32>
    %74 = arith.divf %72, %73 : vector<2x32xf32>
    %75 = vector.extract_strided_slice %62 {offsets = [0, 64], sizes = [2, 32], strides = [1, 1]} : vector<2x128xf32> to vector<2x32xf32>
    %76 = math.tanh %75 : vector<2x32xf32>
    %77 = vector.extract_strided_slice %62 {offsets = [0, 96], sizes = [2, 32], strides = [1, 1]} : vector<2x128xf32> to vector<2x32xf32>
    %78 = arith.negf %77 : vector<2x32xf32>
    %79 = math.exp %78 : vector<2x32xf32>
    %cst_45 = arith.constant 1.000000e+00 : f32
    %80 = vector.broadcast %cst_45 : f32 to vector<2x32xf32>
    %81 = arith.addf %80, %79 : vector<2x32xf32>
    %82 = arith.divf %80, %81 : vector<2x32xf32>
    %83 = arith.mulf %74, %58 : vector<2x32xf32>
    %84 = arith.mulf %68, %76 : vector<2x32xf32>
    %85 = arith.addf %83, %84 : vector<2x32xf32>
    %86 = math.tanh %85 : vector<2x32xf32>
    %87 = arith.mulf %82, %86 : vector<2x32xf32>
    %c0_46 = arith.constant 0 : index
    %c0_47 = arith.constant 0 : index
    %c0_48 = arith.constant 0 : index
    %88 = vector.load %arg11[%c0_46, %c0_47, %c0_48] : memref<2x2x32xf32, #tpu.memory_space<vmem>>, vector<1x2x32xf32>
    %89 = vector.shape_cast %88 : vector<1x2x32xf32> to vector<2x32xf32>
    %90 = vector.shape_cast %87 : vector<2x32xf32> to vector<1x2x32xf32>
    tpu.vector_store %arg11[%c0_46, %c0_47, %c0_48], %90 {strides = array<i32>} : memref<2x2x32xf32, #tpu.memory_space<vmem>>, vector<1x2x32xf32>,
    %c0_49 = arith.constant 0 : index
    %c0_50 = arith.constant 0 : index
    %c0_51 = arith.constant 0 : index
    %91 = vector.load %arg12[%c0_49, %c0_50, %c0_51] : memref<2x2x32xf32, #tpu.memory_space<vmem>>, vector<1x2x32xf32>
    %92 = vector.shape_cast %91 : vector<1x2x32xf32> to vector<2x32xf32>
    %93 = vector.shape_cast %85 : vector<2x32xf32> to vector<1x2x32xf32>
    tpu.vector_store %arg12[%c0_49, %c0_50, %c0_51], %93 {strides = array<i32>} : memref<2x2x32xf32, #tpu.memory_space<vmem>>, vector<1x2x32xf32>,
    %c2 = arith.constant 2 : index
    %c0_52 = arith.constant 0 : index
    %94 = vector.load %arg13[%c2, %c0_52] : memref<8x32xf32, #tpu.memory_space<vmem>>, vector<2x32xf32>
    tpu.vector_store %arg13[%c2, %c0_52], %87 {strides = array<i32>} : memref<8x32xf32, #tpu.memory_space<vmem>>, vector<2x32xf32>,
    %c0_53 = arith.constant 0 : index
    %c0_54 = arith.constant 0 : index
    %c0_55 = arith.constant 0 : index
    %95 = vector.load %arg11[%c0_53, %c0_54, %c0_55] : memref<2x2x32xf32, #tpu.memory_space<vmem>>, vector<1x2x32xf32>
    %96 = vector.shape_cast %95 : vector<1x2x32xf32> to vector<2x32xf32>
    %c0_56 = arith.constant 0 : index
    %c0_57 = arith.constant 0 : index
    %c0_58 = arith.constant 0 : index
    %97 = vector.load %arg12[%c0_56, %c0_57, %c0_58] : memref<2x2x32xf32, #tpu.memory_space<vmem>>, vector<1x2x32xf32>
    %98 = vector.shape_cast %97 : vector<1x2x32xf32> to vector<2x32xf32>
    %99 = vector.extract_strided_slice %14 {offsets = [4, 0], sizes = [2, 128], strides = [1, 1]} : vector<8x128xf32> to vector<2x128xf32>
    %100 = arith.truncf %96 : vector<2x32xf32> to vector<2x32xbf16>
    %cst_59 = arith.constant dense<0.000000e+00> : vector<2x128xf32>
    %101 = tpu.matmul %100, %7, %cst_59 {dimension_numbers = #tpu.dot_dimension_numbers<[1], [0], [0], [1], [0, 0, 1, 1], [], []>} : vector<2x32xbf16>, vector<32x128xbf16>, vector<2x128xf32> -> vector<2x128xf32>
    %102 = arith.addf %99, %101 : vector<2x128xf32>
    %103 = vector.extract_strided_slice %102 {offsets = [0, 0], sizes = [2, 32], strides = [1, 1]} : vector<2x128xf32> to vector<2x32xf32>
    %104 = arith.negf %103 : vector<2x32xf32>
    %105 = math.exp %104 : vector<2x32xf32>
    %cst_60 = arith.constant 1.000000e+00 : f32
    %106 = vector.broadcast %cst_60 : f32 to vector<2x32xf32>
    %107 = arith.addf %106, %105 : vector<2x32xf32>
    %108 = arith.divf %106, %107 : vector<2x32xf32>
    %109 = vector.extract_strided_slice %102 {offsets = [0, 32], sizes = [2, 32], strides = [1, 1]} : vector<2x128xf32> to vector<2x32xf32>
    %110 = arith.negf %109 : vector<2x32xf32>
    %111 = math.exp %110 : vector<2x32xf32>
    %cst_61 = arith.constant 1.000000e+00 : f32
    %112 = vector.broadcast %cst_61 : f32 to vector<2x32xf32>
    %113 = arith.addf %112, %111 : vector<2x32xf32>
    %114 = arith.divf %112, %113 : vector<2x32xf32>
    %115 = vector.extract_strided_slice %102 {offsets = [0, 64], sizes = [2, 32], strides = [1, 1]} : vector<2x128xf32> to vector<2x32xf32>
    %116 = math.tanh %115 : vector<2x32xf32>
    %117 = vector.extract_strided_slice %102 {offsets = [0, 96], sizes = [2, 32], strides = [1, 1]} : vector<2x128xf32> to vector<2x32xf32>
    %118 = arith.negf %117 : vector<2x32xf32>
    %119 = math.exp %118 : vector<2x32xf32>
    %cst_62 = arith.constant 1.000000e+00 : f32
    %120 = vector.broadcast %cst_62 : f32 to vector<2x32xf32>
    %121 = arith.addf %120, %119 : vector<2x32xf32>
    %122 = arith.divf %120, %121 : vector<2x32xf32>
    %123 = arith.mulf %114, %98 : vector<2x32xf32>
    %124 = arith.mulf %108, %116 : vector<2x32xf32>
    %125 = arith.addf %123, %124 : vector<2x32xf32>
    %126 = math.tanh %125 : vector<2x32xf32>
    %127 = arith.mulf %122, %126 : vector<2x32xf32>
    %c0_63 = arith.constant 0 : index
    %c0_64 = arith.constant 0 : index
    %c0_65 = arith.constant 0 : index
    %128 = vector.load %arg11[%c0_63, %c0_64, %c0_65] : memref<2x2x32xf32, #tpu.memory_space<vmem>>, vector<1x2x32xf32>
    %129 = vector.shape_cast %128 : vector<1x2x32xf32> to vector<2x32xf32>
    %130 = vector.shape_cast %127 : vector<2x32xf32> to vector<1x2x32xf32>
    tpu.vector_store %arg11[%c0_63, %c0_64, %c0_65], %130 {strides = array<i32>} : memref<2x2x32xf32, #tpu.memory_space<vmem>>, vector<1x2x32xf32>,
    %c0_66 = arith.constant 0 : index
    %c0_67 = arith.constant 0 : index
    %c0_68 = arith.constant 0 : index
    %131 = vector.load %arg12[%c0_66, %c0_67, %c0_68] : memref<2x2x32xf32, #tpu.memory_space<vmem>>, vector<1x2x32xf32>
    %132 = vector.shape_cast %131 : vector<1x2x32xf32> to vector<2x32xf32>
    %133 = vector.shape_cast %125 : vector<2x32xf32> to vector<1x2x32xf32>
    tpu.vector_store %arg12[%c0_66, %c0_67, %c0_68], %133 {strides = array<i32>} : memref<2x2x32xf32, #tpu.memory_space<vmem>>, vector<1x2x32xf32>,
    %c4 = arith.constant 4 : index
    %c0_69 = arith.constant 0 : index
    %134 = vector.load %arg13[%c4, %c0_69] : memref<8x32xf32, #tpu.memory_space<vmem>>, vector<2x32xf32>
    tpu.vector_store %arg13[%c4, %c0_69], %127 {strides = array<i32>} : memref<8x32xf32, #tpu.memory_space<vmem>>, vector<2x32xf32>,
    %c0_70 = arith.constant 0 : index
    %c0_71 = arith.constant 0 : index
    %c0_72 = arith.constant 0 : index
    %135 = vector.load %arg11[%c0_70, %c0_71, %c0_72] : memref<2x2x32xf32, #tpu.memory_space<vmem>>, vector<1x2x32xf32>
    %136 = vector.shape_cast %135 : vector<1x2x32xf32> to vector<2x32xf32>
    %c0_73 = arith.constant 0 : index
    %c0_74 = arith.constant 0 : index
    %c0_75 = arith.constant 0 : index
    %137 = vector.load %arg12[%c0_73, %c0_74, %c0_75] : memref<2x2x32xf32, #tpu.memory_space<vmem>>, vector<1x2x32xf32>
    %138 = vector.shape_cast %137 : vector<1x2x32xf32> to vector<2x32xf32>
    %139 = vector.extract_strided_slice %14 {offsets = [6, 0], sizes = [2, 128], strides = [1, 1]} : vector<8x128xf32> to vector<2x128xf32>
    %140 = arith.truncf %136 : vector<2x32xf32> to vector<2x32xbf16>
    %cst_76 = arith.constant dense<0.000000e+00> : vector<2x128xf32>
    %141 = tpu.matmul %140, %7, %cst_76 {dimension_numbers = #tpu.dot_dimension_numbers<[1], [0], [0], [1], [0, 0, 1, 1], [], []>} : vector<2x32xbf16>, vector<32x128xbf16>, vector<2x128xf32> -> vector<2x128xf32>
    %142 = arith.addf %139, %141 : vector<2x128xf32>
    %143 = vector.extract_strided_slice %142 {offsets = [0, 0], sizes = [2, 32], strides = [1, 1]} : vector<2x128xf32> to vector<2x32xf32>
    %144 = arith.negf %143 : vector<2x32xf32>
    %145 = math.exp %144 : vector<2x32xf32>
    %cst_77 = arith.constant 1.000000e+00 : f32
    %146 = vector.broadcast %cst_77 : f32 to vector<2x32xf32>
    %147 = arith.addf %146, %145 : vector<2x32xf32>
    %148 = arith.divf %146, %147 : vector<2x32xf32>
    %149 = vector.extract_strided_slice %142 {offsets = [0, 32], sizes = [2, 32], strides = [1, 1]} : vector<2x128xf32> to vector<2x32xf32>
    %150 = arith.negf %149 : vector<2x32xf32>
    %151 = math.exp %150 : vector<2x32xf32>
    %cst_78 = arith.constant 1.000000e+00 : f32
    %152 = vector.broadcast %cst_78 : f32 to vector<2x32xf32>
    %153 = arith.addf %152, %151 : vector<2x32xf32>
    %154 = arith.divf %152, %153 : vector<2x32xf32>
    %155 = vector.extract_strided_slice %142 {offsets = [0, 64], sizes = [2, 32], strides = [1, 1]} : vector<2x128xf32> to vector<2x32xf32>
    %156 = math.tanh %155 : vector<2x32xf32>
    %157 = vector.extract_strided_slice %142 {offsets = [0, 96], sizes = [2, 32], strides = [1, 1]} : vector<2x128xf32> to vector<2x32xf32>
    %158 = arith.negf %157 : vector<2x32xf32>
    %159 = math.exp %158 : vector<2x32xf32>
    %cst_79 = arith.constant 1.000000e+00 : f32
    %160 = vector.broadcast %cst_79 : f32 to vector<2x32xf32>
    %161 = arith.addf %160, %159 : vector<2x32xf32>
    %162 = arith.divf %160, %161 : vector<2x32xf32>
    %163 = arith.mulf %154, %138 : vector<2x32xf32>
    %164 = arith.mulf %148, %156 : vector<2x32xf32>
    %165 = arith.addf %163, %164 : vector<2x32xf32>
    %166 = math.tanh %165 : vector<2x32xf32>
    %167 = arith.mulf %162, %166 : vector<2x32xf32>
    %c0_80 = arith.constant 0 : index
    %c0_81 = arith.constant 0 : index
    %c0_82 = arith.constant 0 : index
    %168 = vector.load %arg11[%c0_80, %c0_81, %c0_82] : memref<2x2x32xf32, #tpu.memory_space<vmem>>, vector<1x2x32xf32>
    %169 = vector.shape_cast %168 : vector<1x2x32xf32> to vector<2x32xf32>
    %170 = vector.shape_cast %167 : vector<2x32xf32> to vector<1x2x32xf32>
    tpu.vector_store %arg11[%c0_80, %c0_81, %c0_82], %170 {strides = array<i32>} : memref<2x2x32xf32, #tpu.memory_space<vmem>>, vector<1x2x32xf32>,
    %c0_83 = arith.constant 0 : index
    %c0_84 = arith.constant 0 : index
    %c0_85 = arith.constant 0 : index
    %171 = vector.load %arg12[%c0_83, %c0_84, %c0_85] : memref<2x2x32xf32, #tpu.memory_space<vmem>>, vector<1x2x32xf32>
    %172 = vector.shape_cast %171 : vector<1x2x32xf32> to vector<2x32xf32>
    %173 = vector.shape_cast %165 : vector<2x32xf32> to vector<1x2x32xf32>
    tpu.vector_store %arg12[%c0_83, %c0_84, %c0_85], %173 {strides = array<i32>} : memref<2x2x32xf32, #tpu.memory_space<vmem>>, vector<1x2x32xf32>,
    %c6 = arith.constant 6 : index
    %c0_86 = arith.constant 0 : index
    %174 = vector.load %arg13[%c6, %c0_86] : memref<8x32xf32, #tpu.memory_space<vmem>>, vector<2x32xf32>
    tpu.vector_store %arg13[%c6, %c0_86], %167 {strides = array<i32>} : memref<8x32xf32, #tpu.memory_space<vmem>>, vector<2x32xf32>,
    %c1 = arith.constant 1 : index
    %c0_87 = arith.constant 0 : index
    %c0_88 = arith.constant 0 : index
    %175 = vector.load %arg2[%c1, %c0_87, %c0_88] : memref<2x32x128xbf16, #tpu.memory_space<vmem>>, vector<1x32x128xbf16>
    %176 = vector.shape_cast %175 : vector<1x32x128xbf16> to vector<32x128xbf16>
    %c1_89 = arith.constant 1 : index
    %c0_90 = arith.constant 0 : index
    %c0_91 = arith.constant 0 : index
    %177 = vector.load %arg3[%c1_89, %c0_90, %c0_91] : memref<2x32x128xbf16, #tpu.memory_space<vmem>>, vector<1x32x128xbf16>
    %178 = vector.shape_cast %177 : vector<1x32x128xbf16> to vector<32x128xbf16>
    %c1_92 = arith.constant 1 : index
    %c0_93 = arith.constant 0 : index
    %c0_94 = arith.constant 0 : index
    %179 = vector.load %arg4[%c1_92, %c0_93, %c0_94] : memref<2x1x128xf32, #tpu.memory_space<vmem>>, vector<1x1x128xf32>
    %180 = vector.shape_cast %179 : vector<1x1x128xf32> to vector<1x128xf32>
    %c0_95 = arith.constant 0 : index
    %c0_96 = arith.constant 0 : index
    %181 = vector.load %arg13[%c0_95, %c0_96] : memref<8x32xf32, #tpu.memory_space<vmem>>, vector<8x32xf32>
    %182 = arith.truncf %181 : vector<8x32xf32> to vector<8x32xbf16>
    %cst_97 = arith.constant dense<0.000000e+00> : vector<8x128xf32>
    %183 = tpu.matmul %182, %176, %cst_97 {dimension_numbers = #tpu.dot_dimension_numbers<[1], [0], [0], [1], [0, 0, 1, 1], [], []>} : vector<8x32xbf16>, vector<32x128xbf16>, vector<8x128xf32> -> vector<8x128xf32>
    %184 = vector.broadcast %180 : vector<1x128xf32> to vector<8x128xf32>
    %185 = arith.addf %183, %184 : vector<8x128xf32>
    %c1_98 = arith.constant 1 : index
    %c0_99 = arith.constant 0 : index
    %c0_100 = arith.constant 0 : index
    %186 = vector.load %arg11[%c1_98, %c0_99, %c0_100] : memref<2x2x32xf32, #tpu.memory_space<vmem>>, vector<1x2x32xf32>
    %187 = vector.shape_cast %186 : vector<1x2x32xf32> to vector<2x32xf32>
    %c1_101 = arith.constant 1 : index
    %c0_102 = arith.constant 0 : index
    %c0_103 = arith.constant 0 : index
    %188 = vector.load %arg12[%c1_101, %c0_102, %c0_103] : memref<2x2x32xf32, #tpu.memory_space<vmem>>, vector<1x2x32xf32>
    %189 = vector.shape_cast %188 : vector<1x2x32xf32> to vector<2x32xf32>
    %190 = vector.extract_strided_slice %185 {offsets = [0, 0], sizes = [2, 128], strides = [1, 1]} : vector<8x128xf32> to vector<2x128xf32>
    %191 = arith.truncf %187 : vector<2x32xf32> to vector<2x32xbf16>
    %cst_104 = arith.constant dense<0.000000e+00> : vector<2x128xf32>
    %192 = tpu.matmul %191, %178, %cst_104 {dimension_numbers = #tpu.dot_dimension_numbers<[1], [0], [0], [1], [0, 0, 1, 1], [], []>} : vector<2x32xbf16>, vector<32x128xbf16>, vector<2x128xf32> -> vector<2x128xf32>
    %193 = arith.addf %190, %192 : vector<2x128xf32>
    %194 = vector.extract_strided_slice %193 {offsets = [0, 0], sizes = [2, 32], strides = [1, 1]} : vector<2x128xf32> to vector<2x32xf32>
    %195 = arith.negf %194 : vector<2x32xf32>
    %196 = math.exp %195 : vector<2x32xf32>
    %cst_105 = arith.constant 1.000000e+00 : f32
    %197 = vector.broadcast %cst_105 : f32 to vector<2x32xf32>
    %198 = arith.addf %197, %196 : vector<2x32xf32>
    %199 = arith.divf %197, %198 : vector<2x32xf32>
    %200 = vector.extract_strided_slice %193 {offsets = [0, 32], sizes = [2, 32], strides = [1, 1]} : vector<2x128xf32> to vector<2x32xf32>
    %201 = arith.negf %200 : vector<2x32xf32>
    %202 = math.exp %201 : vector<2x32xf32>
    %cst_106 = arith.constant 1.000000e+00 : f32
    %203 = vector.broadcast %cst_106 : f32 to vector<2x32xf32>
    %204 = arith.addf %203, %202 : vector<2x32xf32>
    %205 = arith.divf %203, %204 : vector<2x32xf32>
    %206 = vector.extract_strided_slice %193 {offsets = [0, 64], sizes = [2, 32], strides = [1, 1]} : vector<2x128xf32> to vector<2x32xf32>
    %207 = math.tanh %206 : vector<2x32xf32>
    %208 = vector.extract_strided_slice %193 {offsets = [0, 96], sizes = [2, 32], strides = [1, 1]} : vector<2x128xf32> to vector<2x32xf32>
    %209 = arith.negf %208 : vector<2x32xf32>
    %210 = math.exp %209 : vector<2x32xf32>
    %cst_107 = arith.constant 1.000000e+00 : f32
    %211 = vector.broadcast %cst_107 : f32 to vector<2x32xf32>
    %212 = arith.addf %211, %210 : vector<2x32xf32>
    %213 = arith.divf %211, %212 : vector<2x32xf32>
    %214 = arith.mulf %205, %189 : vector<2x32xf32>
    %215 = arith.mulf %199, %207 : vector<2x32xf32>
    %216 = arith.addf %214, %215 : vector<2x32xf32>
    %217 = math.tanh %216 : vector<2x32xf32>
    %218 = arith.mulf %213, %217 : vector<2x32xf32>
    %c1_108 = arith.constant 1 : index
    %c0_109 = arith.constant 0 : index
    %c0_110 = arith.constant 0 : index
    %219 = vector.load %arg11[%c1_108, %c0_109, %c0_110] : memref<2x2x32xf32, #tpu.memory_space<vmem>>, vector<1x2x32xf32>
    %220 = vector.shape_cast %219 : vector<1x2x32xf32> to vector<2x32xf32>
    %221 = vector.shape_cast %218 : vector<2x32xf32> to vector<1x2x32xf32>
    tpu.vector_store %arg11[%c1_108, %c0_109, %c0_110], %221 {strides = array<i32>} : memref<2x2x32xf32, #tpu.memory_space<vmem>>, vector<1x2x32xf32>,
    %c1_111 = arith.constant 1 : index
    %c0_112 = arith.constant 0 : index
    %c0_113 = arith.constant 0 : index
    %222 = vector.load %arg12[%c1_111, %c0_112, %c0_113] : memref<2x2x32xf32, #tpu.memory_space<vmem>>, vector<1x2x32xf32>
    %223 = vector.shape_cast %222 : vector<1x2x32xf32> to vector<2x32xf32>
    %224 = vector.shape_cast %216 : vector<2x32xf32> to vector<1x2x32xf32>
    tpu.vector_store %arg12[%c1_111, %c0_112, %c0_113], %224 {strides = array<i32>} : memref<2x2x32xf32, #tpu.memory_space<vmem>>, vector<1x2x32xf32>,
    %c0_114 = arith.constant 0 : index
    %c0_115 = arith.constant 0 : index
    %225 = vector.load %arg14[%c0_114, %c0_115] : memref<2x256xf32, #tpu.memory_space<vmem>>, vector<2x32xf32>
    tpu.vector_store %arg14[%c0_114, %c0_115], %218 {strides = array<i32>} : memref<2x256xf32, #tpu.memory_space<vmem>>, vector<2x32xf32>,
    %c1_116 = arith.constant 1 : index
    %c0_117 = arith.constant 0 : index
    %c0_118 = arith.constant 0 : index
    %226 = vector.load %arg11[%c1_116, %c0_117, %c0_118] : memref<2x2x32xf32, #tpu.memory_space<vmem>>, vector<1x2x32xf32>
    %227 = vector.shape_cast %226 : vector<1x2x32xf32> to vector<2x32xf32>
    %c1_119 = arith.constant 1 : index
    %c0_120 = arith.constant 0 : index
    %c0_121 = arith.constant 0 : index
    %228 = vector.load %arg12[%c1_119, %c0_120, %c0_121] : memref<2x2x32xf32, #tpu.memory_space<vmem>>, vector<1x2x32xf32>
    %229 = vector.shape_cast %228 : vector<1x2x32xf32> to vector<2x32xf32>
    %230 = vector.extract_strided_slice %185 {offsets = [2, 0], sizes = [2, 128], strides = [1, 1]} : vector<8x128xf32> to vector<2x128xf32>
    %231 = arith.truncf %227 : vector<2x32xf32> to vector<2x32xbf16>
    %cst_122 = arith.constant dense<0.000000e+00> : vector<2x128xf32>
    %232 = tpu.matmul %231, %178, %cst_122 {dimension_numbers = #tpu.dot_dimension_numbers<[1], [0], [0], [1], [0, 0, 1, 1], [], []>} : vector<2x32xbf16>, vector<32x128xbf16>, vector<2x128xf32> -> vector<2x128xf32>
    %233 = arith.addf %230, %232 : vector<2x128xf32>
    %234 = vector.extract_strided_slice %233 {offsets = [0, 0], sizes = [2, 32], strides = [1, 1]} : vector<2x128xf32> to vector<2x32xf32>
    %235 = arith.negf %234 : vector<2x32xf32>
    %236 = math.exp %235 : vector<2x32xf32>
    %cst_123 = arith.constant 1.000000e+00 : f32
    %237 = vector.broadcast %cst_123 : f32 to vector<2x32xf32>
    %238 = arith.addf %237, %236 : vector<2x32xf32>
    %239 = arith.divf %237, %238 : vector<2x32xf32>
    %240 = vector.extract_strided_slice %233 {offsets = [0, 32], sizes = [2, 32], strides = [1, 1]} : vector<2x128xf32> to vector<2x32xf32>
    %241 = arith.negf %240 : vector<2x32xf32>
    %242 = math.exp %241 : vector<2x32xf32>
    %cst_124 = arith.constant 1.000000e+00 : f32
    %243 = vector.broadcast %cst_124 : f32 to vector<2x32xf32>
    %244 = arith.addf %243, %242 : vector<2x32xf32>
    %245 = arith.divf %243, %244 : vector<2x32xf32>
    %246 = vector.extract_strided_slice %233 {offsets = [0, 64], sizes = [2, 32], strides = [1, 1]} : vector<2x128xf32> to vector<2x32xf32>
    %247 = math.tanh %246 : vector<2x32xf32>
    %248 = vector.extract_strided_slice %233 {offsets = [0, 96], sizes = [2, 32], strides = [1, 1]} : vector<2x128xf32> to vector<2x32xf32>
    %249 = arith.negf %248 : vector<2x32xf32>
    %250 = math.exp %249 : vector<2x32xf32>
    %cst_125 = arith.constant 1.000000e+00 : f32
    %251 = vector.broadcast %cst_125 : f32 to vector<2x32xf32>
    %252 = arith.addf %251, %250 : vector<2x32xf32>
    %253 = arith.divf %251, %252 : vector<2x32xf32>
    %254 = arith.mulf %245, %229 : vector<2x32xf32>
    %255 = arith.mulf %239, %247 : vector<2x32xf32>
    %256 = arith.addf %254, %255 : vector<2x32xf32>
    %257 = math.tanh %256 : vector<2x32xf32>
    %258 = arith.mulf %253, %257 : vector<2x32xf32>
    %c1_126 = arith.constant 1 : index
    %c0_127 = arith.constant 0 : index
    %c0_128 = arith.constant 0 : index
    %259 = vector.load %arg11[%c1_126, %c0_127, %c0_128] : memref<2x2x32xf32, #tpu.memory_space<vmem>>, vector<1x2x32xf32>
    %260 = vector.shape_cast %259 : vector<1x2x32xf32> to vector<2x32xf32>
    %261 = vector.shape_cast %258 : vector<2x32xf32> to vector<1x2x32xf32>
    tpu.vector_store %arg11[%c1_126, %c0_127, %c0_128], %261 {strides = array<i32>} : memref<2x2x32xf32, #tpu.memory_space<vmem>>, vector<1x2x32xf32>,
    %c1_129 = arith.constant 1 : index
    %c0_130 = arith.constant 0 : index
    %c0_131 = arith.constant 0 : index
    %262 = vector.load %arg12[%c1_129, %c0_130, %c0_131] : memref<2x2x32xf32, #tpu.memory_space<vmem>>, vector<1x2x32xf32>
    %263 = vector.shape_cast %262 : vector<1x2x32xf32> to vector<2x32xf32>
    %264 = vector.shape_cast %256 : vector<2x32xf32> to vector<1x2x32xf32>
    tpu.vector_store %arg12[%c1_129, %c0_130, %c0_131], %264 {strides = array<i32>} : memref<2x2x32xf32, #tpu.memory_space<vmem>>, vector<1x2x32xf32>,
    %c0_132 = arith.constant 0 : index
    %c32 = arith.constant 32 : index
    %265 = vector.load %arg14[%c0_132, %c32] : memref<2x256xf32, #tpu.memory_space<vmem>>, vector<2x32xf32>
    tpu.vector_store %arg14[%c0_132, %c32], %258 {strides = array<i32>} : memref<2x256xf32, #tpu.memory_space<vmem>>, vector<2x32xf32>,
    %c1_133 = arith.constant 1 : index
    %c0_134 = arith.constant 0 : index
    %c0_135 = arith.constant 0 : index
    %266 = vector.load %arg11[%c1_133, %c0_134, %c0_135] : memref<2x2x32xf32, #tpu.memory_space<vmem>>, vector<1x2x32xf32>
    %267 = vector.shape_cast %266 : vector<1x2x32xf32> to vector<2x32xf32>
    %c1_136 = arith.constant 1 : index
    %c0_137 = arith.constant 0 : index
    %c0_138 = arith.constant 0 : index
    %268 = vector.load %arg12[%c1_136, %c0_137, %c0_138] : memref<2x2x32xf32, #tpu.memory_space<vmem>>, vector<1x2x32xf32>
    %269 = vector.shape_cast %268 : vector<1x2x32xf32> to vector<2x32xf32>
    %270 = vector.extract_strided_slice %185 {offsets = [4, 0], sizes = [2, 128], strides = [1, 1]} : vector<8x128xf32> to vector<2x128xf32>
    %271 = arith.truncf %267 : vector<2x32xf32> to vector<2x32xbf16>
    %cst_139 = arith.constant dense<0.000000e+00> : vector<2x128xf32>
    %272 = tpu.matmul %271, %178, %cst_139 {dimension_numbers = #tpu.dot_dimension_numbers<[1], [0], [0], [1], [0, 0, 1, 1], [], []>} : vector<2x32xbf16>, vector<32x128xbf16>, vector<2x128xf32> -> vector<2x128xf32>
    %273 = arith.addf %270, %272 : vector<2x128xf32>
    %274 = vector.extract_strided_slice %273 {offsets = [0, 0], sizes = [2, 32], strides = [1, 1]} : vector<2x128xf32> to vector<2x32xf32>
    %275 = arith.negf %274 : vector<2x32xf32>
    %276 = math.exp %275 : vector<2x32xf32>
    %cst_140 = arith.constant 1.000000e+00 : f32
    %277 = vector.broadcast %cst_140 : f32 to vector<2x32xf32>
    %278 = arith.addf %277, %276 : vector<2x32xf32>
    %279 = arith.divf %277, %278 : vector<2x32xf32>
    %280 = vector.extract_strided_slice %273 {offsets = [0, 32], sizes = [2, 32], strides = [1, 1]} : vector<2x128xf32> to vector<2x32xf32>
    %281 = arith.negf %280 : vector<2x32xf32>
    %282 = math.exp %281 : vector<2x32xf32>
    %cst_141 = arith.constant 1.000000e+00 : f32
    %283 = vector.broadcast %cst_141 : f32 to vector<2x32xf32>
    %284 = arith.addf %283, %282 : vector<2x32xf32>
    %285 = arith.divf %283, %284 : vector<2x32xf32>
    %286 = vector.extract_strided_slice %273 {offsets = [0, 64], sizes = [2, 32], strides = [1, 1]} : vector<2x128xf32> to vector<2x32xf32>
    %287 = math.tanh %286 : vector<2x32xf32>
    %288 = vector.extract_strided_slice %273 {offsets = [0, 96], sizes = [2, 32], strides = [1, 1]} : vector<2x128xf32> to vector<2x32xf32>
    %289 = arith.negf %288 : vector<2x32xf32>
    %290 = math.exp %289 : vector<2x32xf32>
    %cst_142 = arith.constant 1.000000e+00 : f32
    %291 = vector.broadcast %cst_142 : f32 to vector<2x32xf32>
    %292 = arith.addf %291, %290 : vector<2x32xf32>
    %293 = arith.divf %291, %292 : vector<2x32xf32>
    %294 = arith.mulf %285, %269 : vector<2x32xf32>
    %295 = arith.mulf %279, %287 : vector<2x32xf32>
    %296 = arith.addf %294, %295 : vector<2x32xf32>
    %297 = math.tanh %296 : vector<2x32xf32>
    %298 = arith.mulf %293, %297 : vector<2x32xf32>
    %c1_143 = arith.constant 1 : index
    %c0_144 = arith.constant 0 : index
    %c0_145 = arith.constant 0 : index
    %299 = vector.load %arg11[%c1_143, %c0_144, %c0_145] : memref<2x2x32xf32, #tpu.memory_space<vmem>>, vector<1x2x32xf32>
    %300 = vector.shape_cast %299 : vector<1x2x32xf32> to vector<2x32xf32>
    %301 = vector.shape_cast %298 : vector<2x32xf32> to vector<1x2x32xf32>
    tpu.vector_store %arg11[%c1_143, %c0_144, %c0_145], %301 {strides = array<i32>} : memref<2x2x32xf32, #tpu.memory_space<vmem>>, vector<1x2x32xf32>,
    %c1_146 = arith.constant 1 : index
    %c0_147 = arith.constant 0 : index
    %c0_148 = arith.constant 0 : index
    %302 = vector.load %arg12[%c1_146, %c0_147, %c0_148] : memref<2x2x32xf32, #tpu.memory_space<vmem>>, vector<1x2x32xf32>
    %303 = vector.shape_cast %302 : vector<1x2x32xf32> to vector<2x32xf32>
    %304 = vector.shape_cast %296 : vector<2x32xf32> to vector<1x2x32xf32>
    tpu.vector_store %arg12[%c1_146, %c0_147, %c0_148], %304 {strides = array<i32>} : memref<2x2x32xf32, #tpu.memory_space<vmem>>, vector<1x2x32xf32>,
    %c0_149 = arith.constant 0 : index
    %c64 = arith.constant 64 : index
    %305 = vector.load %arg14[%c0_149, %c64] : memref<2x256xf32, #tpu.memory_space<vmem>>, vector<2x32xf32>
    tpu.vector_store %arg14[%c0_149, %c64], %298 {strides = array<i32>} : memref<2x256xf32, #tpu.memory_space<vmem>>, vector<2x32xf32>,
    %c1_150 = arith.constant 1 : index
    %c0_151 = arith.constant 0 : index
    %c0_152 = arith.constant 0 : index
    %306 = vector.load %arg11[%c1_150, %c0_151, %c0_152] : memref<2x2x32xf32, #tpu.memory_space<vmem>>, vector<1x2x32xf32>
    %307 = vector.shape_cast %306 : vector<1x2x32xf32> to vector<2x32xf32>
    %c1_153 = arith.constant 1 : index
    %c0_154 = arith.constant 0 : index
    %c0_155 = arith.constant 0 : index
    %308 = vector.load %arg12[%c1_153, %c0_154, %c0_155] : memref<2x2x32xf32, #tpu.memory_space<vmem>>, vector<1x2x32xf32>
    %309 = vector.shape_cast %308 : vector<1x2x32xf32> to vector<2x32xf32>
    %310 = vector.extract_strided_slice %185 {offsets = [6, 0], sizes = [2, 128], strides = [1, 1]} : vector<8x128xf32> to vector<2x128xf32>
    %311 = arith.truncf %307 : vector<2x32xf32> to vector<2x32xbf16>
    %cst_156 = arith.constant dense<0.000000e+00> : vector<2x128xf32>
    %312 = tpu.matmul %311, %178, %cst_156 {dimension_numbers = #tpu.dot_dimension_numbers<[1], [0], [0], [1], [0, 0, 1, 1], [], []>} : vector<2x32xbf16>, vector<32x128xbf16>, vector<2x128xf32> -> vector<2x128xf32>
    %313 = arith.addf %310, %312 : vector<2x128xf32>
    %314 = vector.extract_strided_slice %313 {offsets = [0, 0], sizes = [2, 32], strides = [1, 1]} : vector<2x128xf32> to vector<2x32xf32>
    %315 = arith.negf %314 : vector<2x32xf32>
    %316 = math.exp %315 : vector<2x32xf32>
    %cst_157 = arith.constant 1.000000e+00 : f32
    %317 = vector.broadcast %cst_157 : f32 to vector<2x32xf32>
    %318 = arith.addf %317, %316 : vector<2x32xf32>
    %319 = arith.divf %317, %318 : vector<2x32xf32>
    %320 = vector.extract_strided_slice %313 {offsets = [0, 32], sizes = [2, 32], strides = [1, 1]} : vector<2x128xf32> to vector<2x32xf32>
    %321 = arith.negf %320 : vector<2x32xf32>
    %322 = math.exp %321 : vector<2x32xf32>
    %cst_158 = arith.constant 1.000000e+00 : f32
    %323 = vector.broadcast %cst_158 : f32 to vector<2x32xf32>
    %324 = arith.addf %323, %322 : vector<2x32xf32>
    %325 = arith.divf %323, %324 : vector<2x32xf32>
    %326 = vector.extract_strided_slice %313 {offsets = [0, 64], sizes = [2, 32], strides = [1, 1]} : vector<2x128xf32> to vector<2x32xf32>
    %327 = math.tanh %326 : vector<2x32xf32>
    %328 = vector.extract_strided_slice %313 {offsets = [0, 96], sizes = [2, 32], strides = [1, 1]} : vector<2x128xf32> to vector<2x32xf32>
    %329 = arith.negf %328 : vector<2x32xf32>
    %330 = math.exp %329 : vector<2x32xf32>
    %cst_159 = arith.constant 1.000000e+00 : f32
    %331 = vector.broadcast %cst_159 : f32 to vector<2x32xf32>
    %332 = arith.addf %331, %330 : vector<2x32xf32>
    %333 = arith.divf %331, %332 : vector<2x32xf32>
    %334 = arith.mulf %325, %309 : vector<2x32xf32>
    %335 = arith.mulf %319, %327 : vector<2x32xf32>
    %336 = arith.addf %334, %335 : vector<2x32xf32>
    %337 = math.tanh %336 : vector<2x32xf32>
    %338 = arith.mulf %333, %337 : vector<2x32xf32>
    %c1_160 = arith.constant 1 : index
    %c0_161 = arith.constant 0 : index
    %c0_162 = arith.constant 0 : index
    %339 = vector.load %arg11[%c1_160, %c0_161, %c0_162] : memref<2x2x32xf32, #tpu.memory_space<vmem>>, vector<1x2x32xf32>
    %340 = vector.shape_cast %339 : vector<1x2x32xf32> to vector<2x32xf32>
    %341 = vector.shape_cast %338 : vector<2x32xf32> to vector<1x2x32xf32>
    tpu.vector_store %arg11[%c1_160, %c0_161, %c0_162], %341 {strides = array<i32>} : memref<2x2x32xf32, #tpu.memory_space<vmem>>, vector<1x2x32xf32>,
    %c1_163 = arith.constant 1 : index
    %c0_164 = arith.constant 0 : index
    %c0_165 = arith.constant 0 : index
    %342 = vector.load %arg12[%c1_163, %c0_164, %c0_165] : memref<2x2x32xf32, #tpu.memory_space<vmem>>, vector<1x2x32xf32>
    %343 = vector.shape_cast %342 : vector<1x2x32xf32> to vector<2x32xf32>
    %344 = vector.shape_cast %336 : vector<2x32xf32> to vector<1x2x32xf32>
    tpu.vector_store %arg12[%c1_163, %c0_164, %c0_165], %344 {strides = array<i32>} : memref<2x2x32xf32, #tpu.memory_space<vmem>>, vector<1x2x32xf32>,
    %c0_166 = arith.constant 0 : index
    %c96 = arith.constant 96 : index
    %345 = vector.load %arg14[%c0_166, %c96] : memref<2x256xf32, #tpu.memory_space<vmem>>, vector<2x32xf32>
    tpu.vector_store %arg14[%c0_166, %c96], %338 {strides = array<i32>} : memref<2x256xf32, #tpu.memory_space<vmem>>, vector<2x32xf32>,
    %c0_167 = arith.constant 0 : index
    %c0_168 = arith.constant 0 : index
    %c0_169 = arith.constant 0 : index
    %346 = vector.load %arg5[%c0_167, %c0_168, %c0_169] : memref<2x32x128xbf16, #tpu.memory_space<vmem>>, vector<1x32x128xbf16>
    %347 = vector.shape_cast %346 : vector<1x32x128xbf16> to vector<32x128xbf16>
    %c0_170 = arith.constant 0 : index
    %c0_171 = arith.constant 0 : index
    %c0_172 = arith.constant 0 : index
    %348 = vector.load %arg6[%c0_170, %c0_171, %c0_172] : memref<2x32x128xbf16, #tpu.memory_space<vmem>>, vector<1x32x128xbf16>
    %349 = vector.shape_cast %348 : vector<1x32x128xbf16> to vector<32x128xbf16>
    %c0_173 = arith.constant 0 : index
    %c0_174 = arith.constant 0 : index
    %c0_175 = arith.constant 0 : index
    %350 = vector.load %arg7[%c0_173, %c0_174, %c0_175] : memref<2x1x128xf32, #tpu.memory_space<vmem>>, vector<1x1x128xf32>
    %351 = vector.shape_cast %350 : vector<1x1x128xf32> to vector<1x128xf32>
    %c0_176 = arith.constant 0 : index
    %c0_177 = arith.constant 0 : index
    %352 = vector.load %arg1[%c0_176, %c0_177] : memref<8x32xf32, #tpu.memory_space<vmem>>, vector<8x32xf32>
    %353 = arith.truncf %352 : vector<8x32xf32> to vector<8x32xbf16>
    %cst_178 = arith.constant dense<0.000000e+00> : vector<8x128xf32>
    %354 = tpu.matmul %353, %347, %cst_178 {dimension_numbers = #tpu.dot_dimension_numbers<[1], [0], [0], [1], [0, 0, 1, 1], [], []>} : vector<8x32xbf16>, vector<32x128xbf16>, vector<8x128xf32> -> vector<8x128xf32>
    %355 = vector.broadcast %351 : vector<1x128xf32> to vector<8x128xf32>
    %356 = arith.addf %354, %355 : vector<8x128xf32>
    %c0_179 = arith.constant 0 : index
    %c0_180 = arith.constant 0 : index
    %c0_181 = arith.constant 0 : index
    %357 = vector.load %arg11[%c0_179, %c0_180, %c0_181] : memref<2x2x32xf32, #tpu.memory_space<vmem>>, vector<1x2x32xf32>
    %358 = vector.shape_cast %357 : vector<1x2x32xf32> to vector<2x32xf32>
    %c0_182 = arith.constant 0 : index
    %c0_183 = arith.constant 0 : index
    %c0_184 = arith.constant 0 : index
    %359 = vector.load %arg12[%c0_182, %c0_183, %c0_184] : memref<2x2x32xf32, #tpu.memory_space<vmem>>, vector<1x2x32xf32>
    %360 = vector.shape_cast %359 : vector<1x2x32xf32> to vector<2x32xf32>
    %361 = vector.extract_strided_slice %356 {offsets = [0, 0], sizes = [2, 128], strides = [1, 1]} : vector<8x128xf32> to vector<2x128xf32>
    %362 = arith.truncf %358 : vector<2x32xf32> to vector<2x32xbf16>
    %cst_185 = arith.constant dense<0.000000e+00> : vector<2x128xf32>
    %363 = tpu.matmul %362, %349, %cst_185 {dimension_numbers = #tpu.dot_dimension_numbers<[1], [0], [0], [1], [0, 0, 1, 1], [], []>} : vector<2x32xbf16>, vector<32x128xbf16>, vector<2x128xf32> -> vector<2x128xf32>
    %364 = arith.addf %361, %363 : vector<2x128xf32>
    %365 = vector.extract_strided_slice %364 {offsets = [0, 0], sizes = [2, 32], strides = [1, 1]} : vector<2x128xf32> to vector<2x32xf32>
    %366 = arith.negf %365 : vector<2x32xf32>
    %367 = math.exp %366 : vector<2x32xf32>
    %cst_186 = arith.constant 1.000000e+00 : f32
    %368 = vector.broadcast %cst_186 : f32 to vector<2x32xf32>
    %369 = arith.addf %368, %367 : vector<2x32xf32>
    %370 = arith.divf %368, %369 : vector<2x32xf32>
    %371 = vector.extract_strided_slice %364 {offsets = [0, 32], sizes = [2, 32], strides = [1, 1]} : vector<2x128xf32> to vector<2x32xf32>
    %372 = arith.negf %371 : vector<2x32xf32>
    %373 = math.exp %372 : vector<2x32xf32>
    %cst_187 = arith.constant 1.000000e+00 : f32
    %374 = vector.broadcast %cst_187 : f32 to vector<2x32xf32>
    %375 = arith.addf %374, %373 : vector<2x32xf32>
    %376 = arith.divf %374, %375 : vector<2x32xf32>
    %377 = vector.extract_strided_slice %364 {offsets = [0, 64], sizes = [2, 32], strides = [1, 1]} : vector<2x128xf32> to vector<2x32xf32>
    %378 = math.tanh %377 : vector<2x32xf32>
    %379 = vector.extract_strided_slice %364 {offsets = [0, 96], sizes = [2, 32], strides = [1, 1]} : vector<2x128xf32> to vector<2x32xf32>
    %380 = arith.negf %379 : vector<2x32xf32>
    %381 = math.exp %380 : vector<2x32xf32>
    %cst_188 = arith.constant 1.000000e+00 : f32
    %382 = vector.broadcast %cst_188 : f32 to vector<2x32xf32>
    %383 = arith.addf %382, %381 : vector<2x32xf32>
    %384 = arith.divf %382, %383 : vector<2x32xf32>
    %385 = arith.mulf %376, %360 : vector<2x32xf32>
    %386 = arith.mulf %370, %378 : vector<2x32xf32>
    %387 = arith.addf %385, %386 : vector<2x32xf32>
    %388 = math.tanh %387 : vector<2x32xf32>
    %389 = arith.mulf %384, %388 : vector<2x32xf32>
    %c0_189 = arith.constant 0 : index
    %c0_190 = arith.constant 0 : index
    %c0_191 = arith.constant 0 : index
    %390 = vector.load %arg11[%c0_189, %c0_190, %c0_191] : memref<2x2x32xf32, #tpu.memory_space<vmem>>, vector<1x2x32xf32>
    %391 = vector.shape_cast %390 : vector<1x2x32xf32> to vector<2x32xf32>
    %392 = vector.shape_cast %389 : vector<2x32xf32> to vector<1x2x32xf32>
    tpu.vector_store %arg11[%c0_189, %c0_190, %c0_191], %392 {strides = array<i32>} : memref<2x2x32xf32, #tpu.memory_space<vmem>>, vector<1x2x32xf32>,
    %c0_192 = arith.constant 0 : index
    %c0_193 = arith.constant 0 : index
    %c0_194 = arith.constant 0 : index
    %393 = vector.load %arg12[%c0_192, %c0_193, %c0_194] : memref<2x2x32xf32, #tpu.memory_space<vmem>>, vector<1x2x32xf32>
    %394 = vector.shape_cast %393 : vector<1x2x32xf32> to vector<2x32xf32>
    %395 = vector.shape_cast %387 : vector<2x32xf32> to vector<1x2x32xf32>
    tpu.vector_store %arg12[%c0_192, %c0_193, %c0_194], %395 {strides = array<i32>} : memref<2x2x32xf32, #tpu.memory_space<vmem>>, vector<1x2x32xf32>,
    %c0_195 = arith.constant 0 : index
    %c0_196 = arith.constant 0 : index
    %396 = vector.load %arg13[%c0_195, %c0_196] : memref<8x32xf32, #tpu.memory_space<vmem>>, vector<2x32xf32>
    tpu.vector_store %arg13[%c0_195, %c0_196], %389 {strides = array<i32>} : memref<8x32xf32, #tpu.memory_space<vmem>>, vector<2x32xf32>,
    %c0_197 = arith.constant 0 : index
    %c0_198 = arith.constant 0 : index
    %c0_199 = arith.constant 0 : index
    %397 = vector.load %arg11[%c0_197, %c0_198, %c0_199] : memref<2x2x32xf32, #tpu.memory_space<vmem>>, vector<1x2x32xf32>
    %398 = vector.shape_cast %397 : vector<1x2x32xf32> to vector<2x32xf32>
    %c0_200 = arith.constant 0 : index
    %c0_201 = arith.constant 0 : index
    %c0_202 = arith.constant 0 : index
    %399 = vector.load %arg12[%c0_200, %c0_201, %c0_202] : memref<2x2x32xf32, #tpu.memory_space<vmem>>, vector<1x2x32xf32>
    %400 = vector.shape_cast %399 : vector<1x2x32xf32> to vector<2x32xf32>
    %401 = vector.extract_strided_slice %356 {offsets = [2, 0], sizes = [2, 128], strides = [1, 1]} : vector<8x128xf32> to vector<2x128xf32>
    %402 = arith.truncf %398 : vector<2x32xf32> to vector<2x32xbf16>
    %cst_203 = arith.constant dense<0.000000e+00> : vector<2x128xf32>
    %403 = tpu.matmul %402, %349, %cst_203 {dimension_numbers = #tpu.dot_dimension_numbers<[1], [0], [0], [1], [0, 0, 1, 1], [], []>} : vector<2x32xbf16>, vector<32x128xbf16>, vector<2x128xf32> -> vector<2x128xf32>
    %404 = arith.addf %401, %403 : vector<2x128xf32>
    %405 = vector.extract_strided_slice %404 {offsets = [0, 0], sizes = [2, 32], strides = [1, 1]} : vector<2x128xf32> to vector<2x32xf32>
    %406 = arith.negf %405 : vector<2x32xf32>
    %407 = math.exp %406 : vector<2x32xf32>
    %cst_204 = arith.constant 1.000000e+00 : f32
    %408 = vector.broadcast %cst_204 : f32 to vector<2x32xf32>
    %409 = arith.addf %408, %407 : vector<2x32xf32>
    %410 = arith.divf %408, %409 : vector<2x32xf32>
    %411 = vector.extract_strided_slice %404 {offsets = [0, 32], sizes = [2, 32], strides = [1, 1]} : vector<2x128xf32> to vector<2x32xf32>
    %412 = arith.negf %411 : vector<2x32xf32>
    %413 = math.exp %412 : vector<2x32xf32>
    %cst_205 = arith.constant 1.000000e+00 : f32
    %414 = vector.broadcast %cst_205 : f32 to vector<2x32xf32>
    %415 = arith.addf %414, %413 : vector<2x32xf32>
    %416 = arith.divf %414, %415 : vector<2x32xf32>
    %417 = vector.extract_strided_slice %404 {offsets = [0, 64], sizes = [2, 32], strides = [1, 1]} : vector<2x128xf32> to vector<2x32xf32>
    %418 = math.tanh %417 : vector<2x32xf32>
    %419 = vector.extract_strided_slice %404 {offsets = [0, 96], sizes = [2, 32], strides = [1, 1]} : vector<2x128xf32> to vector<2x32xf32>
    %420 = arith.negf %419 : vector<2x32xf32>
    %421 = math.exp %420 : vector<2x32xf32>
    %cst_206 = arith.constant 1.000000e+00 : f32
    %422 = vector.broadcast %cst_206 : f32 to vector<2x32xf32>
    %423 = arith.addf %422, %421 : vector<2x32xf32>
    %424 = arith.divf %422, %423 : vector<2x32xf32>
    %425 = arith.mulf %416, %400 : vector<2x32xf32>
    %426 = arith.mulf %410, %418 : vector<2x32xf32>
    %427 = arith.addf %425, %426 : vector<2x32xf32>
    %428 = math.tanh %427 : vector<2x32xf32>
    %429 = arith.mulf %424, %428 : vector<2x32xf32>
    %c0_207 = arith.constant 0 : index
    %c0_208 = arith.constant 0 : index
    %c0_209 = arith.constant 0 : index
    %430 = vector.load %arg11[%c0_207, %c0_208, %c0_209] : memref<2x2x32xf32, #tpu.memory_space<vmem>>, vector<1x2x32xf32>
    %431 = vector.shape_cast %430 : vector<1x2x32xf32> to vector<2x32xf32>
    %432 = vector.shape_cast %429 : vector<2x32xf32> to vector<1x2x32xf32>
    tpu.vector_store %arg11[%c0_207, %c0_208, %c0_209], %432 {strides = array<i32>} : memref<2x2x32xf32, #tpu.memory_space<vmem>>, vector<1x2x32xf32>,
    %c0_210 = arith.constant 0 : index
    %c0_211 = arith.constant 0 : index
    %c0_212 = arith.constant 0 : index
    %433 = vector.load %arg12[%c0_210, %c0_211, %c0_212] : memref<2x2x32xf32, #tpu.memory_space<vmem>>, vector<1x2x32xf32>
    %434 = vector.shape_cast %433 : vector<1x2x32xf32> to vector<2x32xf32>
    %435 = vector.shape_cast %427 : vector<2x32xf32> to vector<1x2x32xf32>
    tpu.vector_store %arg12[%c0_210, %c0_211, %c0_212], %435 {strides = array<i32>} : memref<2x2x32xf32, #tpu.memory_space<vmem>>, vector<1x2x32xf32>,
    %c2_213 = arith.constant 2 : index
    %c0_214 = arith.constant 0 : index
    %436 = vector.load %arg13[%c2_213, %c0_214] : memref<8x32xf32, #tpu.memory_space<vmem>>, vector<2x32xf32>
    tpu.vector_store %arg13[%c2_213, %c0_214], %429 {strides = array<i32>} : memref<8x32xf32, #tpu.memory_space<vmem>>, vector<2x32xf32>,
    %c0_215 = arith.constant 0 : index
    %c0_216 = arith.constant 0 : index
    %c0_217 = arith.constant 0 : index
    %437 = vector.load %arg11[%c0_215, %c0_216, %c0_217] : memref<2x2x32xf32, #tpu.memory_space<vmem>>, vector<1x2x32xf32>
    %438 = vector.shape_cast %437 : vector<1x2x32xf32> to vector<2x32xf32>
    %c0_218 = arith.constant 0 : index
    %c0_219 = arith.constant 0 : index
    %c0_220 = arith.constant 0 : index
    %439 = vector.load %arg12[%c0_218, %c0_219, %c0_220] : memref<2x2x32xf32, #tpu.memory_space<vmem>>, vector<1x2x32xf32>
    %440 = vector.shape_cast %439 : vector<1x2x32xf32> to vector<2x32xf32>
    %441 = vector.extract_strided_slice %356 {offsets = [4, 0], sizes = [2, 128], strides = [1, 1]} : vector<8x128xf32> to vector<2x128xf32>
    %442 = arith.truncf %438 : vector<2x32xf32> to vector<2x32xbf16>
    %cst_221 = arith.constant dense<0.000000e+00> : vector<2x128xf32>
    %443 = tpu.matmul %442, %349, %cst_221 {dimension_numbers = #tpu.dot_dimension_numbers<[1], [0], [0], [1], [0, 0, 1, 1], [], []>} : vector<2x32xbf16>, vector<32x128xbf16>, vector<2x128xf32> -> vector<2x128xf32>
    %444 = arith.addf %441, %443 : vector<2x128xf32>
    %445 = vector.extract_strided_slice %444 {offsets = [0, 0], sizes = [2, 32], strides = [1, 1]} : vector<2x128xf32> to vector<2x32xf32>
    %446 = arith.negf %445 : vector<2x32xf32>
    %447 = math.exp %446 : vector<2x32xf32>
    %cst_222 = arith.constant 1.000000e+00 : f32
    %448 = vector.broadcast %cst_222 : f32 to vector<2x32xf32>
    %449 = arith.addf %448, %447 : vector<2x32xf32>
    %450 = arith.divf %448, %449 : vector<2x32xf32>
    %451 = vector.extract_strided_slice %444 {offsets = [0, 32], sizes = [2, 32], strides = [1, 1]} : vector<2x128xf32> to vector<2x32xf32>
    %452 = arith.negf %451 : vector<2x32xf32>
    %453 = math.exp %452 : vector<2x32xf32>
    %cst_223 = arith.constant 1.000000e+00 : f32
    %454 = vector.broadcast %cst_223 : f32 to vector<2x32xf32>
    %455 = arith.addf %454, %453 : vector<2x32xf32>
    %456 = arith.divf %454, %455 : vector<2x32xf32>
    %457 = vector.extract_strided_slice %444 {offsets = [0, 64], sizes = [2, 32], strides = [1, 1]} : vector<2x128xf32> to vector<2x32xf32>
    %458 = math.tanh %457 : vector<2x32xf32>
    %459 = vector.extract_strided_slice %444 {offsets = [0, 96], sizes = [2, 32], strides = [1, 1]} : vector<2x128xf32> to vector<2x32xf32>
    %460 = arith.negf %459 : vector<2x32xf32>
    %461 = math.exp %460 : vector<2x32xf32>
    %cst_224 = arith.constant 1.000000e+00 : f32
    %462 = vector.broadcast %cst_224 : f32 to vector<2x32xf32>
    %463 = arith.addf %462, %461 : vector<2x32xf32>
    %464 = arith.divf %462, %463 : vector<2x32xf32>
    %465 = arith.mulf %456, %440 : vector<2x32xf32>
    %466 = arith.mulf %450, %458 : vector<2x32xf32>
    %467 = arith.addf %465, %466 : vector<2x32xf32>
    %468 = math.tanh %467 : vector<2x32xf32>
    %469 = arith.mulf %464, %468 : vector<2x32xf32>
    %c0_225 = arith.constant 0 : index
    %c0_226 = arith.constant 0 : index
    %c0_227 = arith.constant 0 : index
    %470 = vector.load %arg11[%c0_225, %c0_226, %c0_227] : memref<2x2x32xf32, #tpu.memory_space<vmem>>, vector<1x2x32xf32>
    %471 = vector.shape_cast %470 : vector<1x2x32xf32> to vector<2x32xf32>
    %472 = vector.shape_cast %469 : vector<2x32xf32> to vector<1x2x32xf32>
    tpu.vector_store %arg11[%c0_225, %c0_226, %c0_227], %472 {strides = array<i32>} : memref<2x2x32xf32, #tpu.memory_space<vmem>>, vector<1x2x32xf32>,
    %c0_228 = arith.constant 0 : index
    %c0_229 = arith.constant 0 : index
    %c0_230 = arith.constant 0 : index
    %473 = vector.load %arg12[%c0_228, %c0_229, %c0_230] : memref<2x2x32xf32, #tpu.memory_space<vmem>>, vector<1x2x32xf32>
    %474 = vector.shape_cast %473 : vector<1x2x32xf32> to vector<2x32xf32>
    %475 = vector.shape_cast %467 : vector<2x32xf32> to vector<1x2x32xf32>
    tpu.vector_store %arg12[%c0_228, %c0_229, %c0_230], %475 {strides = array<i32>} : memref<2x2x32xf32, #tpu.memory_space<vmem>>, vector<1x2x32xf32>,
    %c4_231 = arith.constant 4 : index
    %c0_232 = arith.constant 0 : index
    %476 = vector.load %arg13[%c4_231, %c0_232] : memref<8x32xf32, #tpu.memory_space<vmem>>, vector<2x32xf32>
    tpu.vector_store %arg13[%c4_231, %c0_232], %469 {strides = array<i32>} : memref<8x32xf32, #tpu.memory_space<vmem>>, vector<2x32xf32>,
    %c0_233 = arith.constant 0 : index
    %c0_234 = arith.constant 0 : index
    %c0_235 = arith.constant 0 : index
    %477 = vector.load %arg11[%c0_233, %c0_234, %c0_235] : memref<2x2x32xf32, #tpu.memory_space<vmem>>, vector<1x2x32xf32>
    %478 = vector.shape_cast %477 : vector<1x2x32xf32> to vector<2x32xf32>
    %c0_236 = arith.constant 0 : index
    %c0_237 = arith.constant 0 : index
    %c0_238 = arith.constant 0 : index
    %479 = vector.load %arg12[%c0_236, %c0_237, %c0_238] : memref<2x2x32xf32, #tpu.memory_space<vmem>>, vector<1x2x32xf32>
    %480 = vector.shape_cast %479 : vector<1x2x32xf32> to vector<2x32xf32>
    %481 = vector.extract_strided_slice %356 {offsets = [6, 0], sizes = [2, 128], strides = [1, 1]} : vector<8x128xf32> to vector<2x128xf32>
    %482 = arith.truncf %478 : vector<2x32xf32> to vector<2x32xbf16>
    %cst_239 = arith.constant dense<0.000000e+00> : vector<2x128xf32>
    %483 = tpu.matmul %482, %349, %cst_239 {dimension_numbers = #tpu.dot_dimension_numbers<[1], [0], [0], [1], [0, 0, 1, 1], [], []>} : vector<2x32xbf16>, vector<32x128xbf16>, vector<2x128xf32> -> vector<2x128xf32>
    %484 = arith.addf %481, %483 : vector<2x128xf32>
    %485 = vector.extract_strided_slice %484 {offsets = [0, 0], sizes = [2, 32], strides = [1, 1]} : vector<2x128xf32> to vector<2x32xf32>
    %486 = arith.negf %485 : vector<2x32xf32>
    %487 = math.exp %486 : vector<2x32xf32>
    %cst_240 = arith.constant 1.000000e+00 : f32
    %488 = vector.broadcast %cst_240 : f32 to vector<2x32xf32>
    %489 = arith.addf %488, %487 : vector<2x32xf32>
    %490 = arith.divf %488, %489 : vector<2x32xf32>
    %491 = vector.extract_strided_slice %484 {offsets = [0, 32], sizes = [2, 32], strides = [1, 1]} : vector<2x128xf32> to vector<2x32xf32>
    %492 = arith.negf %491 : vector<2x32xf32>
    %493 = math.exp %492 : vector<2x32xf32>
    %cst_241 = arith.constant 1.000000e+00 : f32
    %494 = vector.broadcast %cst_241 : f32 to vector<2x32xf32>
    %495 = arith.addf %494, %493 : vector<2x32xf32>
    %496 = arith.divf %494, %495 : vector<2x32xf32>
    %497 = vector.extract_strided_slice %484 {offsets = [0, 64], sizes = [2, 32], strides = [1, 1]} : vector<2x128xf32> to vector<2x32xf32>
    %498 = math.tanh %497 : vector<2x32xf32>
    %499 = vector.extract_strided_slice %484 {offsets = [0, 96], sizes = [2, 32], strides = [1, 1]} : vector<2x128xf32> to vector<2x32xf32>
    %500 = arith.negf %499 : vector<2x32xf32>
    %501 = math.exp %500 : vector<2x32xf32>
    %cst_242 = arith.constant 1.000000e+00 : f32
    %502 = vector.broadcast %cst_242 : f32 to vector<2x32xf32>
    %503 = arith.addf %502, %501 : vector<2x32xf32>
    %504 = arith.divf %502, %503 : vector<2x32xf32>
    %505 = arith.mulf %496, %480 : vector<2x32xf32>
    %506 = arith.mulf %490, %498 : vector<2x32xf32>
    %507 = arith.addf %505, %506 : vector<2x32xf32>
    %508 = math.tanh %507 : vector<2x32xf32>
    %509 = arith.mulf %504, %508 : vector<2x32xf32>
    %c0_243 = arith.constant 0 : index
    %c0_244 = arith.constant 0 : index
    %c0_245 = arith.constant 0 : index
    %510 = vector.load %arg11[%c0_243, %c0_244, %c0_245] : memref<2x2x32xf32, #tpu.memory_space<vmem>>, vector<1x2x32xf32>
    %511 = vector.shape_cast %510 : vector<1x2x32xf32> to vector<2x32xf32>
    %512 = vector.shape_cast %509 : vector<2x32xf32> to vector<1x2x32xf32>
    tpu.vector_store %arg11[%c0_243, %c0_244, %c0_245], %512 {strides = array<i32>} : memref<2x2x32xf32, #tpu.memory_space<vmem>>, vector<1x2x32xf32>,
    %c0_246 = arith.constant 0 : index
    %c0_247 = arith.constant 0 : index
    %c0_248 = arith.constant 0 : index
    %513 = vector.load %arg12[%c0_246, %c0_247, %c0_248] : memref<2x2x32xf32, #tpu.memory_space<vmem>>, vector<1x2x32xf32>
    %514 = vector.shape_cast %513 : vector<1x2x32xf32> to vector<2x32xf32>
    %515 = vector.shape_cast %507 : vector<2x32xf32> to vector<1x2x32xf32>
    tpu.vector_store %arg12[%c0_246, %c0_247, %c0_248], %515 {strides = array<i32>} : memref<2x2x32xf32, #tpu.memory_space<vmem>>, vector<1x2x32xf32>,
    %c6_249 = arith.constant 6 : index
    %c0_250 = arith.constant 0 : index
    %516 = vector.load %arg13[%c6_249, %c0_250] : memref<8x32xf32, #tpu.memory_space<vmem>>, vector<2x32xf32>
    tpu.vector_store %arg13[%c6_249, %c0_250], %509 {strides = array<i32>} : memref<8x32xf32, #tpu.memory_space<vmem>>, vector<2x32xf32>,
    %c1_251 = arith.constant 1 : index
    %c0_252 = arith.constant 0 : index
    %c0_253 = arith.constant 0 : index
    %517 = vector.load %arg5[%c1_251, %c0_252, %c0_253] : memref<2x32x128xbf16, #tpu.memory_space<vmem>>, vector<1x32x128xbf16>
    %518 = vector.shape_cast %517 : vector<1x32x128xbf16> to vector<32x128xbf16>
    %c1_254 = arith.constant 1 : index
    %c0_255 = arith.constant 0 : index
    %c0_256 = arith.constant 0 : index
    %519 = vector.load %arg6[%c1_254, %c0_255, %c0_256] : memref<2x32x128xbf16, #tpu.memory_space<vmem>>, vector<1x32x128xbf16>
    %520 = vector.shape_cast %519 : vector<1x32x128xbf16> to vector<32x128xbf16>
    %c1_257 = arith.constant 1 : index
    %c0_258 = arith.constant 0 : index
    %c0_259 = arith.constant 0 : index
    %521 = vector.load %arg7[%c1_257, %c0_258, %c0_259] : memref<2x1x128xf32, #tpu.memory_space<vmem>>, vector<1x1x128xf32>
    %522 = vector.shape_cast %521 : vector<1x1x128xf32> to vector<1x128xf32>
    %c0_260 = arith.constant 0 : index
    %c0_261 = arith.constant 0 : index
    %523 = vector.load %arg13[%c0_260, %c0_261] : memref<8x32xf32, #tpu.memory_space<vmem>>, vector<8x32xf32>
    %524 = arith.truncf %523 : vector<8x32xf32> to vector<8x32xbf16>
    %cst_262 = arith.constant dense<0.000000e+00> : vector<8x128xf32>
    %525 = tpu.matmul %524, %518, %cst_262 {dimension_numbers = #tpu.dot_dimension_numbers<[1], [0], [0], [1], [0, 0, 1, 1], [], []>} : vector<8x32xbf16>, vector<32x128xbf16>, vector<8x128xf32> -> vector<8x128xf32>
    %526 = vector.broadcast %522 : vector<1x128xf32> to vector<8x128xf32>
    %527 = arith.addf %525, %526 : vector<8x128xf32>
    %c1_263 = arith.constant 1 : index
    %c0_264 = arith.constant 0 : index
    %c0_265 = arith.constant 0 : index
    %528 = vector.load %arg11[%c1_263, %c0_264, %c0_265] : memref<2x2x32xf32, #tpu.memory_space<vmem>>, vector<1x2x32xf32>
    %529 = vector.shape_cast %528 : vector<1x2x32xf32> to vector<2x32xf32>
    %c1_266 = arith.constant 1 : index
    %c0_267 = arith.constant 0 : index
    %c0_268 = arith.constant 0 : index
    %530 = vector.load %arg12[%c1_266, %c0_267, %c0_268] : memref<2x2x32xf32, #tpu.memory_space<vmem>>, vector<1x2x32xf32>
    %531 = vector.shape_cast %530 : vector<1x2x32xf32> to vector<2x32xf32>
    %532 = vector.extract_strided_slice %527 {offsets = [0, 0], sizes = [2, 128], strides = [1, 1]} : vector<8x128xf32> to vector<2x128xf32>
    %533 = arith.truncf %529 : vector<2x32xf32> to vector<2x32xbf16>
    %cst_269 = arith.constant dense<0.000000e+00> : vector<2x128xf32>
    %534 = tpu.matmul %533, %520, %cst_269 {dimension_numbers = #tpu.dot_dimension_numbers<[1], [0], [0], [1], [0, 0, 1, 1], [], []>} : vector<2x32xbf16>, vector<32x128xbf16>, vector<2x128xf32> -> vector<2x128xf32>
    %535 = arith.addf %532, %534 : vector<2x128xf32>
    %536 = vector.extract_strided_slice %535 {offsets = [0, 0], sizes = [2, 32], strides = [1, 1]} : vector<2x128xf32> to vector<2x32xf32>
    %537 = arith.negf %536 : vector<2x32xf32>
    %538 = math.exp %537 : vector<2x32xf32>
    %cst_270 = arith.constant 1.000000e+00 : f32
    %539 = vector.broadcast %cst_270 : f32 to vector<2x32xf32>
    %540 = arith.addf %539, %538 : vector<2x32xf32>
    %541 = arith.divf %539, %540 : vector<2x32xf32>
    %542 = vector.extract_strided_slice %535 {offsets = [0, 32], sizes = [2, 32], strides = [1, 1]} : vector<2x128xf32> to vector<2x32xf32>
    %543 = arith.negf %542 : vector<2x32xf32>
    %544 = math.exp %543 : vector<2x32xf32>
    %cst_271 = arith.constant 1.000000e+00 : f32
    %545 = vector.broadcast %cst_271 : f32 to vector<2x32xf32>
    %546 = arith.addf %545, %544 : vector<2x32xf32>
    %547 = arith.divf %545, %546 : vector<2x32xf32>
    %548 = vector.extract_strided_slice %535 {offsets = [0, 64], sizes = [2, 32], strides = [1, 1]} : vector<2x128xf32> to vector<2x32xf32>
    %549 = math.tanh %548 : vector<2x32xf32>
    %550 = vector.extract_strided_slice %535 {offsets = [0, 96], sizes = [2, 32], strides = [1, 1]} : vector<2x128xf32> to vector<2x32xf32>
    %551 = arith.negf %550 : vector<2x32xf32>
    %552 = math.exp %551 : vector<2x32xf32>
    %cst_272 = arith.constant 1.000000e+00 : f32
    %553 = vector.broadcast %cst_272 : f32 to vector<2x32xf32>
    %554 = arith.addf %553, %552 : vector<2x32xf32>
    %555 = arith.divf %553, %554 : vector<2x32xf32>
    %556 = arith.mulf %547, %531 : vector<2x32xf32>
    %557 = arith.mulf %541, %549 : vector<2x32xf32>
    %558 = arith.addf %556, %557 : vector<2x32xf32>
    %559 = math.tanh %558 : vector<2x32xf32>
    %560 = arith.mulf %555, %559 : vector<2x32xf32>
    %c1_273 = arith.constant 1 : index
    %c0_274 = arith.constant 0 : index
    %c0_275 = arith.constant 0 : index
    %561 = vector.load %arg11[%c1_273, %c0_274, %c0_275] : memref<2x2x32xf32, #tpu.memory_space<vmem>>, vector<1x2x32xf32>
    %562 = vector.shape_cast %561 : vector<1x2x32xf32> to vector<2x32xf32>
    %563 = vector.shape_cast %560 : vector<2x32xf32> to vector<1x2x32xf32>
    tpu.vector_store %arg11[%c1_273, %c0_274, %c0_275], %563 {strides = array<i32>} : memref<2x2x32xf32, #tpu.memory_space<vmem>>, vector<1x2x32xf32>,
    %c1_276 = arith.constant 1 : index
    %c0_277 = arith.constant 0 : index
    %c0_278 = arith.constant 0 : index
    %564 = vector.load %arg12[%c1_276, %c0_277, %c0_278] : memref<2x2x32xf32, #tpu.memory_space<vmem>>, vector<1x2x32xf32>
    %565 = vector.shape_cast %564 : vector<1x2x32xf32> to vector<2x32xf32>
    %566 = vector.shape_cast %558 : vector<2x32xf32> to vector<1x2x32xf32>
    tpu.vector_store %arg12[%c1_276, %c0_277, %c0_278], %566 {strides = array<i32>} : memref<2x2x32xf32, #tpu.memory_space<vmem>>, vector<1x2x32xf32>,
    %c0_279 = arith.constant 0 : index
    %c128 = arith.constant 128 : index
    %567 = vector.load %arg14[%c0_279, %c128] : memref<2x256xf32, #tpu.memory_space<vmem>>, vector<2x32xf32>
    tpu.vector_store %arg14[%c0_279, %c128], %560 {strides = array<i32>} : memref<2x256xf32, #tpu.memory_space<vmem>>, vector<2x32xf32>,
    %c1_280 = arith.constant 1 : index
    %c0_281 = arith.constant 0 : index
    %c0_282 = arith.constant 0 : index
    %568 = vector.load %arg11[%c1_280, %c0_281, %c0_282] : memref<2x2x32xf32, #tpu.memory_space<vmem>>, vector<1x2x32xf32>
    %569 = vector.shape_cast %568 : vector<1x2x32xf32> to vector<2x32xf32>
    %c1_283 = arith.constant 1 : index
    %c0_284 = arith.constant 0 : index
    %c0_285 = arith.constant 0 : index
    %570 = vector.load %arg12[%c1_283, %c0_284, %c0_285] : memref<2x2x32xf32, #tpu.memory_space<vmem>>, vector<1x2x32xf32>
    %571 = vector.shape_cast %570 : vector<1x2x32xf32> to vector<2x32xf32>
    %572 = vector.extract_strided_slice %527 {offsets = [2, 0], sizes = [2, 128], strides = [1, 1]} : vector<8x128xf32> to vector<2x128xf32>
    %573 = arith.truncf %569 : vector<2x32xf32> to vector<2x32xbf16>
    %cst_286 = arith.constant dense<0.000000e+00> : vector<2x128xf32>
    %574 = tpu.matmul %573, %520, %cst_286 {dimension_numbers = #tpu.dot_dimension_numbers<[1], [0], [0], [1], [0, 0, 1, 1], [], []>} : vector<2x32xbf16>, vector<32x128xbf16>, vector<2x128xf32> -> vector<2x128xf32>
    %575 = arith.addf %572, %574 : vector<2x128xf32>
    %576 = vector.extract_strided_slice %575 {offsets = [0, 0], sizes = [2, 32], strides = [1, 1]} : vector<2x128xf32> to vector<2x32xf32>
    %577 = arith.negf %576 : vector<2x32xf32>
    %578 = math.exp %577 : vector<2x32xf32>
    %cst_287 = arith.constant 1.000000e+00 : f32
    %579 = vector.broadcast %cst_287 : f32 to vector<2x32xf32>
    %580 = arith.addf %579, %578 : vector<2x32xf32>
    %581 = arith.divf %579, %580 : vector<2x32xf32>
    %582 = vector.extract_strided_slice %575 {offsets = [0, 32], sizes = [2, 32], strides = [1, 1]} : vector<2x128xf32> to vector<2x32xf32>
    %583 = arith.negf %582 : vector<2x32xf32>
    %584 = math.exp %583 : vector<2x32xf32>
    %cst_288 = arith.constant 1.000000e+00 : f32
    %585 = vector.broadcast %cst_288 : f32 to vector<2x32xf32>
    %586 = arith.addf %585, %584 : vector<2x32xf32>
    %587 = arith.divf %585, %586 : vector<2x32xf32>
    %588 = vector.extract_strided_slice %575 {offsets = [0, 64], sizes = [2, 32], strides = [1, 1]} : vector<2x128xf32> to vector<2x32xf32>
    %589 = math.tanh %588 : vector<2x32xf32>
    %590 = vector.extract_strided_slice %575 {offsets = [0, 96], sizes = [2, 32], strides = [1, 1]} : vector<2x128xf32> to vector<2x32xf32>
    %591 = arith.negf %590 : vector<2x32xf32>
    %592 = math.exp %591 : vector<2x32xf32>
    %cst_289 = arith.constant 1.000000e+00 : f32
    %593 = vector.broadcast %cst_289 : f32 to vector<2x32xf32>
    %594 = arith.addf %593, %592 : vector<2x32xf32>
    %595 = arith.divf %593, %594 : vector<2x32xf32>
    %596 = arith.mulf %587, %571 : vector<2x32xf32>
    %597 = arith.mulf %581, %589 : vector<2x32xf32>
    %598 = arith.addf %596, %597 : vector<2x32xf32>
    %599 = math.tanh %598 : vector<2x32xf32>
    %600 = arith.mulf %595, %599 : vector<2x32xf32>
    %c1_290 = arith.constant 1 : index
    %c0_291 = arith.constant 0 : index
    %c0_292 = arith.constant 0 : index
    %601 = vector.load %arg11[%c1_290, %c0_291, %c0_292] : memref<2x2x32xf32, #tpu.memory_space<vmem>>, vector<1x2x32xf32>
    %602 = vector.shape_cast %601 : vector<1x2x32xf32> to vector<2x32xf32>
    %603 = vector.shape_cast %600 : vector<2x32xf32> to vector<1x2x32xf32>
    tpu.vector_store %arg11[%c1_290, %c0_291, %c0_292], %603 {strides = array<i32>} : memref<2x2x32xf32, #tpu.memory_space<vmem>>, vector<1x2x32xf32>,
    %c1_293 = arith.constant 1 : index
    %c0_294 = arith.constant 0 : index
    %c0_295 = arith.constant 0 : index
    %604 = vector.load %arg12[%c1_293, %c0_294, %c0_295] : memref<2x2x32xf32, #tpu.memory_space<vmem>>, vector<1x2x32xf32>
    %605 = vector.shape_cast %604 : vector<1x2x32xf32> to vector<2x32xf32>
    %606 = vector.shape_cast %598 : vector<2x32xf32> to vector<1x2x32xf32>
    tpu.vector_store %arg12[%c1_293, %c0_294, %c0_295], %606 {strides = array<i32>} : memref<2x2x32xf32, #tpu.memory_space<vmem>>, vector<1x2x32xf32>,
    %c0_296 = arith.constant 0 : index
    %c160 = arith.constant 160 : index
    %607 = vector.load %arg14[%c0_296, %c160] : memref<2x256xf32, #tpu.memory_space<vmem>>, vector<2x32xf32>
    tpu.vector_store %arg14[%c0_296, %c160], %600 {strides = array<i32>} : memref<2x256xf32, #tpu.memory_space<vmem>>, vector<2x32xf32>,
    %c1_297 = arith.constant 1 : index
    %c0_298 = arith.constant 0 : index
    %c0_299 = arith.constant 0 : index
    %608 = vector.load %arg11[%c1_297, %c0_298, %c0_299] : memref<2x2x32xf32, #tpu.memory_space<vmem>>, vector<1x2x32xf32>
    %609 = vector.shape_cast %608 : vector<1x2x32xf32> to vector<2x32xf32>
    %c1_300 = arith.constant 1 : index
    %c0_301 = arith.constant 0 : index
    %c0_302 = arith.constant 0 : index
    %610 = vector.load %arg12[%c1_300, %c0_301, %c0_302] : memref<2x2x32xf32, #tpu.memory_space<vmem>>, vector<1x2x32xf32>
    %611 = vector.shape_cast %610 : vector<1x2x32xf32> to vector<2x32xf32>
    %612 = vector.extract_strided_slice %527 {offsets = [4, 0], sizes = [2, 128], strides = [1, 1]} : vector<8x128xf32> to vector<2x128xf32>
    %613 = arith.truncf %609 : vector<2x32xf32> to vector<2x32xbf16>
    %cst_303 = arith.constant dense<0.000000e+00> : vector<2x128xf32>
    %614 = tpu.matmul %613, %520, %cst_303 {dimension_numbers = #tpu.dot_dimension_numbers<[1], [0], [0], [1], [0, 0, 1, 1], [], []>} : vector<2x32xbf16>, vector<32x128xbf16>, vector<2x128xf32> -> vector<2x128xf32>
    %615 = arith.addf %612, %614 : vector<2x128xf32>
    %616 = vector.extract_strided_slice %615 {offsets = [0, 0], sizes = [2, 32], strides = [1, 1]} : vector<2x128xf32> to vector<2x32xf32>
    %617 = arith.negf %616 : vector<2x32xf32>
    %618 = math.exp %617 : vector<2x32xf32>
    %cst_304 = arith.constant 1.000000e+00 : f32
    %619 = vector.broadcast %cst_304 : f32 to vector<2x32xf32>
    %620 = arith.addf %619, %618 : vector<2x32xf32>
    %621 = arith.divf %619, %620 : vector<2x32xf32>
    %622 = vector.extract_strided_slice %615 {offsets = [0, 32], sizes = [2, 32], strides = [1, 1]} : vector<2x128xf32> to vector<2x32xf32>
    %623 = arith.negf %622 : vector<2x32xf32>
    %624 = math.exp %623 : vector<2x32xf32>
    %cst_305 = arith.constant 1.000000e+00 : f32
    %625 = vector.broadcast %cst_305 : f32 to vector<2x32xf32>
    %626 = arith.addf %625, %624 : vector<2x32xf32>
    %627 = arith.divf %625, %626 : vector<2x32xf32>
    %628 = vector.extract_strided_slice %615 {offsets = [0, 64], sizes = [2, 32], strides = [1, 1]} : vector<2x128xf32> to vector<2x32xf32>
    %629 = math.tanh %628 : vector<2x32xf32>
    %630 = vector.extract_strided_slice %615 {offsets = [0, 96], sizes = [2, 32], strides = [1, 1]} : vector<2x128xf32> to vector<2x32xf32>
    %631 = arith.negf %630 : vector<2x32xf32>
    %632 = math.exp %631 : vector<2x32xf32>
    %cst_306 = arith.constant 1.000000e+00 : f32
    %633 = vector.broadcast %cst_306 : f32 to vector<2x32xf32>
    %634 = arith.addf %633, %632 : vector<2x32xf32>
    %635 = arith.divf %633, %634 : vector<2x32xf32>
    %636 = arith.mulf %627, %611 : vector<2x32xf32>
    %637 = arith.mulf %621, %629 : vector<2x32xf32>
    %638 = arith.addf %636, %637 : vector<2x32xf32>
    %639 = math.tanh %638 : vector<2x32xf32>
    %640 = arith.mulf %635, %639 : vector<2x32xf32>
    %c1_307 = arith.constant 1 : index
    %c0_308 = arith.constant 0 : index
    %c0_309 = arith.constant 0 : index
    %641 = vector.load %arg11[%c1_307, %c0_308, %c0_309] : memref<2x2x32xf32, #tpu.memory_space<vmem>>, vector<1x2x32xf32>
    %642 = vector.shape_cast %641 : vector<1x2x32xf32> to vector<2x32xf32>
    %643 = vector.shape_cast %640 : vector<2x32xf32> to vector<1x2x32xf32>
    tpu.vector_store %arg11[%c1_307, %c0_308, %c0_309], %643 {strides = array<i32>} : memref<2x2x32xf32, #tpu.memory_space<vmem>>, vector<1x2x32xf32>,
    %c1_310 = arith.constant 1 : index
    %c0_311 = arith.constant 0 : index
    %c0_312 = arith.constant 0 : index
    %644 = vector.load %arg12[%c1_310, %c0_311, %c0_312] : memref<2x2x32xf32, #tpu.memory_space<vmem>>, vector<1x2x32xf32>
    %645 = vector.shape_cast %644 : vector<1x2x32xf32> to vector<2x32xf32>
    %646 = vector.shape_cast %638 : vector<2x32xf32> to vector<1x2x32xf32>
    tpu.vector_store %arg12[%c1_310, %c0_311, %c0_312], %646 {strides = array<i32>} : memref<2x2x32xf32, #tpu.memory_space<vmem>>, vector<1x2x32xf32>,
    %c0_313 = arith.constant 0 : index
    %c192 = arith.constant 192 : index
    %647 = vector.load %arg14[%c0_313, %c192] : memref<2x256xf32, #tpu.memory_space<vmem>>, vector<2x32xf32>
    tpu.vector_store %arg14[%c0_313, %c192], %640 {strides = array<i32>} : memref<2x256xf32, #tpu.memory_space<vmem>>, vector<2x32xf32>,
    %c1_314 = arith.constant 1 : index
    %c0_315 = arith.constant 0 : index
    %c0_316 = arith.constant 0 : index
    %648 = vector.load %arg11[%c1_314, %c0_315, %c0_316] : memref<2x2x32xf32, #tpu.memory_space<vmem>>, vector<1x2x32xf32>
    %649 = vector.shape_cast %648 : vector<1x2x32xf32> to vector<2x32xf32>
    %c1_317 = arith.constant 1 : index
    %c0_318 = arith.constant 0 : index
    %c0_319 = arith.constant 0 : index
    %650 = vector.load %arg12[%c1_317, %c0_318, %c0_319] : memref<2x2x32xf32, #tpu.memory_space<vmem>>, vector<1x2x32xf32>
    %651 = vector.shape_cast %650 : vector<1x2x32xf32> to vector<2x32xf32>
    %652 = vector.extract_strided_slice %527 {offsets = [6, 0], sizes = [2, 128], strides = [1, 1]} : vector<8x128xf32> to vector<2x128xf32>
    %653 = arith.truncf %649 : vector<2x32xf32> to vector<2x32xbf16>
    %cst_320 = arith.constant dense<0.000000e+00> : vector<2x128xf32>
    %654 = tpu.matmul %653, %520, %cst_320 {dimension_numbers = #tpu.dot_dimension_numbers<[1], [0], [0], [1], [0, 0, 1, 1], [], []>} : vector<2x32xbf16>, vector<32x128xbf16>, vector<2x128xf32> -> vector<2x128xf32>
    %655 = arith.addf %652, %654 : vector<2x128xf32>
    %656 = vector.extract_strided_slice %655 {offsets = [0, 0], sizes = [2, 32], strides = [1, 1]} : vector<2x128xf32> to vector<2x32xf32>
    %657 = arith.negf %656 : vector<2x32xf32>
    %658 = math.exp %657 : vector<2x32xf32>
    %cst_321 = arith.constant 1.000000e+00 : f32
    %659 = vector.broadcast %cst_321 : f32 to vector<2x32xf32>
    %660 = arith.addf %659, %658 : vector<2x32xf32>
    %661 = arith.divf %659, %660 : vector<2x32xf32>
    %662 = vector.extract_strided_slice %655 {offsets = [0, 32], sizes = [2, 32], strides = [1, 1]} : vector<2x128xf32> to vector<2x32xf32>
    %663 = arith.negf %662 : vector<2x32xf32>
    %664 = math.exp %663 : vector<2x32xf32>
    %cst_322 = arith.constant 1.000000e+00 : f32
    %665 = vector.broadcast %cst_322 : f32 to vector<2x32xf32>
    %666 = arith.addf %665, %664 : vector<2x32xf32>
    %667 = arith.divf %665, %666 : vector<2x32xf32>
    %668 = vector.extract_strided_slice %655 {offsets = [0, 64], sizes = [2, 32], strides = [1, 1]} : vector<2x128xf32> to vector<2x32xf32>
    %669 = math.tanh %668 : vector<2x32xf32>
    %670 = vector.extract_strided_slice %655 {offsets = [0, 96], sizes = [2, 32], strides = [1, 1]} : vector<2x128xf32> to vector<2x32xf32>
    %671 = arith.negf %670 : vector<2x32xf32>
    %672 = math.exp %671 : vector<2x32xf32>
    %cst_323 = arith.constant 1.000000e+00 : f32
    %673 = vector.broadcast %cst_323 : f32 to vector<2x32xf32>
    %674 = arith.addf %673, %672 : vector<2x32xf32>
    %675 = arith.divf %673, %674 : vector<2x32xf32>
    %676 = arith.mulf %667, %651 : vector<2x32xf32>
    %677 = arith.mulf %661, %669 : vector<2x32xf32>
    %678 = arith.addf %676, %677 : vector<2x32xf32>
    %679 = math.tanh %678 : vector<2x32xf32>
    %680 = arith.mulf %675, %679 : vector<2x32xf32>
    %c1_324 = arith.constant 1 : index
    %c0_325 = arith.constant 0 : index
    %c0_326 = arith.constant 0 : index
    %681 = vector.load %arg11[%c1_324, %c0_325, %c0_326] : memref<2x2x32xf32, #tpu.memory_space<vmem>>, vector<1x2x32xf32>
    %682 = vector.shape_cast %681 : vector<1x2x32xf32> to vector<2x32xf32>
    %683 = vector.shape_cast %680 : vector<2x32xf32> to vector<1x2x32xf32>
    tpu.vector_store %arg11[%c1_324, %c0_325, %c0_326], %683 {strides = array<i32>} : memref<2x2x32xf32, #tpu.memory_space<vmem>>, vector<1x2x32xf32>,
    %c1_327 = arith.constant 1 : index
    %c0_328 = arith.constant 0 : index
    %c0_329 = arith.constant 0 : index
    %684 = vector.load %arg12[%c1_327, %c0_328, %c0_329] : memref<2x2x32xf32, #tpu.memory_space<vmem>>, vector<1x2x32xf32>
    %685 = vector.shape_cast %684 : vector<1x2x32xf32> to vector<2x32xf32>
    %686 = vector.shape_cast %678 : vector<2x32xf32> to vector<1x2x32xf32>
    tpu.vector_store %arg12[%c1_327, %c0_328, %c0_329], %686 {strides = array<i32>} : memref<2x2x32xf32, #tpu.memory_space<vmem>>, vector<1x2x32xf32>,
    %c0_330 = arith.constant 0 : index
    %c224 = arith.constant 224 : index
    %687 = vector.load %arg14[%c0_330, %c224] : memref<2x256xf32, #tpu.memory_space<vmem>>, vector<2x32xf32>
    tpu.vector_store %arg14[%c0_330, %c224], %680 {strides = array<i32>} : memref<2x256xf32, #tpu.memory_space<vmem>>, vector<2x32xf32>,
    %c0_331 = arith.constant 0 : index
    %c0_332 = arith.constant 0 : index
    %688 = vector.load %arg14[%c0_331, %c0_332] : memref<2x256xf32, #tpu.memory_space<vmem>>, vector<2x256xf32>
    %689 = arith.truncf %688 : vector<2x256xf32> to vector<2x256xbf16>
    %c0_333 = arith.constant 0 : index
    %c0_334 = arith.constant 0 : index
    %690 = vector.load %arg8[%c0_333, %c0_334] : memref<256x8xbf16, #tpu.memory_space<vmem>>, vector<256x8xbf16>
    %cst_335 = arith.constant dense<0.000000e+00> : vector<2x8xf32>
    %691 = tpu.matmul %689, %690, %cst_335 {dimension_numbers = #tpu.dot_dimension_numbers<[1], [0], [0], [1], [0, 0, 1, 1], [], []>} : vector<2x256xbf16>, vector<256x8xbf16>, vector<2x8xf32> -> vector<2x8xf32>
    %c0_336 = arith.constant 0 : index
    %c0_337 = arith.constant 0 : index
    %692 = vector.load %arg9[%c0_336, %c0_337] : memref<1x8xf32, #tpu.memory_space<vmem>>, vector<1x8xf32>
    %693 = vector.broadcast %692 : vector<1x8xf32> to vector<2x8xf32>
    %694 = arith.addf %691, %693 : vector<2x8xf32>
    %695 = arith.negf %694 : vector<2x8xf32>
    %696 = math.exp %695 : vector<2x8xf32>
    %cst_338 = arith.constant 1.000000e+00 : f32
    %697 = vector.broadcast %cst_338 : f32 to vector<2x8xf32>
    %698 = arith.addf %697, %696 : vector<2x8xf32>
    %699 = arith.divf %697, %698 : vector<2x8xf32>
    %c0_339 = arith.constant 0 : index
    %c0_340 = arith.constant 0 : index
    %700 = vector.load %arg10[%c0_339, %c0_340] : memref<2x8xf32, #tpu.memory_space<vmem>>, vector<2x8xf32>
    tpu.vector_store %arg10[%c0_339, %c0_340], %699 {strides = array<i32>} : memref<2x8xf32, #tpu.memory_space<vmem>>, vector<2x8xf32>,
    return
  }
}

</mosaic_0001>

<bundles_post_ra>
// kernel: ann_forward.1
= control target key start
LH: loop header
LB: loop body
LE: loop exit
PB: predicated region body
PF: predicated region fallthrough
CT: control target
= control target key end

     0   :  { %v2642_v1 = vmov 0.0   ;;  %vm2643_vm0 = vmmov 0   ;;  %vm37_vm1 = vcmask 254976   ;;  %vm71_vm2 = vcmask 261120   ;;  %s3224_s0 = inlined_call_operand.vmem [shape: f32[8,32], index: 0, kind: input, shape index: {}]   ;;  %s3225_s1 = inlined_call_operand.vmem [shape: f32[8,32], index: 1, kind: input, shape index: {}]   ;;  %s3226_s2 = inlined_call_operand.vmem [shape: bf16[2,32,128], index: 2, kind: input, shape index: {}]   ;;  %s3227_s3 = inlined_call_operand.vmem [shape: bf16[2,32,128], index: 3, kind: input, shape index: {}]   ;;  %s3228_s4 = inlined_call_operand.vmem [shape: f32[2,1,128], index: 4, kind: input, shape index: {}]   ;;  %s3229_s5 = inlined_call_operand.vmem [shape: bf16[2,32,128], index: 5, kind: input, shape index: {}]   ;;  %s3230_s6 = inlined_call_operand.vmem [shape: bf16[2,32,128], index: 6, kind: input, shape index: {}]   ;;  %s3231_s7 = inlined_call_operand.vmem [shape: f32[2,1,128], index: 7, kind: input, shape index: {}]   ;;  %s3232_s8 = inlined_call_operand.vmem [shape: bf16[256,8], index: 8, kind: input, shape index: {}]   ;;  %s3233_s9 = inlined_call_operand.vmem [shape: f32[1,8], index: 9, kind: input, shape index: {}]   ;;  %s3234_s10 = inlined_call_operand.hbm [shape: f32[2,8], index: 10, kind: output, shape index: {}]  }
   0x1   :  { %v2454_v0 = vld [vmem:[%s3226_s2] sm:$0xff]   ;;  %2287 = vmatprep.subr.bf16.mxu1 %v2642_v1  ;;  %v2455_v2 = vld [vmem:[%s3226_s2 + $0x8] sm:$0xff]   ;;  %2319 = vmatprep.subr.bf16.mxu0 %v2642_v1  ;;  %38 = vst.msk [vmem:[#allocation2] sm:$0x3] %vm37_vm1, %v2642_v1  ;;  %39 = vst.msk [vmem:[#allocation2 + $0x2] sm:$0x3] %vm37_vm1, %v2642_v1 }
   0x2   :  { %2288 = vmatpush3.bf16.msra.mxu1 %v2454_v0  ;;  %2291 = vmatprep.mubr.msk.bf16.mxu1 %vm2643_vm0, %v2642_v1  ;;  %v51_v3 = vld [vmem:[%s3224_s0] sm:$0xff]  ;;  %40 = vst.msk [vmem:[#allocation3] sm:$0x3] %vm37_vm1, %v2642_v1  ;;  %41 = vst.msk [vmem:[#allocation3 + $0x2] sm:$0x3] %vm37_vm1, %v2642_v1  ;;  %v2736_v6 = vld [vmem:[%s3227_s3 + $0x8] sm:$0xff]  }
   0x3   :  { %2289 = vmatprep.subr.bf16.mxu1 %v2642_v1  ;;  %v2721_v4 = vld [vmem:[%s3227_s3] sm:$0xff]   ;;  %2323 = vmatprep.mubr.msk.bf16.mxu0 %vm2643_vm0, %v2642_v1  ;;  %v52_v5 = vpack.c.bf16 %v51_v3, %v51_v3 }
   0x4   :  { %2320 = vmatpush3.bf16.msra.mxu0 %v2721_v4 }
   0x5   :  { %2321 = vmatprep.subr.bf16.mxu0 %v2642_v1 }
   0x6   :  { %2290 = vmatpush3.bf16.msra.mxu1 %v2455_v2 }
   0x7   :  { %2295 = vmatprep.subr.bf16.mxu1 %v2642_v1 }
   0x8   :  { %2322 = vmatpush3.bf16.msra.mxu0 %v2736_v6  ;;  %v115_v7 = vld [vmem:[#allocation2] sm:$0x3] }
   0x9   :  { %2292 = vmatmul.mubr.msk.bf16.vlgmr.msra.gmra.mrb[0].mxu1 %vm71_vm2, %v52_v5  ;;  %2335 = vmatprep.subr.bf16.mxu0 %v2642_v1  ;;  %v117_v8 = vpack.c.bf16 %v115_v7, %v115_v7 }
   0xa   :  { %2296 = vmatpush3.bf16.msra.mxu1 %v2721_v4  ;;  %2299 = vmatprep.mubr.msk.bf16.mxu1 %vm2643_vm0, %v2642_v1 }
   0xb   :  { %2297 = vmatprep.subr.bf16.mxu1 %v2642_v1 }
   0xe   :  { %2298 = vmatpush3.bf16.msra.mxu1 %v2736_v6 }
   0xf   :  { %2303 = vmatprep.subr.bf16.mxu1 %v2642_v1 }
  0x11   :  { %2300 = vmatmul.mubr.msk.bf16.vlgmr.msra.gmra.mrb[4].mxu1 %vm71_vm2, %v117_v8 }
  0x12   :  { %2304 = vmatpush3.bf16.msra.mxu1 %v2721_v4  ;;  %2307 = vmatprep.mubr.msk.bf16.mxu1 %vm2643_vm0, %v2642_v1 }
  0x13   :  { %2305 = vmatprep.subr.bf16.mxu1 %v2642_v1 }
  0x16   :  { %2306 = vmatpush3.bf16.msra.mxu1 %v2736_v6 }
  0x17   :  { %2311 = vmatprep.subr.bf16.mxu1 %v2642_v1 }
  0x18   :  { %15 = vsyncpa [#allocation7], 0  ;;  %v2112_v13 = vld [vmem:[%s3228_s4] ss:$0 sm:$0xff]  ;;  %s2644_s24 = smov 64   ;;  %s2645_s25 = smov 32  }
  0x19   :  { %v116_v21 = vld [vmem:[#allocation3] sm:$0x3]  ;;  %s2646_s26 = smov 96   ;;  %vm296_vm3 = vcmask 257026   ;;  %vm387_vm4 = vcmask 259076   ;;  %vm478_vm5 = vcmask 261126  }
  0x1a   :  { %vm771_vm6 = vcmask 517376   ;;  %vm873_vm7 = vcmask 779776   ;;  %vm974_vm8 = vcmask 1042176   ;;  %vm2096_vm9 = vcmask 58368  }
  0xdc   :  { %v109_v9 = vpop.f32.mrb[0].mxu1 }
  0xdd   :  { %v2293_v10 = vpop.f32.mrb[1].mxu1  ;;  %v2760_v14 = vadd.f32 %v2112_v13, %v109_v9 }
  0xde   :  { %v112_v11 = vpop.f32.mrb[2].mxu1 }
  0xdf   :  { %v2294_v12 = vpop.f32.mrb[3].mxu1 }
  0xe4   :  { %v167_v15 = vpop.f32.mrb[4].mxu1 }
  0xe5   :  { %v173_v16 = vadd.f32 %v167_v15, %v2760_v14  ;;  %v2301_v17 = vpop.f32.mrb[5].mxu1 }
  0xe6   :  { %v170_v18 = vpop.f32.mrb[6].mxu1 }
  0xe7   :  { %2486 = vtanh.f32 %v173_v16  ;;  %v2302_v19 = vpop.f32.mrb[7].mxu1  ;;  %v2119_v22 = vmul.f32 -1.442695, %v173_v16 }
  0xe9   :  { %2488 = vpow2.f32 %v2119_v22 }
  0xf1   :  { %v2487_v20 = vpop.eup %2486 }
  0xf2   :  { %187 = vrot.lane.b32.xlu0 %v2487_v20, %s2644_s24 }
  0xf3   :  { %v2489_v23 = vpop.eup %2488 }
  0xf4   :  { %v177_v24 = vadd.f32 1.0, %v2489_v23 }
  0xf6   :  { %182 = vrot.lane.b32.xlu0 %v116_v21, %s2645_s25  ;;  %2490 = vrcp.f32 %v177_v24 }
 0x100   :  { %v2491_v25 = vpop.eup %2490 }
 0x164   :  { %v188_v26 = vpop.permute.xlu0 %187 }
 0x165   :  { %v190_v27 = vmul.f32 %v2491_v25, %v188_v26 }
 0x167   :  { %192 = vrot.lane.b32.xlu1 %v190_v27, %s2645_s25 }
 0x168   :  { %v183_v28 = vpop.permute.xlu0 %182 }
 0x169   :  { %v185_v29 = vmul.f32 %v2491_v25, %v183_v28 }
 0x1d9   :  { %v193_v30 = vpop.permute.xlu1 %192 }
 0x1da   :  { %v195_v31 = vadd.f32 %v193_v30, %v185_v29 }
 0x1dc   :  { %2492 = vtanh.f32 %v195_v31 }
 0x1e6   :  { %v2493_v32 = vpop.eup %2492 }
 0x1e7   :  { %198 = vrot.lane.b32.xlu1 %v2493_v32, %s2644_s24 }
 0x1eb   :  { %208 = vrot.lane.b32.xlu1 %v195_v31, %s2646_s26 }
 0x259   :  { %v199_v33 = vpop.permute.xlu1 %198 }
 0x25a   :  { %v201_v34 = vmul.f32 %v2491_v25, %v199_v33 }
 0x25c   :  { %203 = vrot.lane.b32.xlu0 %v201_v34, %s2645_s25 }
 0x25d   :  { %v209_v35 = vpop.permute.xlu1 %208 }
 0x25e   :  { %211 = vst.msk [vmem:[#allocation3] sm:$0x3] %vm37_vm1, %v209_v35 }
 0x265   :  { %v214_v36 = vld [vmem:[#allocation3] sm:$0x3] }
 0x266   :  { %v271_v37 = vrot.slane %v214_v36, 6 }
 0x268   :  { %272 = vrot.lane.b32.xlu1 %v271_v37, %s2645_s25 }
 0x2ce   :  { %v204_v38 = vpop.permute.xlu0 %203 }
 0x2cf   :  { %206 = vst.msk [vmem:[#allocation2] sm:$0x3] %vm37_vm1, %v204_v38  ;;  %212 = vst.msk [vmem:[#allocation4] sm:$0x3] %vm37_vm1, %v204_v38 }
 0x2d6   :  { %v213_v39 = vld [vmem:[#allocation2] sm:$0x3] }
 0x2d7   :  { %v215_v40 = vpack.c.bf16 %v213_v39, %v213_v39 }
 0x2d9   :  { %2308 = vmatmul.mubr.msk.bf16.vlgmr.msra.gmra.mrb[8].mxu1 %vm71_vm2, %v215_v40 }
 0x2da   :  { %2312 = vmatpush3.bf16.msra.mxu1 %v2721_v4  ;;  %2315 = vmatprep.mubr.msk.bf16.mxu1 %vm2643_vm0, %v2642_v1  ;;  %v273_v54 = vpop.permute.xlu1 %272 }
 0x2db   :  { %2313 = vmatprep.subr.bf16.mxu1 %v2642_v1 }
 0x2de   :  { %2314 = vmatpush3.bf16.msra.mxu1 %v2736_v6 }
 0x2df   :  { %2327 = vmatprep.subr.bf16.mxu1 %v2642_v1 }
 0x3ac   :  { %v253_v41 = vpop.f32.mrb[8].mxu1 }
 0x3ad   :  { %v260_v42 = vrot.slane %v253_v41, 6  ;;  %v2309_v43 = vpop.f32.mrb[9].mxu1 }
 0x3ae   :  { %v256_v44 = vpop.f32.mrb[10].mxu1 }
 0x3af   :  { %v262_v45 = vadd.f32 %v260_v42, %v2760_v14  ;;  %v2310_v46 = vpop.f32.mrb[11].mxu1 }
 0x3b1   :  { %2494 = vtanh.f32 %v262_v45  ;;  %v2121_v48 = vmul.f32 -1.442695, %v262_v45 }
 0x3b3   :  { %2496 = vpow2.f32 %v2121_v48  ;;  %v2458_v48 = vld [vmem:[%s3226_s2 + $0x10] sm:$0xff]  }
 0x3bb   :  { %v2495_v47 = vpop.eup %2494 }
 0x3bc   :  { %277 = vrot.lane.b32.xlu0 %v2495_v47, %s2644_s24 }
 0x3bd   :  { %v2497_v49 = vpop.eup %2496 }
 0x3be   :  { %v266_v50 = vadd.f32 1.0, %v2497_v49  ;;  %v2819_v49 = vld [vmem:[%s3227_s3 + $0x10] sm:$0xff]  }
 0x3c0   :  { %2498 = vrcp.f32 %v266_v50  ;;  %v2460_v50 = vld [vmem:[%s3226_s2 + $0x18] sm:$0xff]  }
 0x3ca   :  { %v2499_v51 = vpop.eup %2498 }
 0x3cb   :  { %v275_v55 = vmul.f32 %v2499_v51, %v273_v54 }
 0x42e   :  { %v278_v52 = vpop.permute.xlu0 %277 }
 0x42f   :  { %v280_v53 = vmul.f32 %v2499_v51, %v278_v52  ;;  %v562_v52 = vld [vmem:[#allocation2 + $0x2] sm:$0x3] }
 0x431   :  { %282 = vrot.lane.b32.xlu0 %v280_v53, %s2645_s25  ;;  %v565_v53 = vpack.c.bf16 %v562_v52, %v562_v52 }
 0x4a3   :  { %v283_v56 = vpop.permute.xlu0 %282 }
 0x4a4   :  { %v285_v57 = vadd.f32 %v283_v56, %v275_v55  ;;  %v564_v56 = vld [vmem:[#allocation3 + $0x2] sm:$0x3] }
 0x4a6   :  { %2500 = vtanh.f32 %v285_v57 }
 0x4b0   :  { %v2501_v58 = vpop.eup %2500 }
 0x4b1   :  { %288 = vrot.lane.b32.xlu1 %v2501_v58, %s2644_s24 }
 0x4b5   :  { %299 = vrot.lane.b32.xlu1 %v285_v57, %s2646_s26 }
 0x523   :  { %v289_v59 = vpop.permute.xlu1 %288 }
 0x524   :  { %v291_v60 = vmul.f32 %v2499_v51, %v289_v59  ;;  %v2828_v51 = vld [vmem:[%s3227_s3 + $0x18] sm:$0xff]  }
 0x526   :  { %293 = vrot.lane.b32.xlu0 %v291_v60, %s2645_s25 }
 0x527   :  { %v300_v61 = vpop.permute.xlu1 %299 }
 0x528   :  { %302 = vst.msk [vmem:[#allocation3 - $0x2] sm:$0xc] %vm296_vm3, %v300_v61 }
 0x52f   :  { %v305_v62 = vld [vmem:[#allocation3] sm:$0x3] }
 0x530   :  { %v362_v63 = vrot.slane %v305_v62, 4 }
 0x532   :  { %363 = vrot.lane.b32.xlu1 %v362_v63, %s2645_s25 }
 0x598   :  { %v294_v0 = vpop.permute.xlu0 %293 }
 0x599   :  { %297 = vst.msk [vmem:[#allocation2 - $0x2] sm:$0xc] %vm296_vm3, %v294_v0  ;;  %303 = vst.msk [vmem:[#allocation4] sm:$0xc] %vm296_vm3, %v294_v0  ;;  %v2135_v0 = vld [vmem:[%s3228_s4 + $0x1] ss:$0 sm:$0xff] }
 0x5a0   :  { %v304_v2 = vld [vmem:[#allocation2] sm:$0x3] }
 0x5a1   :  { %v306_v3 = vpack.c.bf16 %v304_v2, %v304_v2 }
 0x5a3   :  { %2316 = vmatmul.mubr.msk.bf16.vlgmr.msra.gmra.mrb[12].mxu1 %vm71_vm2, %v306_v3 }
 0x5a4   :  { %2331 = vmatprep.mubr.msk.bf16.mxu1 %vm2643_vm0, %v2642_v1  ;;  %v364_v18 = vpop.permute.xlu1 %363  ;;  %2328 = vmatpush3.bf16.msra.mxu1 %v2458_v48 }
 0x5a5   :  { %2329 = vmatprep.subr.bf16.mxu1 %v2642_v1 }
 0x5a8   :  { %2330 = vmatpush3.bf16.msra.mxu1 %v2460_v50 }
 0x5a9   :  { %2343 = vmatprep.subr.bf16.mxu1 %v2642_v1 }
 0x676   :  { %v344_v4 = vpop.f32.mrb[12].mxu1 }
 0x677   :  { %v351_v5 = vrot.slane %v344_v4, 4  ;;  %v2317_v6 = vpop.f32.mrb[13].mxu1 }
 0x678   :  { %v347_v7 = vpop.f32.mrb[14].mxu1 }
 0x679   :  { %v353_v8 = vadd.f32 %v351_v5, %v2760_v14  ;;  %v2318_v9 = vpop.f32.mrb[15].mxu1 }
 0x67b   :  { %2502 = vtanh.f32 %v353_v8  ;;  %v2123_v11 = vmul.f32 -1.442695, %v353_v8 }
 0x67d   :  { %2504 = vpow2.f32 %v2123_v11 }
 0x685   :  { %v2503_v10 = vpop.eup %2502 }
 0x686   :  { %368 = vrot.lane.b32.xlu0 %v2503_v10, %s2644_s24 }
 0x687   :  { %v2505_v12 = vpop.eup %2504 }
 0x688   :  { %v357_v13 = vadd.f32 1.0, %v2505_v12 }
 0x68a   :  { %2506 = vrcp.f32 %v357_v13 }
 0x694   :  { %v2507_v15 = vpop.eup %2506 }
 0x695   :  { %v366_v19 = vmul.f32 %v2507_v15, %v364_v18 }
 0x6f8   :  { %v369_v16 = vpop.permute.xlu0 %368 }
 0x6f9   :  { %v371_v17 = vmul.f32 %v2507_v15, %v369_v16 }
 0x6fb   :  { %373 = vrot.lane.b32.xlu0 %v371_v17, %s2645_s25 }
 0x76d   :  { %v374_v20 = vpop.permute.xlu0 %373 }
 0x76e   :  { %v376_v21 = vadd.f32 %v374_v20, %v366_v19 }
 0x770   :  { %2508 = vtanh.f32 %v376_v21 }
 0x77a   :  { %v2509_v22 = vpop.eup %2508 }
 0x77b   :  { %379 = vrot.lane.b32.xlu1 %v2509_v22, %s2644_s24 }
 0x77f   :  { %390 = vrot.lane.b32.xlu1 %v376_v21, %s2646_s26 }
 0x7ed   :  { %v380_v23 = vpop.permute.xlu1 %379 }
 0x7ee   :  { %v382_v24 = vmul.f32 %v2507_v15, %v380_v23 }
 0x7f0   :  { %384 = vrot.lane.b32.xlu0 %v382_v24, %s2645_s25 }
 0x7f1   :  { %v391_v25 = vpop.permute.xlu1 %390 }
 0x7f2   :  { %393 = vst.msk [vmem:[#allocation3 - $0x4] sm:$0x30] %vm387_vm4, %v391_v25 }
 0x7f9   :  { %v396_v26 = vld [vmem:[#allocation3] sm:$0x3] }
 0x7fa   :  { %v453_v27 = vrot.slane %v396_v26, 2 }
 0x7fc   :  { %454 = vrot.lane.b32.xlu1 %v453_v27, %s2645_s25 }
 0x862   :  { %v385_v28 = vpop.permute.xlu0 %384 }
 0x863   :  { %388 = vst.msk [vmem:[#allocation2 - $0x4] sm:$0x30] %vm387_vm4, %v385_v28  ;;  %394 = vst.msk [vmem:[#allocation4] sm:$0x30] %vm387_vm4, %v385_v28 }
 0x86a   :  { %v395_v29 = vld [vmem:[#allocation2] sm:$0x3] }
 0x86b   :  { %v397_v30 = vpack.c.bf16 %v395_v29, %v395_v29 }
 0x86d   :  { %2324 = vmatmul.mubr.msk.bf16.vlgmr.msra.gmra.mrb[0].mxu0 %vm71_vm2, %v397_v30 }
 0x86e   :  { %2339 = vmatprep.mubr.msk.bf16.mxu0 %vm2643_vm0, %v2642_v1  ;;  %v455_v44 = vpop.permute.xlu1 %454  ;;  %2336 = vmatpush3.bf16.msra.mxu0 %v2819_v49 }
 0x86f   :  { %2337 = vmatprep.subr.bf16.mxu0 %v2642_v1 }
 0x872   :  { %2338 = vmatpush3.bf16.msra.mxu0 %v2828_v51 }
 0x873   :  { %2351 = vmatprep.subr.bf16.mxu0 %v2642_v1 }
 0x875   :  { %2340 = vmatmul.mubr.msk.bf16.vlgmr.msra.gmra.mrb[4].mxu0 %vm71_vm2, %v565_v53 }
 0x876   :  { %2352 = vmatpush3.bf16.msra.mxu0 %v2819_v49  ;;  %2355 = vmatprep.mubr.msk.bf16.mxu0 %vm2643_vm0, %v2642_v1 }
 0x877   :  { %2353 = vmatprep.subr.bf16.mxu0 %v2642_v1 }
 0x87a   :  { %2354 = vmatpush3.bf16.msra.mxu0 %v2828_v51 }
 0x87b   :  { %2367 = vmatprep.subr.bf16.mxu0 %v2642_v1 }
 0x940   :  { %v435_v31 = vpop.f32.mrb[0].mxu0 }
 0x941   :  { %v442_v32 = vrot.slane %v435_v31, 2  ;;  %v2325_v33 = vpop.f32.mrb[1].mxu0 }
 0x942   :  { %v438_v34 = vpop.f32.mrb[2].mxu0 }
 0x943   :  { %v444_v35 = vadd.f32 %v442_v32, %v2760_v14  ;;  %v2326_v36 = vpop.f32.mrb[3].mxu0 }
 0x945   :  { %2510 = vtanh.f32 %v444_v35  ;;  %v2125_v38 = vmul.f32 -1.442695, %v444_v35 }
 0x947   :  { %2512 = vpow2.f32 %v2125_v38 }
 0x948   :  { %v615_v60 = vpop.f32.mrb[4].mxu0 }
 0x949   :  { %v2341_v61 = vpop.f32.mrb[5].mxu0 }
 0x94a   :  { %v618_v62 = vpop.f32.mrb[6].mxu0 }
 0x94b   :  { %v2342_v63 = vpop.f32.mrb[7].mxu0 }
 0x94f   :  { %v2511_v37 = vpop.eup %2510 }
 0x950   :  { %459 = vrot.lane.b32.xlu0 %v2511_v37, %s2644_s24 }
 0x951   :  { %v2513_v39 = vpop.eup %2512 }
 0x952   :  { %v448_v40 = vadd.f32 1.0, %v2513_v39 }
 0x954   :  { %2514 = vrcp.f32 %v448_v40 }
 0x95e   :  { %v2515_v41 = vpop.eup %2514 }
 0x95f   :  { %v457_v45 = vmul.f32 %v2515_v41, %v455_v44 }
 0x9c2   :  { %v460_v42 = vpop.permute.xlu0 %459 }
 0x9c3   :  { %v462_v43 = vmul.f32 %v2515_v41, %v460_v42 }
 0x9c5   :  { %464 = vrot.lane.b32.xlu0 %v462_v43, %s2645_s25 }
 0xa37   :  { %v465_v46 = vpop.permute.xlu0 %464 }
 0xa38   :  { %v2809_v47 = vadd.f32 %v465_v46, %v457_v45 }
 0xa3a   :  { %2516 = vtanh.f32 %v2809_v47 }
 0xa44   :  { %v2517_v14 = vpop.eup %2516 }
 0xa45   :  { %470 = vrot.lane.b32.xlu1 %v2517_v14, %s2644_s24 }
 0xab7   :  { %v471_v54 = vpop.permute.xlu1 %470 }
 0xab8   :  { %v473_v55 = vmul.f32 %v2515_v41, %v471_v54 }
 0xaba   :  { %475 = vrot.lane.b32.xlu0 %v473_v55, %s2645_s25 }
 0xabe   :  { %630 = vrot.lane.b32.xlu0 %v564_v56, %s2645_s25 }
 0xb2c   :  { %v476_v57 = vpop.permute.xlu0 %475 }
 0xb2d   :  { %479 = vst.msk [vmem:[#allocation2 - $0x6] sm:$0xc0] %vm478_vm5, %v476_v57  ;;  %485 = vst.msk [vmem:[#allocation4] sm:$0xc0] %vm478_vm5, %v476_v57 }
 0xb30   :  { %v631_v16 = vpop.permute.xlu0 %630 }
 0xb34   :  { %v498_v58 = vld [vmem:[#allocation4] sm:$0xff] }
 0xb35   :  { %v499_v59 = vpack.c.bf16 %v498_v58, %v498_v58 }
 0xb37   :  { %2332 = vmatmul.mubr.msk.bf16.vlgmr.msra.gmra.mrb[16].mxu1 %vm71_vm2, %v499_v59 }
 0xb38   :  { %2344 = vmatpush3.bf16.msra.mxu1 %v2819_v49  ;;  %2347 = vmatprep.mubr.msk.bf16.mxu1 %vm2643_vm0, %v2642_v1 }
 0xb39   :  { %2345 = vmatprep.subr.bf16.mxu1 %v2642_v1 }
 0xb3c   :  { %2346 = vmatpush3.bf16.msra.mxu1 %v2828_v51 }
 0xb3d   :  { %2359 = vmatprep.subr.bf16.mxu1 %v2642_v1 }
 0xc0a   :  { %v555_v2 = vpop.f32.mrb[16].mxu1 }
 0xc0b   :  { %v2856_v3 = vadd.f32 %v2135_v0, %v555_v2  ;;  %v2333_v4 = vpop.f32.mrb[17].mxu1 }
 0xc0c   :  { %v558_v5 = vpop.f32.mrb[18].mxu1 }
 0xc0d   :  { %v621_v6 = vadd.f32 %v615_v60, %v2856_v3  ;;  %v2334_v7 = vpop.f32.mrb[19].mxu1 }
 0xc0f   :  { %2518 = vtanh.f32 %v621_v6  ;;  %v2142_v9 = vmul.f32 -1.442695, %v621_v6 }
 0xc11   :  { %2520 = vpow2.f32 %v2142_v9 }
 0xc19   :  { %v2519_v8 = vpop.eup %2518 }
 0xc1a   :  { %635 = vrot.lane.b32.xlu1 %v2519_v8, %s2644_s24 }
 0xc1b   :  { %v2521_v10 = vpop.eup %2520 }
 0xc1c   :  { %v625_v11 = vadd.f32 1.0, %v2521_v10 }
 0xc1e   :  { %2522 = vrcp.f32 %v625_v11  ;;  %v2462_v11 = vld [vmem:[%s3229_s5] sm:$0xff]  }
 0xc28   :  { %v2523_v12 = vpop.eup %2522 }
 0xc29   :  { %v633_v17 = vmul.f32 %v2523_v12, %v631_v16 }
 0xc8c   :  { %v636_v13 = vpop.permute.xlu1 %635 }
 0xc8d   :  { %v638_v15 = vmul.f32 %v2523_v12, %v636_v13 }
 0xc8f   :  { %640 = vrot.lane.b32.xlu1 %v638_v15, %s2645_s25  ;;  %v985_v15 = vld [vmem:[%s3225_s1] sm:$0xff] }
 0xd01   :  { %v641_v18 = vpop.permute.xlu1 %640 }
 0xd02   :  { %v643_v19 = vadd.f32 %v641_v18, %v633_v17  ;;  %v2917_v17 = vld [vmem:[%s3230_s6] sm:$0xff]  }
 0xd04   :  { %2524 = vtanh.f32 %v643_v19 }
 0xd0e   :  { %v2525_v20 = vpop.eup %2524 }
 0xd0f   :  { %646 = vrot.lane.b32.xlu0 %v2525_v20, %s2644_s24 }
 0xd13   :  { %656 = vrot.lane.b32.xlu0 %v643_v19, %s2646_s26  ;;  %v2930_v19 = vld [vmem:[%s3230_s6 + $0x8] sm:$0xff]  }
 0xd81   :  { %v647_v21 = vpop.permute.xlu0 %646 }
 0xd82   :  { %v2863_v22 = vmul.f32 %v2523_v12, %v647_v21  ;;  %v2463_v12 = vld [vmem:[%s3229_s5 + $0x8] sm:$0xff]  }
 0xd84   :  { %651 = vrot.lane.b32.xlu1 %v2863_v22, %s2645_s25 }
 0xd85   :  { %v657_v23 = vpop.permute.xlu0 %656 }
 0xd86   :  { %659 = vst.msk [vmem:[#allocation3 + $0x2] sm:$0x3] %vm37_vm1, %v657_v23 }
 0xd8d   :  { %v672_v24 = vld [vmem:[#allocation3 + $0x2] sm:$0x3] }
 0xd8e   :  { %v729_v25 = vrot.slane %v672_v24, 6 }
 0xd90   :  { %730 = vrot.lane.b32.xlu0 %v729_v25, %s2645_s25  ;;  %v1048_v25 = vld [vmem:[#allocation2] sm:$0x3] }
 0xdf6   :  { %v652_v26 = vpop.permute.xlu1 %651 }
 0xdf7   :  { %654 = vst.msk [vmem:[#allocation2 + $0x2] sm:$0x3] %vm37_vm1, %v652_v26  ;;  %v1050_v26 = vpack.c.bf16 %v1048_v25, %v1048_v25 }
 0xdfe   :  { %v671_v27 = vld [vmem:[#allocation2 + $0x2] sm:$0x3] }
 0xdff   :  { %v673_v28 = vpack.c.bf16 %v671_v27, %v671_v27 }
 0xe01   :  { %2348 = vmatmul.mubr.msk.bf16.vlgmr.msra.gmra.mrb[20].mxu1 %vm71_vm2, %v673_v28 }
 0xe02   :  { %2360 = vmatpush3.bf16.msra.mxu1 %v2819_v49  ;;  %2363 = vmatprep.mubr.msk.bf16.mxu1 %vm2643_vm0, %v2642_v1  ;;  %v731_v42 = vpop.permute.xlu0 %730 }
 0xe03   :  { %2361 = vmatprep.subr.bf16.mxu1 %v2642_v1 }
 0xe06   :  { %2362 = vmatpush3.bf16.msra.mxu1 %v2828_v51 }
 0xe07   :  { %2375 = vmatprep.subr.bf16.mxu1 %v2642_v1 }
 0xed4   :  { %v711_v29 = vpop.f32.mrb[20].mxu1 }
 0xed5   :  { %v718_v30 = vrot.slane %v711_v29, 6  ;;  %v2349_v31 = vpop.f32.mrb[21].mxu1 }
 0xed6   :  { %v714_v32 = vpop.f32.mrb[22].mxu1 }
 0xed7   :  { %v720_v33 = vadd.f32 %v718_v30, %v2856_v3  ;;  %v2350_v34 = vpop.f32.mrb[23].mxu1 }
 0xed8   :  { %v2149_v34 = vld [vmem:[%s3231_s7] ss:$0 sm:$0xff] }
 0xed9   :  { %2526 = vtanh.f32 %v720_v33  ;;  %v2144_v36 = vmul.f32 -1.442695, %v720_v33 }
 0xedb   :  { %2528 = vpow2.f32 %v2144_v36 }
 0xee3   :  { %v2527_v35 = vpop.eup %2526 }
 0xee4   :  { %735 = vrot.lane.b32.xlu1 %v2527_v35, %s2644_s24 }
 0xee5   :  { %v2529_v37 = vpop.eup %2528 }
 0xee6   :  { %v724_v38 = vadd.f32 1.0, %v2529_v37 }
 0xee8   :  { %2530 = vrcp.f32 %v724_v38 }
 0xef2   :  { %v2531_v39 = vpop.eup %2530 }
 0xef3   :  { %v733_v43 = vmul.f32 %v2531_v39, %v731_v42 }
 0xf56   :  { %v736_v40 = vpop.permute.xlu1 %735 }
 0xf57   :  { %v738_v41 = vmul.f32 %v2531_v39, %v736_v40 }
 0xf59   :  { %740 = vrot.lane.b32.xlu1 %v738_v41, %s2645_s25 }
 0xfcb   :  { %v741_v44 = vpop.permute.xlu1 %740 }
 0xfcc   :  { %v743_v45 = vadd.f32 %v741_v44, %v733_v43 }
 0xfce   :  { %2532 = vtanh.f32 %v743_v45 }
 0xfd8   :  { %v2533_v46 = vpop.eup %2532 }
 0xfd9   :  { %746 = vrot.lane.b32.xlu0 %v2533_v46, %s2644_s24 }
 0xfdd   :  { %756 = vrot.lane.b32.xlu0 %v743_v45, %s2646_s26 }
0x104b   :  { %v747_v14 = vpop.permute.xlu0 %746 }
0x104c   :  { %v2882_v48 = vmul.f32 %v2531_v39, %v747_v14 }
0x104e   :  { %751 = vrot.lane.b32.xlu1 %v2882_v48, %s2645_s25 }
0x104f   :  { %v757_v49 = vpop.permute.xlu0 %756 }
0x1050   :  { %759 = vst.msk [vmem:[#allocation3] sm:$0xc] %vm296_vm3, %v757_v49 }
0x1057   :  { %v774_v50 = vld [vmem:[#allocation3 + $0x2] sm:$0x3] }
0x1058   :  { %v831_v51 = vrot.slane %v774_v50, 4 }
0x105a   :  { %832 = vrot.lane.b32.xlu0 %v831_v51, %s2645_s25 }
0x10c0   :  { %v752_v52 = vpop.permute.xlu1 %751 }
0x10c1   :  { %754 = vst.msk [vmem:[#allocation2] sm:$0xc] %vm296_vm3, %v752_v52 }
0x10c8   :  { %v773_v53 = vld [vmem:[#allocation2 + $0x2] sm:$0x3] }
0x10c9   :  { %v775_v54 = vpack.c.bf16 %v773_v53, %v773_v53 }
0x10cb   :  { %2356 = vmatmul.mubr.msk.bf16.vlgmr.msra.gmra.mrb[8].mxu0 %vm71_vm2, %v775_v54 }
0x10cc   :  { %2371 = vmatprep.mubr.msk.bf16.mxu0 %vm2643_vm0, %v2642_v1  ;;  %v833_v6 = vpop.permute.xlu0 %832  ;;  %2368 = vmatpush3.bf16.msra.mxu0 %v2462_v11 }
0x10cd   :  { %2369 = vmatprep.subr.bf16.mxu0 %v2642_v1 }
0x10d0   :  { %2370 = vmatpush3.bf16.msra.mxu0 %v2463_v12 }
0x10d1   :  { %2383 = vmatprep.subr.bf16.mxu0 %v2642_v1 }
0x119e   :  { %v813_v55 = vpop.f32.mrb[8].mxu0 }
0x119f   :  { %v820_v56 = vrot.slane %v813_v55, 4  ;;  %v2357_v57 = vpop.f32.mrb[9].mxu0 }
0x11a0   :  { %v816_v58 = vpop.f32.mrb[10].mxu0 }
0x11a1   :  { %v822_v59 = vadd.f32 %v820_v56, %v2856_v3  ;;  %v2358_v60 = vpop.f32.mrb[11].mxu0 }
0x11a3   :  { %2534 = vtanh.f32 %v822_v59  ;;  %v2146_v62 = vmul.f32 -1.442695, %v822_v59 }
0x11a5   :  { %2536 = vpow2.f32 %v2146_v62 }
0x11ad   :  { %v2535_v61 = vpop.eup %2534 }
0x11ae   :  { %837 = vrot.lane.b32.xlu1 %v2535_v61, %s2644_s24 }
0x11af   :  { %v2537_v63 = vpop.eup %2536 }
0x11b0   :  { %v826_v0 = vadd.f32 1.0, %v2537_v63 }
0x11b2   :  { %2538 = vrcp.f32 %v826_v0 }
0x11bc   :  { %v2539_v2 = vpop.eup %2538 }
0x11bd   :  { %v835_v7 = vmul.f32 %v2539_v2, %v833_v6 }
0x1220   :  { %v838_v4 = vpop.permute.xlu1 %837 }
0x1221   :  { %v840_v5 = vmul.f32 %v2539_v2, %v838_v4 }
0x1223   :  { %842 = vrot.lane.b32.xlu1 %v840_v5, %s2645_s25 }
0x1295   :  { %v843_v8 = vpop.permute.xlu1 %842 }
0x1296   :  { %v2895_v9 = vadd.f32 %v843_v8, %v835_v7 }
0x1298   :  { %2540 = vtanh.f32 %v2895_v9 }
0x12a2   :  { %v2541_v10 = vpop.eup %2540 }
0x12a3   :  { %848 = vrot.lane.b32.xlu0 %v2541_v10, %s2644_s24 }
0x12a7   :  { %481 = vrot.lane.b32.xlu0 %v2809_v47, %s2646_s26  ;;  %v986_v47 = vpack.c.bf16 %v985_v15, %v985_v15 }
0x12a9   :  { %2372 = vmatmul.mubr.msk.bf16.vlgmr.msra.gmra.mrb[12].mxu0 %vm71_vm2, %v986_v47 }
0x12aa   :  { %2384 = vmatpush3.bf16.msra.mxu0 %v2917_v17  ;;  %2387 = vmatprep.mubr.msk.bf16.mxu0 %vm2643_vm0, %v2642_v1 }
0x12ab   :  { %2385 = vmatprep.subr.bf16.mxu0 %v2642_v1 }
0x12ae   :  { %2386 = vmatpush3.bf16.msra.mxu0 %v2930_v19 }
0x12af   :  { %2399 = vmatprep.subr.bf16.mxu0 %v2642_v1 }
0x1315   :  { %v849_v13 = vpop.permute.xlu0 %848 }
0x1316   :  { %v2911_v16 = vmul.f32 %v2539_v2, %v849_v13 }
0x1318   :  { %853 = vrot.lane.b32.xlu1 %v2911_v16, %s2645_s25 }
0x1319   :  { %v482_v18 = vpop.permute.xlu0 %481 }
0x131a   :  { %484 = vst.msk [vmem:[#allocation3 - $0x6] sm:$0xc0] %vm478_vm5, %v482_v18 }
0x1321   :  { %v1049_v20 = vld [vmem:[#allocation3] sm:$0x3] }
0x1322   :  { %1115 = vrot.lane.b32.xlu0 %v1049_v20, %s2645_s25 }
0x137c   :  { %v1042_v27 = vpop.f32.mrb[12].mxu0 }
0x137d   :  { %v2373_v28 = vpop.f32.mrb[13].mxu0  ;;  %v2955_v36 = vadd.f32 %v2149_v34, %v1042_v27 }
0x137e   :  { %v1045_v29 = vpop.f32.mrb[14].mxu0 }
0x137f   :  { %v2374_v30 = vpop.f32.mrb[15].mxu0 }
0x138a   :  { %v854_v21 = vpop.permute.xlu1 %853 }
0x138b   :  { %856 = vst.msk [vmem:[#allocation2 - $0x2] sm:$0x30] %vm387_vm4, %v854_v21 }
0x1392   :  { %v875_v23 = vld [vmem:[#allocation2 + $0x2] sm:$0x3] }
0x1393   :  { %v877_v24 = vpack.c.bf16 %v875_v23, %v875_v23 }
0x1394   :  { %v1116_v50 = vpop.permute.xlu0 %1115 }
0x1395   :  { %2364 = vmatmul.mubr.msk.bf16.vlgmr.msra.gmra.mrb[24].mxu1 %vm71_vm2, %v877_v24 }
0x1396   :  { %2376 = vmatpush3.bf16.msra.mxu1 %v2917_v17  ;;  %2379 = vmatprep.mubr.msk.bf16.mxu1 %vm2643_vm0, %v2642_v1 }
0x1397   :  { %2377 = vmatprep.subr.bf16.mxu1 %v2642_v1 }
0x139a   :  { %2378 = vmatpush3.bf16.msra.mxu1 %v2930_v19 }
0x139b   :  { %2391 = vmatprep.subr.bf16.mxu1 %v2642_v1 }
0x139d   :  { %2380 = vmatmul.mubr.msk.bf16.vlgmr.msra.gmra.mrb[28].mxu1 %vm71_vm2, %v1050_v26 }
0x139e   :  { %2392 = vmatpush3.bf16.msra.mxu1 %v2917_v17  ;;  %2395 = vmatprep.mubr.msk.bf16.mxu1 %vm2643_vm0, %v2642_v1 }
0x139f   :  { %2393 = vmatprep.subr.bf16.mxu1 %v2642_v1 }
0x13a2   :  { %2394 = vmatpush3.bf16.msra.mxu1 %v2930_v19 }
0x13a3   :  { %2407 = vmatprep.subr.bf16.mxu1 %v2642_v1 }
0x1468   :  { %v2950_v31 = vpop.f32.mrb[24].mxu1 }
0x1469   :  { %v2365_v32 = vpop.f32.mrb[25].mxu1 }
0x146a   :  { %v918_v33 = vpop.f32.mrb[26].mxu1 }
0x146b   :  { %v2366_v35 = vpop.f32.mrb[27].mxu1 }
0x1470   :  { %v1100_v37 = vpop.f32.mrb[28].mxu1 }
0x1471   :  { %v1106_v38 = vadd.f32 %v1100_v37, %v2955_v36  ;;  %v2381_v39 = vpop.f32.mrb[29].mxu1 }
0x1472   :  { %v1103_v40 = vpop.f32.mrb[30].mxu1 }
0x1473   :  { %2542 = vtanh.f32 %v1106_v38  ;;  %v2382_v41 = vpop.f32.mrb[31].mxu1  ;;  %v2156_v43 = vmul.f32 -1.442695, %v1106_v38 }
0x1475   :  { %2544 = vpow2.f32 %v2156_v43 }
0x147d   :  { %v2543_v42 = vpop.eup %2542 }
0x147e   :  { %1120 = vrot.lane.b32.xlu1 %v2543_v42, %s2644_s24 }
0x147f   :  { %v2545_v44 = vpop.eup %2544 }
0x1480   :  { %v1110_v45 = vadd.f32 1.0, %v2545_v44 }
0x1482   :  { %2546 = vrcp.f32 %v1110_v45 }
0x148c   :  { %v2547_v46 = vpop.eup %2546 }
0x148d   :  { %v1118_v51 = vmul.f32 %v2547_v46, %v1116_v50 }
0x14f0   :  { %v1121_v14 = vpop.permute.xlu1 %1120 }
0x14f1   :  { %v1123_v49 = vmul.f32 %v2547_v46, %v1121_v14 }
0x14f3   :  { %1125 = vrot.lane.b32.xlu1 %v1123_v49, %s2645_s25 }
0x1565   :  { %v1126_v52 = vpop.permute.xlu1 %1125 }
0x1566   :  { %v1128_v53 = vadd.f32 %v1126_v52, %v1118_v51  ;;  %v922_v51 = vrot.slane %v2950_v31, 2 }
0x1568   :  { %2548 = vtanh.f32 %v1128_v53  ;;  %v924_v52 = vadd.f32 %v922_v51, %v2856_v3 }
0x1572   :  { %v2549_v54 = vpop.eup %2548 }
0x1573   :  { %1131 = vrot.lane.b32.xlu0 %v2549_v54, %s2644_s24 }
0x1577   :  { %1141 = vrot.lane.b32.xlu0 %v1128_v53, %s2646_s26 }
0x15e5   :  { %v1132_v55 = vpop.permute.xlu0 %1131 }
0x15e6   :  { %v1134_v56 = vmul.f32 %v2547_v46, %v1132_v55 }
0x15e8   :  { %1136 = vrot.lane.b32.xlu1 %v1134_v56, %s2645_s25 }
0x15e9   :  { %v1142_v57 = vpop.permute.xlu0 %1141 }
0x15ea   :  { %1144 = vst.msk [vmem:[#allocation3] sm:$0x3] %vm37_vm1, %v1142_v57  ;;  %v2148_v57 = vmul.f32 -1.442695, %v924_v52 }
0x15f1   :  { %v1147_v58 = vld [vmem:[#allocation3] sm:$0x3] }
0x15f2   :  { %v1204_v59 = vrot.slane %v1147_v58, 6 }
0x15f4   :  { %1205 = vrot.lane.b32.xlu0 %v1204_v59, %s2645_s25 }
0x165a   :  { %v1137_v60 = vpop.permute.xlu1 %1136 }
0x165b   :  { %1139 = vst.msk [vmem:[#allocation2] sm:$0x3] %vm37_vm1, %v1137_v60  ;;  %1145 = vst.msk [vmem:[#allocation4] sm:$0x3] %vm37_vm1, %v1137_v60 }
0x1662   :  { %v1146_v61 = vld [vmem:[#allocation2] sm:$0x3] }
0x1663   :  { %v1148_v62 = vpack.c.bf16 %v1146_v61, %v1146_v61 }
0x1665   :  { %2388 = vmatmul.mubr.msk.bf16.vlgmr.msra.gmra.mrb[16].mxu0 %vm71_vm2, %v1148_v62 }
0x1666   :  { %2400 = vmatpush3.bf16.msra.mxu0 %v2917_v17  ;;  %2403 = vmatprep.mubr.msk.bf16.mxu0 %vm2643_vm0, %v2642_v1  ;;  %v1206_v47 = vpop.permute.xlu0 %1205 }
0x1667   :  { %2401 = vmatprep.subr.bf16.mxu0 %v2642_v1 }
0x166a   :  { %2402 = vmatpush3.bf16.msra.mxu0 %v2930_v19 }
0x166b   :  { %2415 = vmatprep.subr.bf16.mxu0 %v2642_v1 }
0x1738   :  { %v1186_v63 = vpop.f32.mrb[16].mxu0 }
0x1739   :  { %v1193_v0 = vrot.slane %v1186_v63, 6  ;;  %v2389_v2 = vpop.f32.mrb[17].mxu0 }
0x173a   :  { %v1189_v4 = vpop.f32.mrb[18].mxu0 }
0x173b   :  { %v1195_v5 = vadd.f32 %v1193_v0, %v2955_v36  ;;  %v2390_v6 = vpop.f32.mrb[19].mxu0 }
0x173d   :  { %2550 = vtanh.f32 %v1195_v5  ;;  %v2158_v8 = vmul.f32 -1.442695, %v1195_v5 }
0x173f   :  { %2552 = vpow2.f32 %v2158_v8 }
0x1747   :  { %v2551_v7 = vpop.eup %2550 }
0x1748   :  { %1210 = vrot.lane.b32.xlu1 %v2551_v7, %s2644_s24 }
0x1749   :  { %v2553_v10 = vpop.eup %2552 }
0x174a   :  { %v1199_v11 = vadd.f32 1.0, %v2553_v10 }
0x174c   :  { %2554 = vrcp.f32 %v1199_v11 }
0x1756   :  { %v2555_v12 = vpop.eup %2554 }
0x1757   :  { %v1208_v17 = vmul.f32 %v2555_v12, %v1206_v47 }
0x17ba   :  { %v1211_v13 = vpop.permute.xlu1 %1210 }
0x17bb   :  { %v1213_v15 = vmul.f32 %v2555_v12, %v1211_v13 }
0x17bd   :  { %1215 = vrot.lane.b32.xlu1 %v1213_v15, %s2645_s25 }
0x182f   :  { %v1216_v18 = vpop.permute.xlu1 %1215 }
0x1830   :  { %v1218_v19 = vadd.f32 %v1216_v18, %v1208_v17 }
0x1832   :  { %2556 = vtanh.f32 %v1218_v19 }
0x183c   :  { %v2557_v20 = vpop.eup %2556 }
0x183d   :  { %1221 = vrot.lane.b32.xlu0 %v2557_v20, %s2644_s24  ;;  %v3014_v20 = vld [vmem:[%s3230_s6 + $0x10] sm:$0xff]  }
0x1841   :  { %1231 = vrot.lane.b32.xlu0 %v1218_v19, %s2646_s26 }
0x18af   :  { %v1222_v21 = vpop.permute.xlu0 %1221 }
0x18b0   :  { %v1224_v23 = vmul.f32 %v2555_v12, %v1222_v21 }
0x18b2   :  { %1226 = vrot.lane.b32.xlu1 %v1224_v23, %s2645_s25 }
0x18b3   :  { %v1232_v24 = vpop.permute.xlu0 %1231 }
0x18b4   :  { %1234 = vst.msk [vmem:[#allocation3 - $0x2] sm:$0xc] %vm296_vm3, %v1232_v24 }
0x18bb   :  { %v1237_v25 = vld [vmem:[#allocation3] sm:$0x3] }
0x18bc   :  { %v1294_v26 = vrot.slane %v1237_v25, 4 }
0x18be   :  { %1295 = vrot.lane.b32.xlu0 %v1294_v26, %s2645_s25 }
0x1924   :  { %v1227_v27 = vpop.permute.xlu1 %1226 }
0x1925   :  { %1229 = vst.msk [vmem:[#allocation2 - $0x2] sm:$0xc] %vm296_vm3, %v1227_v27  ;;  %1235 = vst.msk [vmem:[#allocation4] sm:$0xc] %vm296_vm3, %v1227_v27 }
0x192c   :  { %v1236_v28 = vld [vmem:[#allocation2] sm:$0x3] }
0x192d   :  { %v1238_v29 = vpack.c.bf16 %v1236_v28, %v1236_v28 }
0x192f   :  { %2396 = vmatmul.mubr.msk.bf16.vlgmr.msra.gmra.mrb[32].mxu1 %vm71_vm2, %v1238_v29 }
0x1930   :  { %2411 = vmatprep.mubr.msk.bf16.mxu1 %vm2643_vm0, %v2642_v1  ;;  %v1296_v45 = vpop.permute.xlu0 %1295 }
0x1a02   :  { %v1276_v30 = vpop.f32.mrb[32].mxu1 }
0x1a03   :  { %v1283_v32 = vrot.slane %v1276_v30, 4  ;;  %v2397_v33 = vpop.f32.mrb[33].mxu1 }
0x1a04   :  { %v1279_v34 = vpop.f32.mrb[34].mxu1 }
0x1a05   :  { %v1285_v35 = vadd.f32 %v1283_v32, %v2955_v36  ;;  %v2398_v37 = vpop.f32.mrb[35].mxu1 }
0x1a07   :  { %2558 = vtanh.f32 %v1285_v35  ;;  %v2160_v39 = vmul.f32 -1.442695, %v1285_v35 }
0x1a09   :  { %2560 = vpow2.f32 %v2160_v39 }
0x1a11   :  { %v2559_v38 = vpop.eup %2558 }
0x1a12   :  { %1300 = vrot.lane.b32.xlu1 %v2559_v38, %s2644_s24 }
0x1a13   :  { %v2561_v40 = vpop.eup %2560 }
0x1a14   :  { %v1289_v41 = vadd.f32 1.0, %v2561_v40  ;;  %v2468_v40 = vld [vmem:[%s3229_s5 + $0x10] sm:$0xff]  }
0x1a15   :  { %2408 = vmatpush3.bf16.msra.mxu1 %v2468_v40 }
0x1a16   :  { %2562 = vrcp.f32 %v1289_v41  ;;  %2409 = vmatprep.subr.bf16.mxu1 %v2642_v1  ;;  %v2469_v41 = vld [vmem:[%s3229_s5 + $0x18] sm:$0xff]  }
0x1a19   :  { %2410 = vmatpush3.bf16.msra.mxu1 %v2469_v41 }
0x1a1a   :  { %2423 = vmatprep.subr.bf16.mxu1 %v2642_v1 }
0x1a20   :  { %v2563_v42 = vpop.eup %2562 }
0x1a21   :  { %v1298_v46 = vmul.f32 %v2563_v42, %v1296_v45 }
0x1a84   :  { %v1301_v43 = vpop.permute.xlu1 %1300 }
0x1a85   :  { %v1303_v44 = vmul.f32 %v2563_v42, %v1301_v43 }
0x1a87   :  { %1305 = vrot.lane.b32.xlu1 %v1303_v44, %s2645_s25 }
0x1af9   :  { %v1306_v14 = vpop.permute.xlu1 %1305 }
0x1afa   :  { %v1308_v49 = vadd.f32 %v1306_v14, %v1298_v46 }
0x1afc   :  { %2564 = vtanh.f32 %v1308_v49 }
0x1afd   :  { %2566 = vtanh.f32 %v924_v52 }
0x1afe   :  { %2568 = vpow2.f32 %v2148_v57 }
0x1b06   :  { %v2565_v50 = vpop.eup %2564 }
0x1b07   :  { %1311 = vrot.lane.b32.xlu0 %v2565_v50, %s2644_s24  ;;  %v2567_v56 = vpop.eup %2566 }
0x1b08   :  { %v2569_v58 = vpop.eup %2568 }
0x1b09   :  { %v928_v3 = vadd.f32 1.0, %v2569_v58 }
0x1b0b   :  { %1321 = vrot.lane.b32.xlu0 %v1308_v49, %s2646_s26  ;;  %2570 = vrcp.f32 %v928_v3 }
0x1b15   :  { %v2571_v0 = vpop.eup %2570 }
0x1b79   :  { %v1312_v53 = vpop.permute.xlu0 %1311 }
0x1b7a   :  { %v1314_v54 = vmul.f32 %v2563_v42, %v1312_v53 }
0x1b7c   :  { %1316 = vrot.lane.b32.xlu1 %v1314_v54, %s2645_s25  ;;  %v2172_v54 = vld [vmem:[%s3231_s7 + $0x1] ss:$0 sm:$0xff] }
0x1b7d   :  { %v1322_v55 = vpop.permute.xlu0 %1321 }
0x1b7e   :  { %1324 = vst.msk [vmem:[#allocation3 - $0x4] sm:$0x30] %vm387_vm4, %v1322_v55 }
0x1b80   :  { %858 = vrot.lane.b32.xlu1 %v2895_v9, %s2646_s26 }
0x1b84   :  { %939 = vrot.lane.b32.xlu1 %v2567_v56, %s2644_s24 }
0x1b85   :  { %v1327_v18 = vld [vmem:[#allocation3] sm:$0x3] }
0x1b86   :  { %v1384_v19 = vrot.slane %v1327_v18, 2 }
0x1bee   :  { %v1317_v31 = vpop.permute.xlu1 %1316 }
0x1bef   :  { %1319 = vst.msk [vmem:[#allocation2 - $0x4] sm:$0x30] %vm387_vm4, %v1317_v31  ;;  %1325 = vst.msk [vmem:[#allocation4] sm:$0x30] %vm387_vm4, %v1317_v31 }
0x1bf2   :  { %v859_v59 = vpop.permute.xlu1 %858 }
0x1bf3   :  { %861 = vst.msk [vmem:[#allocation3 - $0x2] sm:$0x30] %vm387_vm4, %v859_v59 }
0x1bf6   :  { %v1326_v60 = vld [vmem:[#allocation2] sm:$0x3]  ;;  %v940_v63 = vpop.permute.xlu1 %939 }
0x1bf7   :  { %v1328_v61 = vpack.c.bf16 %v1326_v60, %v1326_v60  ;;  %v942_v2 = vmul.f32 %v2571_v0, %v940_v63 }
0x1bf9   :  { %2404 = vmatmul.mubr.msk.bf16.vlgmr.msra.gmra.mrb[20].mxu0 %vm71_vm2, %v1328_v61 }
0x1bfa   :  { %v876_v9 = vld [vmem:[#allocation3 + $0x2] sm:$0x3]  ;;  %2419 = vmatprep.mubr.msk.bf16.mxu0 %vm2643_vm0, %v2642_v1  ;;  %2416 = vmatpush3.bf16.msra.mxu0 %v3014_v20 }
0x1bfb   :  { %v933_v62 = vrot.slane %v876_v9, 2  ;;  %2417 = vmatprep.subr.bf16.mxu0 %v2642_v1 }
0x1bfd   :  { %934 = vrot.lane.b32.xlu1 %v933_v62, %s2645_s25 }
0x1c01   :  { %944 = vrot.lane.b32.xlu1 %v942_v2, %s2645_s25 }
0x1c6f   :  { %v935_v4 = vpop.permute.xlu1 %934 }
0x1c70   :  { %v937_v5 = vmul.f32 %v2571_v0, %v935_v4 }
0x1c73   :  { %v945_v6 = vpop.permute.xlu1 %944 }
0x1c74   :  { %v947_v7 = vadd.f32 %v945_v6, %v937_v5 }
0x1c76   :  { %2572 = vtanh.f32 %v947_v7 }
0x1c80   :  { %v2573_v8 = vpop.eup %2572 }
0x1c81   :  { %950 = vrot.lane.b32.xlu1 %v2573_v8, %s2644_s24 }
0x1ccc   :  { %v1366_v10 = vpop.f32.mrb[20].mxu0 }
0x1ccd   :  { %v1373_v11 = vrot.slane %v1366_v10, 2  ;;  %v2405_v12 = vpop.f32.mrb[21].mxu0 }
0x1cce   :  { %v1369_v13 = vpop.f32.mrb[22].mxu0 }
0x1ccf   :  { %v1375_v15 = vadd.f32 %v1373_v11, %v2955_v36  ;;  %v2406_v47 = vpop.f32.mrb[23].mxu0  ;;  %v3020_v36 = vld [vmem:[%s3230_s6 + $0x18] sm:$0xff]  }
0x1cd0   :  { %2418 = vmatpush3.bf16.msra.mxu0 %v3020_v36 }
0x1cd1   :  { %2574 = vtanh.f32 %v1375_v15  ;;  %2431 = vmatprep.subr.bf16.mxu0 %v2642_v1  ;;  %v2162_v24 = vmul.f32 -1.442695, %v1375_v15 }
0x1cd3   :  { %2576 = vpow2.f32 %v2162_v24 }
0x1cdb   :  { %v2575_v17 = vpop.eup %2574 }
0x1cdc   :  { %1390 = vrot.lane.b32.xlu0 %v2575_v17, %s2644_s24 }
0x1cdd   :  { %v2577_v25 = vpop.eup %2576 }
0x1cde   :  { %v1379_v26 = vadd.f32 1.0, %v2577_v25 }
0x1ce0   :  { %1385 = vrot.lane.b32.xlu0 %v1384_v19, %s2645_s25  ;;  %2578 = vrcp.f32 %v1379_v26 }
0x1cea   :  { %v2579_v27 = vpop.eup %2578 }
0x1cf3   :  { %v951_v21 = vpop.permute.xlu1 %950 }
0x1cf4   :  { %v3025_v23 = vmul.f32 %v2571_v0, %v951_v21 }
0x1cf6   :  { %955 = vrot.lane.b32.xlu1 %v3025_v23, %s2645_s25 }
0x1d4e   :  { %v1391_v28 = vpop.permute.xlu0 %1390 }
0x1d4f   :  { %v1393_v29 = vmul.f32 %v2579_v27, %v1391_v28 }
0x1d51   :  { %1395 = vrot.lane.b32.xlu0 %v1393_v29, %s2645_s25 }
0x1d52   :  { %v1386_v34 = vpop.permute.xlu0 %1385 }
0x1d53   :  { %v1388_v35 = vmul.f32 %v2579_v27, %v1386_v34 }
0x1d68   :  { %v956_v30 = vpop.permute.xlu1 %955 }
0x1d69   :  { %958 = vst.msk [vmem:[#allocation2 - $0x4] sm:$0xc0] %vm478_vm5, %v956_v30 }
0x1d70   :  { %v1491_v32 = vld [vmem:[#allocation2 + $0x2] sm:$0x3] }
0x1d71   :  { %v1493_v33 = vpack.c.bf16 %v1491_v32, %v1491_v32 }
0x1d73   :  { %2420 = vmatmul.mubr.msk.bf16.vlgmr.msra.gmra.mrb[24].mxu0 %vm71_vm2, %v1493_v33 }
0x1d74   :  { %2432 = vmatpush3.bf16.msra.mxu0 %v3014_v20  ;;  %2435 = vmatprep.mubr.msk.bf16.mxu0 %vm2643_vm0, %v2642_v1 }
0x1d75   :  { %2433 = vmatprep.subr.bf16.mxu0 %v2642_v1 }
0x1d78   :  { %2434 = vmatpush3.bf16.msra.mxu0 %v3020_v36 }
0x1dc3   :  { %v1396_v37 = vpop.permute.xlu0 %1395 }
0x1dc4   :  { %v3037_v38 = vadd.f32 %v1396_v37, %v1388_v35 }
0x1dc6   :  { %2580 = vtanh.f32 %v3037_v38 }
0x1dd0   :  { %v2581_v39 = vpop.eup %2580 }
0x1dd1   :  { %1401 = vrot.lane.b32.xlu0 %v2581_v39, %s2644_s24 }
0x1e43   :  { %v1402_v42 = vpop.permute.xlu0 %1401 }
0x1e44   :  { %v1404_v43 = vmul.f32 %v2579_v27, %v1402_v42 }
0x1e46   :  { %v1543_v44 = vpop.f32.mrb[24].mxu0  ;;  %1406 = vrot.lane.b32.xlu0 %v1404_v43, %s2645_s25 }
0x1e47   :  { %v2421_v45 = vpop.f32.mrb[25].mxu0 }
0x1e48   :  { %v1546_v46 = vpop.f32.mrb[26].mxu0 }
0x1e49   :  { %v2422_v14 = vpop.f32.mrb[27].mxu0 }
0x1e4a   :  { %960 = vrot.lane.b32.xlu0 %v947_v7, %s2646_s26 }
0x1eb8   :  { %v1407_v49 = vpop.permute.xlu0 %1406 }
0x1eb9   :  { %1409 = vst.msk [vmem:[#allocation2 - $0x6] sm:$0xc0] %vm478_vm5, %v1407_v49  ;;  %1415 = vst.msk [vmem:[#allocation4] sm:$0xc0] %vm478_vm5, %v1407_v49 }
0x1ebc   :  { %v961_v50 = vpop.permute.xlu0 %960 }
0x1ebd   :  { %963 = vst.msk [vmem:[#allocation3 - $0x4] sm:$0xc0] %vm478_vm5, %v961_v50 }
0x1ec0   :  { %v1428_v51 = vld [vmem:[#allocation4] sm:$0xff] }
0x1ec1   :  { %v1429_v52 = vpack.c.bf16 %v1428_v51, %v1428_v51 }
0x1ec3   :  { %2412 = vmatmul.mubr.msk.bf16.vlgmr.msra.gmra.mrb[36].mxu1 %vm71_vm2, %v1429_v52 }
0x1ec4   :  { %v1492_v53 = vld [vmem:[#allocation3 + $0x2] sm:$0x3]  ;;  %2424 = vmatpush3.bf16.msra.mxu1 %v3014_v20  ;;  %2427 = vmatprep.mubr.msk.bf16.mxu1 %vm2643_vm0, %v2642_v1 }
0x1ec5   :  { %1558 = vrot.lane.b32.xlu0 %v1492_v53, %s2645_s25  ;;  %2425 = vmatprep.subr.bf16.mxu1 %v2642_v1 }
0x1ec8   :  { %2426 = vmatpush3.bf16.msra.mxu1 %v3020_v36 }
0x1ec9   :  { %2439 = vmatprep.subr.bf16.mxu1 %v2642_v1 }
0x1f37   :  { %v1559_v2 = vpop.permute.xlu0 %1558 }
0x1f96   :  { %v1485_v55 = vpop.f32.mrb[36].mxu1 }
0x1f97   :  { %v3065_v56 = vadd.f32 %v2172_v54, %v1485_v55  ;;  %v2413_v57 = vpop.f32.mrb[37].mxu1 }
0x1f98   :  { %v1488_v58 = vpop.f32.mrb[38].mxu1 }
0x1f99   :  { %v1549_v31 = vadd.f32 %v1543_v44, %v3065_v56  ;;  %v2414_v3 = vpop.f32.mrb[39].mxu1 }
0x1f9b   :  { %2582 = vtanh.f32 %v1549_v31  ;;  %v2179_v60 = vmul.f32 -1.442695, %v1549_v31 }
0x1f9d   :  { %2584 = vpow2.f32 %v2179_v60 }
0x1fa5   :  { %v2583_v59 = vpop.eup %2582 }
0x1fa6   :  { %1563 = vrot.lane.b32.xlu1 %v2583_v59, %s2644_s24 }
0x1fa7   :  { %v2585_v61 = vpop.eup %2584 }
0x1fa8   :  { %v1553_v9 = vadd.f32 1.0, %v2585_v61 }
0x1faa   :  { %2586 = vrcp.f32 %v1553_v9 }
0x1fb4   :  { %v2587_v62 = vpop.eup %2586 }
0x1fb5   :  { %v1561_v4 = vmul.f32 %v2587_v62, %v1559_v2 }
0x2018   :  { %v1564_v63 = vpop.permute.xlu1 %1563 }
0x2019   :  { %v1566_v0 = vmul.f32 %v2587_v62, %v1564_v63 }
0x201b   :  { %1568 = vrot.lane.b32.xlu1 %v1566_v0, %s2645_s25 }
0x208d   :  { %v1569_v5 = vpop.permute.xlu1 %1568 }
0x208e   :  { %v1571_v6 = vadd.f32 %v1569_v5, %v1561_v4  ;;  %v2647_v5 = vmov 1983009808  }
0x2090   :  { %2588 = vtanh.f32 %v1571_v6 }
0x209a   :  { %v2589_v7 = vpop.eup %2588 }
0x209b   :  { %1574 = vrot.lane.b32.xlu0 %v2589_v7, %s2644_s24  ;;  %v663_v7 = vlaneseq }
0x209f   :  { %1584 = vrot.lane.b32.xlu0 %v1571_v6, %s2646_s26  ;;  %v661_v6 = vunpack.c.l.s4 %v2647_v5 }
0x210d   :  { %v1575_v8 = vpop.permute.xlu0 %1574 }
0x210e   :  { %v3072_v10 = vmul.f32 %v2587_v62, %v1575_v8  ;;  %v662_v8 = vunpack.c.0.s8 %v661_v6 }
0x2110   :  { %1579 = vrot.lane.b32.xlu1 %v3072_v10, %s2645_s25 }
0x2111   :  { %v1585_v11 = vpop.permute.xlu0 %1584 }
0x2112   :  { %1587 = vst.msk [vmem:[#allocation3 + $0x2] sm:$0x3] %vm37_vm1, %v1585_v11  ;;  %v664_v11 = vshrl.u32 %v663_v7, 7 }
0x2119   :  { %v1600_v12 = vld [vmem:[#allocation3 + $0x2] sm:$0x3] }
0x211a   :  { %v1657_v13 = vrot.slane %v1600_v12, 6 }
0x211c   :  { %1658 = vrot.lane.b32.xlu0 %v1657_v13, %s2645_s25 }
0x2182   :  { %v1580_v15 = vpop.permute.xlu1 %1579 }
0x2183   :  { %1582 = vst.msk [vmem:[#allocation2 + $0x2] sm:$0x3] %vm37_vm1, %v1580_v15  ;;  %v3108_v15 = vsub.s32 %v662_v8, %v664_v11 }
0x218a   :  { %v1599_v47 = vld [vmem:[#allocation2 + $0x2] sm:$0x3] }
0x218b   :  { %v1601_v17 = vpack.c.bf16 %v1599_v47, %v1599_v47  ;;  %v1594_v47 = vrot.slane %v3072_v10, %v3108_v15 }
0x218d   :  { %2428 = vmatmul.mubr.msk.bf16.vlgmr.msra.gmra.mrb[40].mxu1 %vm71_vm2, %v1601_v17 }
0x218e   :  { %2440 = vmatpush3.bf16.msra.mxu1 %v3014_v20  ;;  %2443 = vmatprep.mubr.msk.bf16.mxu1 %vm2643_vm0, %v2642_v1 }
0x218f   :  { %2441 = vmatprep.subr.bf16.mxu1 %v2642_v1 }
0x2192   :  { %2442 = vmatpush3.bf16.msra.mxu1 %v3020_v36  ;;  %v1659_v36 = vpop.permute.xlu0 %1658 }
0x2260   :  { %v1639_v18 = vpop.f32.mrb[40].mxu1 }
0x2261   :  { %v1646_v19 = vrot.slane %v1639_v18, 6  ;;  %v2429_v21 = vpop.f32.mrb[41].mxu1 }
0x2262   :  { %v1642_v24 = vpop.f32.mrb[42].mxu1 }
0x2263   :  { %v1648_v25 = vadd.f32 %v1646_v19, %v3065_v56  ;;  %v2430_v26 = vpop.f32.mrb[43].mxu1 }
0x2265   :  { %2590 = vtanh.f32 %v1648_v25  ;;  %v2181_v28 = vmul.f32 -1.442695, %v1648_v25 }
0x2267   :  { %2592 = vpow2.f32 %v2181_v28 }
0x226f   :  { %v2591_v27 = vpop.eup %2590 }
0x2270   :  { %1663 = vrot.lane.b32.xlu1 %v2591_v27, %s2644_s24 }
0x2271   :  { %v2593_v20 = vpop.eup %2592 }
0x2272   :  { %v1652_v29 = vadd.f32 1.0, %v2593_v20 }
0x2274   :  { %2594 = vrcp.f32 %v1652_v29 }
0x227e   :  { %v2595_v30 = vpop.eup %2594 }
0x227f   :  { %v1661_v33 = vmul.f32 %v2595_v30, %v1659_v36 }
0x22e2   :  { %v1664_v1 = vpop.permute.xlu1 %1663 }
0x22e3   :  { %v1666_v32 = vmul.f32 %v2595_v30, %v1664_v1 }
0x22e5   :  { %1668 = vrot.lane.b32.xlu1 %v1666_v32, %s2645_s25 }
0x2357   :  { %v1669_v34 = vpop.permute.xlu1 %1668 }
0x2358   :  { %v1671_v35 = vadd.f32 %v1669_v34, %v1661_v33 }
0x235a   :  { %2596 = vtanh.f32 %v1671_v35 }
0x2364   :  { %v2597_v37 = vpop.eup %2596 }
0x2365   :  { %1674 = vrot.lane.b32.xlu0 %v2597_v37, %s2644_s24 }
0x2369   :  { %1684 = vrot.lane.b32.xlu0 %v1671_v35, %s2646_s26  ;;  %v766_v35 = vrot.slane %v2882_v48, %v3108_v15  ;;  %v2471_v48 = vld [vmem:[%s3232_s8] sm:$0xff]  }
0x236b   :  { %v767_v37 = vcombine.high %v766_v35, %v766_v35 }
0x23d7   :  { %v1675_v39 = vpop.permute.xlu0 %1674 }
0x23d8   :  { %v3090_v40 = vmul.f32 %v2595_v30, %v1675_v39  ;;  %v862_v39 = vcombine.high %v2911_v16, %v2911_v16  ;;  %v2472_v16 = vld [vmem:[%s3232_s8 + $0x48] sm:$0xff]  }
0x23da   :  { %1679 = vrot.lane.b32.xlu1 %v3090_v40, %s2645_s25 }
0x23db   :  { %v1685_v41 = vpop.permute.xlu0 %1684 }
0x23dc   :  { %1687 = vst.msk [vmem:[#allocation3] sm:$0xc] %vm296_vm3, %v1685_v41  ;;  %v869_v41 = vrot.slane %v862_v39, %v3108_v15 }
0x23e3   :  { %v1701_v42 = vld [vmem:[#allocation3 + $0x2] sm:$0x3] }
0x23e4   :  { %v1758_v43 = vrot.slane %v1701_v42, 4  ;;  %v2473_v42 = vld [vmem:[%s3232_s8 + $0x8] sm:$0xff]  }
0x23e6   :  { %1759 = vrot.lane.b32.xlu0 %v1758_v43, %s2645_s25  ;;  %v2475_v43 = vld [vmem:[%s3232_s8 + $0x10] sm:$0xff]  }
0x244c   :  { %v1680_v44 = vpop.permute.xlu1 %1679 }
0x244d   :  { %1682 = vst.msk [vmem:[#allocation2] sm:$0xc] %vm296_vm3, %v1680_v44 }
0x2454   :  { %v1700_v45 = vld [vmem:[#allocation2 + $0x2] sm:$0x3] }
0x2455   :  { %v1702_v46 = vpack.c.bf16 %v1700_v45, %v1700_v45 }
0x2457   :  { %2436 = vmatmul.mubr.msk.bf16.vlgmr.msra.gmra.mrb[28].mxu0 %vm71_vm2, %v1702_v46 }
0x2458   :  { %v1760_v60 = vpop.permute.xlu0 %1759 }
0x252a   :  { %v1740_v14 = vpop.f32.mrb[28].mxu0 }
0x252b   :  { %v1747_v49 = vrot.slane %v1740_v14, 4  ;;  %v2437_v50 = vpop.f32.mrb[29].mxu0  ;;  %v2476_v14 = vld [vmem:[%s3232_s8 + $0x58] sm:$0xff]  }
0x252c   :  { %v1743_v51 = vpop.f32.mrb[30].mxu0  ;;  %v964_v50 = vcombine.high %v3025_v23, %v3025_v23  ;;  %v2480_v23 = vld [vmem:[%s3232_s8 + $0x68] sm:$0xff]  }
0x252d   :  { %v1749_v52 = vadd.f32 %v1747_v49, %v3065_v56  ;;  %v2438_v53 = vpop.f32.mrb[31].mxu0  ;;  %v2477_v49 = vld [vmem:[%s3232_s8 + $0x18] sm:$0xff]  }
0x252e   :  { %v2479_v53 = vld [vmem:[%s3232_s8 + $0x20] sm:$0xff]  }
0x252f   :  { %2598 = vtanh.f32 %v1749_v52  ;;  %v2183_v55 = vmul.f32 -1.442695, %v1749_v52  ;;  %v2478_v52 = vld [vmem:[%s3232_s8 + $0x60] sm:$0xff]  }
0x2531   :  { %2600 = vpow2.f32 %v2183_v55 }
0x2539   :  { %v2599_v54 = vpop.eup %2598 }
0x253a   :  { %1764 = vrot.lane.b32.xlu1 %v2599_v54, %s2644_s24  ;;  %v971_v54 = vrot.slane %v964_v50, %v3108_v15 }
0x253b   :  { %v2601_v57 = vpop.eup %2600 }
0x253c   :  { %v1753_v58 = vadd.f32 1.0, %v2601_v57  ;;  %v2481_v57 = vld [vmem:[%s3232_s8 + $0x28] sm:$0xff]  }
0x253e   :  { %2602 = vrcp.f32 %v1753_v58  ;;  %v2482_v58 = vld [vmem:[%s3232_s8 + $0x70] sm:$0xff]  }
0x2548   :  { %v2603_v31 = vpop.eup %2602 }
0x2549   :  { %v1762_v61 = vmul.f32 %v2603_v31, %v1760_v60  ;;  %v2483_v60 = vld [vmem:[%s3232_s8 + $0x30] sm:$0xff]  }
0x25ac   :  { %v1765_v3 = vpop.permute.xlu1 %1764 }
0x25ad   :  { %v1767_v59 = vmul.f32 %v2603_v31, %v1765_v3  ;;  %v1694_v3 = vrot.slane %v3090_v40, %v3108_v15 }
0x25af   :  { %1769 = vrot.lane.b32.xlu1 %v1767_v59, %s2645_s25 }
0x2621   :  { %v1770_v9 = vpop.permute.xlu1 %1769 }
0x2622   :  { %v1772_v62 = vadd.f32 %v1770_v9, %v1762_v61  ;;  %v2484_v9 = vld [vmem:[%s3232_s8 + $0x78] sm:$0xff]  }
0x2624   :  { %2604 = vtanh.f32 %v1772_v62 }
0x262e   :  { %v2605_v63 = vpop.eup %2604 }
0x262f   :  { %1775 = vrot.lane.b32.xlu0 %v2605_v63, %s2644_s24 }
0x2633   :  { %1785 = vrot.lane.b32.xlu0 %v1772_v62, %s2646_s26  ;;  %v1695_v62 = vcombine.high %v1694_v3, %v1694_v3 }
0x26a1   :  { %v1776_v0 = vpop.permute.xlu0 %1775 }
0x26a2   :  { %v3103_v2 = vmul.f32 %v2603_v31, %v1776_v0  ;;  %v972_v31 = vcombine.high %v971_v54, %v971_v54  ;;  %v2485_v0 = vld [vmem:[%s3232_s8 + $0x38] sm:$0xff]  }
0x26a4   :  { %1780 = vrot.lane.b32.xlu1 %v3103_v2, %s2645_s25  ;;  %v1789_v40 = vcombine.high %v3103_v2, %v3103_v2 }
0x26a5   :  { %v1786_v4 = vpop.permute.xlu0 %1785 }
0x26a6   :  { %1788 = vst.msk [vmem:[#allocation3 - $0x2] sm:$0x30] %vm387_vm4, %v1786_v4  ;;  %v1796_v4 = vrot.slane %v1789_v40, %v3108_v15 }
0x26ad   :  { %v1802_v12 = vld [vmem:[#allocation3 + $0x2] sm:$0x3] }
0x26ae   :  { %v1859_v13 = vrot.slane %v1802_v12, 2 }
0x26b0   :  { %1860 = vrot.lane.b32.xlu0 %v1859_v13, %s2645_s25 }
0x26b4   :  { %1595 = vrot.lane.b32.xlu0 %v1594_v47, %s2645_s25 }
0x2716   :  { %v1781_v17 = vpop.permute.xlu1 %1780 }
0x2717   :  { %1783 = vst.msk [vmem:[#allocation2 - $0x2] sm:$0x30] %vm387_vm4, %v1781_v17 }
0x271e   :  { %v1801_v18 = vld [vmem:[#allocation2 + $0x2] sm:$0x3] }
0x271f   :  { %v1803_v19 = vpack.c.bf16 %v1801_v18, %v1801_v18 }
0x2721   :  { %2444 = vmatmul.mubr.msk.bf16.vlgmr.msra.gmra.mrb[44].mxu1 %vm71_vm2, %v1803_v19 }
0x2722   :  { %v1861_v21 = vpop.permute.xlu0 %1860 }
0x2726   :  { %v1596_v24 = vpop.permute.xlu0 %1595 }
0x2727   :  { %1598 = vst.msk [vmem:[#allocation5 + $0x2] sm:$0x3] %vm37_vm1, %v1596_v24 }
0x27f4   :  { %v1841_v25 = vpop.f32.mrb[44].mxu1 }
0x27f5   :  { %v1848_v26 = vrot.slane %v1841_v25, 2  ;;  %v2445_v27 = vpop.f32.mrb[45].mxu1 }
0x27f6   :  { %v1844_v28 = vpop.f32.mrb[46].mxu1 }
0x27f7   :  { %v1850_v20 = vadd.f32 %v1848_v26, %v3065_v56  ;;  %v2446_v10 = vpop.f32.mrb[47].mxu1  ;;  %v666_v56 = vrot.slane %v2863_v22, %v3108_v15  ;;  %v2470_v22 = vld [vmem:[%s3232_s8 + $0x40] sm:$0xff]  }
0x27f8   :  { %2265 = vmatprep.subr.bf16.mxu0 %v2470_v22 }
0x27f9   :  { %2606 = vtanh.f32 %v1850_v20  ;;  %v2185_v30 = vmul.f32 -1.442695, %v1850_v20  ;;  %2266 = vmatpush3.bf16.msra.mxu0 %v2471_v48 }
0x27fa   :  { %2267 = vmatprep.subr.bf16.mxu0 %v2472_v16 }
0x27fb   :  { %2608 = vpow2.f32 %v2185_v30 }
0x27fd   :  { %2268 = vmatpush3.bf16.msra.mxu0 %v2473_v42 }
0x2803   :  { %v2607_v29 = vpop.eup %2606 }
0x2804   :  { %1865 = vrot.lane.b32.xlu1 %v2607_v29, %s2644_s24 }
0x2805   :  { %v2609_v1 = vpop.eup %2608 }
0x2806   :  { %v1854_v32 = vadd.f32 1.0, %v2609_v1 }
0x2808   :  { %2610 = vrcp.f32 %v1854_v32 }
0x2812   :  { %v3119_v36 = vpop.eup %2610 }
0x2813   :  { %v1863_v44 = vmul.f32 %v3119_v36, %v1861_v21 }
0x2876   :  { %v1866_v33 = vpop.permute.xlu1 %1865 }
0x2877   :  { %v1868_v34 = vmul.f32 %v3119_v36, %v1866_v33 }
0x2879   :  { %1870 = vrot.lane.b32.xlu1 %v1868_v34, %s2645_s25 }
0x287d   :  { %667 = vrot.lane.b32.xlu1 %v666_v56, %s2645_s25 }
0x2881   :  { %768 = vrot.lane.b32.xlu1 %v767_v37, %s2644_s24 }
0x2885   :  { %870 = vrot.lane.b32.xlu1 %v869_v41, %s2646_s26 }
0x2889   :  { %1411 = vrot.lane.b32.xlu1 %v3037_v38, %s2646_s26  ;;  %v2474_v38 = vld [vmem:[%s3232_s8 + $0x50] sm:$0xff]  }
0x288a   :  { %2269 = vmatprep.subr.bf16.mxu0 %v2474_v38 }
0x288b   :  { %2270 = vmatpush3.bf16.msra.mxu0 %v2475_v43 }
0x288c   :  { %2271 = vmatprep.subr.bf16.mxu0 %v2476_v14 }
0x288f   :  { %2272 = vmatpush3.bf16.msra.mxu0 %v2477_v49 }
0x2890   :  { %2273 = vmatprep.subr.bf16.mxu0 %v2478_v52 }
0x2893   :  { %2274 = vmatpush3.bf16.msra.mxu0 %v2479_v53 }
0x2894   :  { %2275 = vmatprep.subr.bf16.mxu0 %v2480_v23 }
0x2897   :  { %2276 = vmatpush3.bf16.msra.mxu0 %v2481_v57 }
0x2898   :  { %2277 = vmatprep.subr.bf16.mxu0 %v2482_v58 }
0x289b   :  { %2278 = vmatpush3.bf16.msra.mxu0 %v2483_v60 }
0x289c   :  { %2279 = vmatprep.subr.bf16.mxu0 %v2484_v9 }
0x289f   :  { %2280 = vmatpush3.bf16.msra.mxu0 %v2485_v0 }
0x28eb   :  { %v1871_v45 = vpop.permute.xlu1 %1870 }
0x28ec   :  { %v1873_v46 = vadd.f32 %v1871_v45, %v1863_v44 }
0x28ee   :  { %2612 = vtanh.f32 %v1873_v46  ;;  %1886 = vrot.lane.b32.xlu1 %v1873_v46, %s2646_s26 }
0x28ef   :  { %v668_v51 = vpop.permute.xlu1 %667 }
0x28f0   :  { %670 = vst.msk [vmem:[#allocation5] sm:$0x3] %vm37_vm1, %v668_v51 }
0x28f3   :  { %v769_v55 = vpop.permute.xlu1 %768 }
0x28f4   :  { %772 = vst.msk [vmem:[#allocation5] sm:$0x3] %vm771_vm6, %v769_v55 }
0x28f7   :  { %v871_v59 = vpop.permute.xlu1 %870 }
0x28f8   :  { %v2613_v61 = vpop.eup %2612  ;;  %874 = vst.msk [vmem:[#allocation5] sm:$0x3] %vm873_vm7, %v871_v59 }
0x28f9   :  { %975 = vst.msk [vmem:[#allocation5] sm:$0x3] %vm974_vm8, %v972_v31  ;;  %1876 = vrot.lane.b32.xlu0 %v2613_v61, %s2644_s24 }
0x28fb   :  { %v1412_v63 = vpop.permute.xlu1 %1411 }
0x28fc   :  { %1414 = vst.msk [vmem:[#allocation3 - $0x6] sm:$0xc0] %vm478_vm5, %v1412_v63 }
0x28fd   :  { %1696 = vrot.lane.b32.xlu0 %v1695_v62, %s2644_s24 }
0x2901   :  { %1797 = vrot.lane.b32.xlu0 %v1796_v4, %s2646_s26 }
0x2960   :  { %v1887_v5 = vpop.permute.xlu1 %1886 }
0x2961   :  { %1889 = vst.msk [vmem:[#allocation3 - $0x4] sm:$0xc0] %vm478_vm5, %v1887_v5 }
0x296b   :  { %v1877_v2 = vpop.permute.xlu0 %1876 }
0x296c   :  { %v1879_v6 = vmul.f32 %v3119_v36, %v1877_v2 }
0x296e   :  { %v1890_v7 = vcombine.high %v1879_v6, %v1879_v6  ;;  %1881 = vrot.lane.b32.xlu0 %v1879_v6, %s2645_s25  ;;  %s2648_s25 = smov [#allocation6]  }
0x296f   :  { %v1697_v8 = vpop.permute.xlu0 %1696  ;;  %s2104_s26 = sshll.u32 %s2648_s25, 4  ;;  %s2105_s26 = int_to_ptr.vmem [resolvable:$true] %s2104_s26 }
0x2970   :  { %v1897_v11 = vrot.slane %v1890_v7, %v3108_v15  ;;  %1699 = vst.msk [vmem:[#allocation5 + $0x2] sm:$0x3] %vm771_vm6, %v1697_v8  ;;  %v2187_v15 = vld [vmem:[%s3233_s9] ss:$0 sm:$0xff]  ;;  %s2618_s18 = scalar_lea.vmem %s2105_s26, 32  ;;  %p2623_p1 = scmp.lt.s32.totalorder %s2105_s26, %s2105_s26 }
0x2971   :  { %p2619_p0 = scmp.ne.s32.totalorder %s2105_s26, %s2618_s18  ;;  %p2624_p2 = scmp.lt.s32.totalorder %s2618_s18, %s2618_s18 }
0x2972   :  { %v1898_v12 = vcombine.high %v1897_v11, %v1897_v11 }
0x2973   :  { %v1798_v13 = vpop.permute.xlu0 %1797  ;;  %p2625_p3 = por %p2624_p2, %p2623_p1 }
0x2974   :  { %1800 = vst.msk [vmem:[#allocation5 + $0x2] sm:$0x3] %vm873_vm7, %v1798_v13 }
0x2975   :  { %1900 = vst.msk [vmem:[#allocation5 + $0x2] sm:$0x3] %vm974_vm8, %v1898_v12  ;;  %p2626_p4 = pnand %p2625_p3, %p2619_p0 }
0x297c   :  { %v2186_v47 = vld.sshfl [vmem:[#allocation5] sm:$0x33 pattern:$0x76325410] }
0x297d   :  { %v1910_v17 = vcombine.high %v2186_v47, %v2186_v47  ;;  %v1913_v19 = vpack.c.bf16 %v2186_v47, %v2186_v47 }
0x297f   :  { %v1914_v18 = vpack.c.bf16 %v1910_v17, %v1910_v17 }
0x2981   :  { %2082 = vmatprep.mubr.bf16.mxu0 %v1914_v18 }
0x2982   :  { %2083 = vmatmul.mubr.bf16.vlgmr.msra.gmra.mrb[32].mxu0 %v1913_v19 }
0x29e0   :  { %v1882_v21 = vpop.permute.xlu0 %1881 }
0x29e1   :  { %1884 = vst.msk [vmem:[#allocation2 - $0x4] sm:$0xc0] %vm478_vm5, %v1882_v21 }
0x2a55   :  { %v2281_v24 = vpop.f32.mrb[32].mxu0 }
0x2a56   :  { %v2282_v25 = vpop.f32.mrb[33].mxu0 }
0x2a57   :  { %v2283_v26 = vadd.f32 %v2282_v25, %v2281_v24  ;;  %v2284_v27 = vpop.f32.mrb[34].mxu0 }
0x2a58   :  { %v2285_v28 = vpop.f32.mrb[35].mxu0 }
0x2a59   :  { %v2085_v20 = vadd.f32 %v2283_v26, %v2187_v15 }
0x2a5b   :  { %v2204_v10 = vmul.f32 -1.442695, %v2085_v20 }
0x2a5d   :  { %2614 = vpow2.f32 %v2204_v10 }
0x2a67   :  { %v2615_v29 = vpop.eup %2614 }
0x2a68   :  { %v2093_v30 = vadd.f32 1.0, %v2615_v29 }
0x2a6a   :  { %2616 = vrcp.f32 %v2093_v30 }
0x2a74   :  { %v2617_v1 = vpop.eup %2616 }
0x2a75   :  { %2097 = vst.msk [vmem:[#allocation6] sm:$0x3] %vm2096_vm9, %v2617_v1 }
0x2a76   :  { %2629 = shalt.err (!%p2626_p4)
}
0x2a77   :  { %s2630_s20 = scalar_lea.hbm %s3234_s10, 32 }
0x2a78   :  { %p2631_p5 = scmp.ne.s32.totalorder %s3234_s10, %s2630_s20  ;;  %p2634_p6 = scmp.lt.u32.totalorder %s2630_s20, %s3234_s10 }
0x2a7a   :  { %p2636_p7 = pnand %p2634_p6, %p2631_p5 }
0x2a7c   :  { %2639 = shalt.err (!%p2636_p7)
}
0x2a7d   :  { %2107 = dma.vmem_to_hbm [thread:$0]  %s2105_s26, 32, %s3234_s10, [#allocation7]  }
0x2a7e   :  { %2640 = dma.done.wait [#allocation7], 32  }
0x2a7f   :  { %2641 = vsyncadd [#allocation7], 4294967264 }
0x2a80   :  { %2111 = vsyncpa [#allocation7], 1 }

</bundles_post_ra>
